<compile_context>
chip_gen: v7x
topology: tpu7x:2x2x1
jax: 0.10.0
libtpu: 0.0.40
codegen_flags: <defaults>
</compile_context>

<pallas_src>
import functools
import math

import jax
import jax.numpy as jnp
from jax.experimental import pallas as pl
from jax.experimental.pallas import tpu as pltpu


def _round_up(x, m):
    return ((x + m - 1) // m) * m


def _largest_divisor_leq(n, cap):
    cap = max(1, min(n, cap))
    for d in range(cap, 0, -1):
        if n % d == 0:
            return d
    return 1


def _mosaic(dims, need_bytes):
    """CompilerParams with an explicit scoped-VMEM limit derived from the block sizes."""
    vmem = int(min(max(2 * need_bytes + (8 << 20), 32 << 20), 64 << 20))
    return pltpu.CompilerParams(dimension_semantics=dims, vmem_limit_bytes=vmem)


# ---------------------------------------------------------------------------
# Kernel 1: transpose-conv 2x2/s2 + folded BN + ReLU (4 taps = one matmul,
# output stored so the NHWC reshape in the wrapper is free -> no HBM transpose)
# ---------------------------------------------------------------------------

def _upsample_kernel(x_ref, w_ref, sc_ref, sh_ref, o_ref, *, cout):
    rt, wdim, cin = x_ref.shape
    y = jnp.dot(x_ref[...].reshape(rt * wdim, cin), w_ref[...],
                preferred_element_type=jnp.float32)
    y = jnp.maximum(y * sc_ref[...] + sh_ref[...], 0.0).astype(o_ref.dtype)
    two_c = 2 * cout
    # y columns are ordered (di, dj, cout); each di half is written as (rt, W, 2*cout)
    # into the (rows, 2, W, 2*cout) block -> the wrapper reshape to NHWC is metadata-only.
    o_ref[:, 0, :, :] = y[:, :two_c].reshape(rt, wdim, two_c)
    o_ref[:, 1, :, :] = y[:, two_c:].reshape(rt, wdim, two_c)


def transpose_conv2x2_block(x, p):
    """ConvTranspose2d(k=2,s=2) + BN + ReLU.  x: (B,H,W,Cin) -> (B,2H,2W,Cout)."""
    B, H, W, Cin = x.shape
    Cout = p["wcat"].shape[1] // 4
    BH = B * H
    rt = _largest_divisor_leq(BH, max(1, 2048 // max(W, 1)))   # big M tiles (~0.35us/step)
    xr = x.reshape(BH, W, Cin).astype(jnp.bfloat16)
    need = (rt * W * Cin + rt * 2 * W * 2 * Cout + p["wcat"].size) * 2
    out = pl.pallas_call(
        functools.partial(_upsample_kernel, cout=Cout),
        out_shape=jax.ShapeDtypeStruct((BH, 2, W, 2 * Cout), jnp.bfloat16),
        grid_spec=pltpu.PrefetchScalarGridSpec(
            num_scalar_prefetch=0,
            grid=(BH // rt,),
            in_specs=[
                pl.BlockSpec((rt, W, Cin), lambda i: (i, 0, 0)),
                pl.BlockSpec((Cin, 4 * Cout), lambda i: (0, 0)),
                pl.BlockSpec((1, 4 * Cout), lambda i: (0, 0)),
                pl.BlockSpec((1, 4 * Cout), lambda i: (0, 0)),
            ],
            out_specs=pl.BlockSpec((rt, 2, W, 2 * Cout), lambda i: (i, 0, 0, 0)),
        ),
        compiler_params=_mosaic(("parallel",), need),
    )(xr, p["wcat"], p["scale4"].reshape(1, -1), p["shift4"].reshape(1, -1))
    # (BH, 2, W, 2C) -> (B, 2H, 2W, C): contiguous, no data movement.
    return out.reshape(B, 2 * H, 2 * W, Cout)


# ---------------------------------------------------------------------------
# Kernel 2: fused CSFG skip connection (spatial attention + gating + 1x1 projection)
# ---------------------------------------------------------------------------

def _csfg_kernel(x_ref, g_ref, catt_ref, wxg_ref, bxg_ref, psiwt_ref, psib_ref,
                 projw_ref, psc_ref, psh_ref, o_ref):
    x = x_ref[0]                                   # (tm, Ce) bf16  encoder (skip) rows
    g = g_ref[0]                                   # (tm, Co) bf16  decoder (gating) rows

    # additive spatial attention, [Wx; Wg] stacked into one deeper contraction:
    # f = relu([x|g] @ [Wx; Wg] + b)
    xg = jnp.concatenate([x, g], axis=-1)          # (tm, Ce+Co)
    f = jnp.dot(xg, wxg_ref[...], preferred_element_type=jnp.float32) + bxg_ref[...]
    f = jnp.maximum(f, 0.0)                        # (tm, inter)

    # psi = sigmoid(f . psi_w + b) as an XLU lane reduction (psi_w pre-transposed)
    psi = jax.nn.sigmoid(
        jnp.sum(f * psiwt_ref[...], axis=1, keepdims=True) + psib_ref[...])   # (tm, 1)

    # gated = x*catt*psi + x  ==  x * (catt*psi + 1)   (halves the f32 gating work)
    gate = catt_ref[0] * psi + 1.0                 # (tm, Ce) f32
    gated = x.astype(jnp.float32) * gate

    # 1x1 ConvBlock projection (BN folded into scale/shift) + ReLU
    y = jnp.dot(gated.astype(jnp.bfloat16), projw_ref[...],
                preferred_element_type=jnp.float32)
    o_ref[0] = jnp.maximum(y * psc_ref[...] + psh_ref[...], 0.0).astype(o_ref.dtype)


def csfg_fused(x_skip, g_up, c_att, p):
    """x_skip: (B,H,W,Ce) bf16; g_up: (B,H,W,Co) bf16; c_att: (B,Ce) f32 -> (B,H,W,Cs)."""
    B, H, W, Ce = x_skip.shape
    Co = g_up.shape[-1]
    Cs = p["proj_w"].shape[-1]
    inter = p["wxg_w"].shape[-1]
    HW = H * W
    tm = min(1024, _round_up(HW, 8))
    HWp = _round_up(HW, tm)
    xr = x_skip.reshape(B, HW, Ce)
    gr = g_up.reshape(B, HW, Co)
    if HWp != HW:
        xr = jnp.pad(xr, ((0, 0), (0, HWp - HW), (0, 0)))
        gr = jnp.pad(gr, ((0, 0), (0, HWp - HW), (0, 0)))
    catt = c_att.reshape(B, 1, Ce).astype(jnp.float32)
    need = tm * (Ce + Co + Cs + inter) * 4

    out = pl.pallas_call(
        _csfg_kernel,
        out_shape=jax.ShapeDtypeStruct((B, HWp, Cs), jnp.bfloat16),
        grid_spec=pltpu.PrefetchScalarGridSpec(
            num_scalar_prefetch=0,
            grid=(B, HWp // tm),
            in_specs=[
                pl.BlockSpec((1, tm, Ce), lambda b, m: (b, m, 0)),
                pl.BlockSpec((1, tm, Co), lambda b, m: (b, m, 0)),
                pl.BlockSpec((1, 1, Ce), lambda b, m: (b, 0, 0)),
                pl.BlockSpec((Ce + Co, inter), lambda b, m: (0, 0)),
                pl.BlockSpec((1, inter), lambda b, m: (0, 0)),
                pl.BlockSpec((1, inter), lambda b, m: (0, 0)),
                pl.BlockSpec((1, 1), lambda b, m: (0, 0)),
                pl.BlockSpec((Ce, Cs), lambda b, m: (0, 0)),
                pl.BlockSpec((1, Cs), lambda b, m: (0, 0)),
                pl.BlockSpec((1, Cs), lambda b, m: (0, 0)),
            ],
            out_specs=pl.BlockSpec((1, tm, Cs), lambda b, m: (b, m, 0)),
        ),
        compiler_params=_mosaic(("parallel", "parallel"), need),
    )(xr.astype(jnp.bfloat16), gr.astype(jnp.bfloat16), catt,
      p["wxg_w"], p["wxg_b"], p["psi_wt"], p["psi_b"],
      p["proj_w"], p["proj_scale"], p["proj_shift"])
    return out[:, :HW, :].reshape(B, H, W, Cs)


# ---------------------------------------------------------------------------
# Kernel 3: 3x3 convs with in-kernel halo + dx folded into K (3 matmuls, no im2col)
#   - channel_adjust: 2-input split-K (the concat([g_up, x_fused]) is never materialized)
#   - residual block: conv1 + conv2 + residual + ReLU fused; h1 stays in VMEM
# ---------------------------------------------------------------------------

def _fill_xs(xs_ref, srcs, H, W):
    """Pack the three dx-shifted, zero-padded copies of every input into the K axis:
       xs[h, w, off + dx*Cin_i + c] = x_i[h-1, w+dx-1, c] (zero outside the image)."""
    xs_ref[...] = jnp.zeros(xs_ref.shape, xs_ref.dtype)
    off = 0
    for src in srcs:
        cin = src.shape[-1]
        if W > 1:
            xs_ref[1:H + 1, 1:W, off:off + cin] = src[:, :W - 1, :]               # dx = 0
        xs_ref[1:H + 1, :, off + cin:off + 2 * cin] = src                          # dx = 1
        if W > 1:
            xs_ref[1:H + 1, :W - 1, off + 2 * cin:off + 3 * cin] = src[:, 1:, :]   # dx = 2
        off += 3 * cin


def _conv3x3_from_xs(xs_ref, wk_ref, H, W):
    """3 matmuls over dy with K = 3 * sum(Cin) (dx folded into the contraction)."""
    ktot = xs_ref.shape[-1]
    acc = None
    for dy in range(3):
        patch = xs_ref[dy:dy + H].reshape(H * W, ktot)
        part = jnp.dot(patch, wk_ref[dy], preferred_element_type=jnp.float32)
        acc = part if acc is None else acc + part
    return acc                                       # (H*W, Cout) f32


def _adjust_kernel(x0_ref, x1_ref, wk_ref, sc_ref, sh_ref, o_ref, xs_ref, *, H, W):
    _fill_xs(xs_ref, [x0_ref[0], x1_ref[0]], H, W)
    y = _conv3x3_from_xs(xs_ref, wk_ref, H, W)
    y = jnp.maximum(y * sc_ref[...] + sh_ref[...], 0.0)
    cout = o_ref.shape[-1]
    o_ref[0] = y.astype(o_ref.dtype).reshape(H, W, cout)


def channel_adjust_fused(g_up, x_fused, p):
    """3x3 ConvBlock over [g_up | x_fused] (split-K, no concat) + folded BN + ReLU."""
    B, H, W, c0 = g_up.shape
    c1 = x_fused.shape[-1]
    ktot, Cout = p["wk"].shape[1], p["wk"].shape[2]
    need = (H * W * (c0 + c1 + Cout) + (H + 2) * W * ktot + p["wk"].size) * 2
    out = pl.pallas_call(
        functools.partial(_adjust_kernel, H=H, W=W),
        out_shape=jax.ShapeDtypeStruct((B, H, W, Cout), jnp.bfloat16),
        grid_spec=pltpu.PrefetchScalarGridSpec(
            num_scalar_prefetch=0,
            grid=(B,),
            in_specs=[
                pl.BlockSpec((1, H, W, c0), lambda b: (b, 0, 0, 0)),
                pl.BlockSpec((1, H, W, c1), lambda b: (b, 0, 0, 0)),
                pl.BlockSpec((3, ktot, Cout), lambda b: (0, 0, 0)),
                pl.BlockSpec((1, Cout), lambda b: (0, 0)),
                pl.BlockSpec((1, Cout), lambda b: (0, 0)),
            ],
            out_specs=pl.BlockSpec((1, H, W, Cout), lambda b: (b, 0, 0, 0)),
            scratch_shapes=[pltpu.VMEM((H + 2, W, ktot), jnp.bfloat16)],
        ),
        compiler_params=_mosaic(("parallel",), need),
    )(g_up.astype(jnp.bfloat16), x_fused.astype(jnp.bfloat16),
      p["wk"], p["scale"].reshape(1, Cout), p["shift"].reshape(1, Cout))
    return out


def _resblock_kernel(x_ref, wk1_ref, sc1_ref, sh1_ref, wk2_ref, sc2_ref, sh2_ref,
                     o_ref, xs_ref, *, H, W):
    C = o_ref.shape[-1]
    x = x_ref[0]                                     # (H, W, C) bf16
    # conv1 + BN + ReLU (h1 never leaves VMEM)
    _fill_xs(xs_ref, [x], H, W)
    h1 = _conv3x3_from_xs(xs_ref, wk1_ref, H, W)
    h1 = jnp.maximum(h1 * sc1_ref[...] + sh1_ref[...], 0.0)
    # TODO(synk): ResidualBlock dropout is a training-time op; inference forward omits it.
    # conv2 + BN, then + identity and ReLU
    _fill_xs(xs_ref, [h1.astype(jnp.bfloat16).reshape(H, W, C)], H, W)
    h2 = _conv3x3_from_xs(xs_ref, wk2_ref, H, W)
    h2 = h2 * sc2_ref[...] + sh2_ref[...]
    y = jnp.maximum(h2 + x.reshape(H * W, C).astype(jnp.float32), 0.0)
    o_ref[0] = y.astype(o_ref.dtype).reshape(H, W, C)


def residual_block_fused(x, p):
    """One pallas_call per ResidualBlock: conv-bn-relu -> conv-bn -> +identity -> ReLU."""
    B, H, W, C = x.shape
    ktot = 3 * C
    need = (2 * H * W * C + (H + 2) * W * ktot + 2 * p["wk1"].size) * 2
    out = pl.pallas_call(
        functools.partial(_resblock_kernel, H=H, W=W),
        out_shape=jax.ShapeDtypeStruct((B, H, W, C), jnp.bfloat16),
        grid_spec=pltpu.PrefetchScalarGridSpec(
            num_scalar_prefetch=0,
            grid=(B,),
            in_specs=[
                pl.BlockSpec((1, H, W, C), lambda b: (b, 0, 0, 0)),
                pl.BlockSpec((3, ktot, C), lambda b: (0, 0, 0)),
                pl.BlockSpec((1, C), lambda b: (0, 0)),
                pl.BlockSpec((1, C), lambda b: (0, 0)),
                pl.BlockSpec((3, ktot, C), lambda b: (0, 0, 0)),
                pl.BlockSpec((1, C), lambda b: (0, 0)),
                pl.BlockSpec((1, C), lambda b: (0, 0)),
            ],
            out_specs=pl.BlockSpec((1, H, W, C), lambda b: (b, 0, 0, 0)),
            scratch_shapes=[pltpu.VMEM((H + 2, W, ktot), jnp.bfloat16)],
        ),
        compiler_params=_mosaic(("parallel",), need),
    )(x.astype(jnp.bfloat16),
      p["wk1"], p["scale1"].reshape(1, C), p["shift1"].reshape(1, C),
      p["wk2"], p["scale2"].reshape(1, C), p["shift2"].reshape(1, C))
    return out


# ---------------------------------------------------------------------------
# Wrapper-level glue (tiny ops stay in plain jnp: bilinear resize, GAP + SE MLP)
# ---------------------------------------------------------------------------

def bilinear_align_corners(x, out_h, out_w):
    """F.interpolate(..., mode='bilinear', align_corners=True) for NHWC (jnp glue)."""
    B, H, W, C = x.shape
    if (H, W) == (out_h, out_w):
        return x

    def coords(n_in, n_out):
        if n_out == 1:
            return jnp.zeros((1,), jnp.float32)
        return jnp.linspace(0.0, n_in - 1.0, n_out)

    ys, xs = coords(H, out_h), coords(W, out_w)
    y0 = jnp.floor(ys).astype(jnp.int32)
    y1 = jnp.minimum(y0 + 1, H - 1)
    wy = (ys - y0)[None, :, None, None]
    x0 = jnp.floor(xs).astype(jnp.int32)
    x1 = jnp.minimum(x0 + 1, W - 1)
    wx = (xs - x0)[None, None, :, None]
    top = x[:, y0][:, :, x0] * (1 - wx) + x[:, y0][:, :, x1] * wx
    bot = x[:, y1][:, :, x0] * (1 - wx) + x[:, y1][:, :, x1] * wx
    return top * (1 - wy) + bot * wy


# ---------------------------------------------------------------------------
# Parameter initialization (deterministic, synthetic; BN folded; weights pre-packed)
# ---------------------------------------------------------------------------

def init_params(key, deep_c, skip_c, out_c, reduction_ratio=8, num_res_blocks=2):
    keys = iter(jax.random.split(key, 32))
    eps = 1e-5

    def nrm(shape, std):
        return std * jax.random.normal(next(keys), shape, jnp.float32)

    def bn_fold(cout, bias):
        gamma = jnp.ones((cout,), jnp.float32)
        beta = jnp.zeros((cout,), jnp.float32)
        mean = jnp.zeros((cout,), jnp.float32)
        var = jnp.ones((cout,), jnp.float32)
        s = gamma / jnp.sqrt(var + eps)
        return s, bias * s + beta - mean * s

    bf = lambda a: a.astype(jnp.bfloat16)
    params = {}

    # upsample: ConvTranspose2d (Cin, Cout, 2, 2), bias=0, BN folded.  4 taps -> matmul
    # columns ordered (di, dj, cout).
    w = nrm((deep_c, out_c, 2, 2), math.sqrt(2.0 / (deep_c * 4)))
    s, sh = bn_fold(out_c, jnp.zeros((out_c,), jnp.float32))
    wcat = jnp.transpose(w, (0, 2, 3, 1)).reshape(deep_c, 4 * out_c)
    params["upsample"] = dict(wcat=bf(wcat), scale4=jnp.tile(s, 4), shift4=jnp.tile(sh, 4))

    # CSFG skip connection
    inter = max(skip_c // reduction_ratio, 1)
    hidden = max(skip_c // reduction_ratio, 1)
    wx = nrm((skip_c, inter), math.sqrt(2.0 / inter))
    wg = nrm((out_c, inter), math.sqrt(2.0 / inter))
    csfg = dict(
        fc1_w=nrm((out_c, hidden), 0.1), fc1_b=jnp.zeros((hidden,), jnp.float32),
        fc2_w=nrm((hidden, skip_c), 0.1), fc2_b=jnp.zeros((skip_c,), jnp.float32),
        wxg_w=bf(jnp.concatenate([wx, wg], axis=0)),    # [Wx; Wg] stacked (one contraction)
        wxg_b=jnp.zeros((1, inter), jnp.float32),       # wx_b + wg_b (both 0)
        psi_wt=nrm((inter, 1), math.sqrt(2.0)).reshape(1, inter),   # pre-transposed
        psi_b=jnp.zeros((1, 1), jnp.float32),
    )
    pw = nrm((skip_c, skip_c), math.sqrt(2.0 / skip_c))
    ps, psh = bn_fold(skip_c, jnp.zeros((skip_c,), jnp.float32))
    csfg.update(proj_w=bf(pw),
                proj_scale=ps.reshape(1, skip_c),
                proj_shift=psh.reshape(1, skip_c))
    params["csfg"] = csfg

    # channel_adjust: 3x3 ConvBlock (out_c + skip_c) -> out_c, packed as (3, 3*Cin_tot, Cout)
    # with K order (input, dx, cin) so concat([g_up, x_fused]) is never materialized.
    caw = nrm((3, 3, out_c + skip_c, out_c), math.sqrt(2.0 / (out_c * 9)))
    cas, cash = bn_fold(out_c, jnp.zeros((out_c,), jnp.float32))
    wk_dec = caw[:, :, :out_c, :].reshape(3, 3 * out_c, out_c)
    wk_skip = caw[:, :, out_c:, :].reshape(3, 3 * skip_c, out_c)
    params["adjust"] = dict(wk=bf(jnp.concatenate([wk_dec, wk_skip], axis=1)),
                            scale=cas, shift=cash)

    # residual blocks: both conv weights packed as (3, 3*C, C) for the dx-folded contraction.
    rbs = []
    for _ in range(num_res_blocks):
        w1 = nrm((3, 3, out_c, out_c), math.sqrt(2.0 / (out_c * 9)))
        s1, sh1 = bn_fold(out_c, jnp.zeros((out_c,), jnp.float32))
        w2 = nrm((3, 3, out_c, out_c), math.sqrt(2.0 / (out_c * 9)))
        s2, sh2 = bn_fold(out_c, jnp.zeros((out_c,), jnp.float32))
        rbs.append(dict(wk1=bf(w1.reshape(3, 3 * out_c, out_c)), scale1=s1, shift1=sh1,
                        wk2=bf(w2.reshape(3, 3 * out_c, out_c)), scale2=s2, shift2=sh2))
    params["res_blocks"] = rbs
    return params


# ---------------------------------------------------------------------------
# DecoderStage forward
# ---------------------------------------------------------------------------

def decoder_stage_forward(params, x_deep_nchw, x_skip_nchw):
    xd = jnp.transpose(x_deep_nchw, (0, 2, 3, 1)).astype(jnp.bfloat16)   # NHWC
    xs = jnp.transpose(x_skip_nchw, (0, 2, 3, 1)).astype(jnp.float32)    # NHWC
    B = xd.shape[0]

    # 1) upsample: transpose conv 2x2/s2 + BN + ReLU (one matmul, no HBM transpose)
    g_up = transpose_conv2x2_block(xd, params["upsample"])               # (B, 2H, 2W, Co)
    H2, W2, Co = g_up.shape[1], g_up.shape[2], g_up.shape[3]

    # 2) resize skip to target spatial size if needed (bilinear, align_corners=True)
    xs = bilinear_align_corners(xs, H2, W2)

    # 3) CSFG skip connection
    p = params["csfg"]
    # channel attention: GAP + tiny SE MLP kept in plain jnp (2x8 matrices, not worth MXU)
    g_gap = jnp.mean(g_up.astype(jnp.float32).reshape(B, H2 * W2, Co), axis=1)
    h = jax.nn.relu(g_gap @ p["fc1_w"] + p["fc1_b"])
    c_att = jax.nn.sigmoid(h @ p["fc2_w"] + p["fc2_b"])                  # (B, Ce)
    # spatial attention + gating + 1x1 ConvBlock projection: one fused kernel
    x_fused = csfg_fused(xs.astype(jnp.bfloat16), g_up, c_att, p)        # (B, H2, W2, Ce)

    # 4) channel_adjust (3x3 ConvBlock) over [g_up | x_fused] without materializing the concat
    x = channel_adjust_fused(g_up, x_fused, params["adjust"])

    # 5) residual blocks, one fused kernel each (h1 stays in VMEM)
    for rp in params["res_blocks"]:
        x = residual_block_fused(x, rp)

    return jnp.transpose(x, (0, 3, 1, 2)).astype(jnp.float32)            # back to NCHW


# ---------------------------------------------------------------------------

if __name__ == "__main__":
    key = jax.random.PRNGKey(0)
    kp, kd, ks = jax.random.split(key, 3)

    B, H, W = 2, 8, 8
    deep_c, skip_c, out_c = 16, 8, 8

    params = init_params(kp, deep_c, skip_c, out_c, reduction_ratio=8, num_res_blocks=2)
    x_deep = jax.random.normal(kd, (B, deep_c, H, W), jnp.float32)
    x_skip = jax.random.normal(ks, (B, skip_c, H, W), jnp.float32)

    fwd = jax.jit(lambda a, b: decoder_stage_forward(params, a, b))
    out = jax.block_until_ready(fwd(x_deep, x_skip))

    assert out.shape == (B, out_c, 2 * H, 2 * W), out.shape
    assert bool(jnp.all(jnp.isfinite(out)))
    print("KERNEL_OK")
</pallas_src>

<mosaic_0001>
module attributes {stable_mosaic.version = 11 : i64} {
  func.func @_upsample_kernel(%arg0: i32, %arg1: memref<16x8x16xbf16, #tpu.memory_space<vmem>>, %arg2: memref<16x32xbf16, #tpu.memory_space<vmem>>, %arg3: memref<1x32xf32, #tpu.memory_space<vmem>>, %arg4: memref<1x32xf32, #tpu.memory_space<vmem>>, %arg5: memref<16x2x8x16xbf16, #tpu.memory_space<vmem>>) attributes {dimension_semantics = [#tpu.dimension_semantics<parallel>], iteration_bounds = array<i64: 1>, scalar_prefetch = 0 : i64, scratch_operands = 0 : i64, tpu.core_type = #tpu.core_type<tc>, window_params = [{transform_indices = @transform_0, window_bounds = array<i64: 16, 8, 16>}, {pipeline_mode = #tpu.pipeline_mode<synchronous>, transform_indices = @transform_1, window_bounds = array<i64: 16, 32>}, {pipeline_mode = #tpu.pipeline_mode<synchronous>, transform_indices = @transform_2, window_bounds = array<i64: 1, 32>}, {pipeline_mode = #tpu.pipeline_mode<synchronous>, transform_indices = @transform_3, window_bounds = array<i64: 1, 32>}, {transform_indices = @transform_4, window_bounds = array<i64: 16, 2, 8, 16>}]} {
    %c0 = arith.constant 0 : index
    %c0_0 = arith.constant 0 : index
    %c0_1 = arith.constant 0 : index
    %0 = vector.load %arg1[%c0, %c0_0, %c0_1] : memref<16x8x16xbf16, #tpu.memory_space<vmem>>, vector<16x8x16xbf16>
    %1 = vector.shape_cast %0 : vector<16x8x16xbf16> to vector<128x16xbf16>
    %c0_2 = arith.constant 0 : index
    %c0_3 = arith.constant 0 : index
    %2 = vector.load %arg2[%c0_2, %c0_3] : memref<16x32xbf16, #tpu.memory_space<vmem>>, vector<16x32xbf16>
    %cst = arith.constant dense<0.000000e+00> : vector<128x32xf32>
    %3 = tpu.matmul %1, %2, %cst {dimension_numbers = #tpu.dot_dimension_numbers<[1], [0], [0], [1], [0, 0, 1, 1], [], []>} : vector<128x16xbf16>, vector<16x32xbf16>, vector<128x32xf32> -> vector<128x32xf32>
    %c0_4 = arith.constant 0 : index
    %c0_5 = arith.constant 0 : index
    %4 = vector.load %arg3[%c0_4, %c0_5] : memref<1x32xf32, #tpu.memory_space<vmem>>, vector<1x32xf32>
    %5 = vector.broadcast %4 : vector<1x32xf32> to vector<128x32xf32>
    %6 = arith.mulf %3, %5 : vector<128x32xf32>
    %c0_6 = arith.constant 0 : index
    %c0_7 = arith.constant 0 : index
    %7 = vector.load %arg4[%c0_6, %c0_7] : memref<1x32xf32, #tpu.memory_space<vmem>>, vector<1x32xf32>
    %8 = vector.broadcast %7 : vector<1x32xf32> to vector<128x32xf32>
    %9 = arith.addf %6, %8 : vector<128x32xf32>
    %cst_8 = arith.constant 0.000000e+00 : f32
    %10 = vector.broadcast %cst_8 : f32 to vector<128x32xf32>
    %11 = arith.maximumf %9, %10 : vector<128x32xf32>
    %12 = arith.truncf %11 : vector<128x32xf32> to vector<128x32xbf16>
    %13 = vector.extract_strided_slice %12 {offsets = [0, 0], sizes = [128, 16], strides = [1, 1]} : vector<128x32xbf16> to vector<128x16xbf16>
    %14 = vector.shape_cast %13 : vector<128x16xbf16> to vector<16x8x16xbf16>
    %c0_9 = arith.constant 0 : index
    %c0_10 = arith.constant 0 : index
    %c0_11 = arith.constant 0 : index
    %c0_12 = arith.constant 0 : index
    %15 = vector.load %arg5[%c0_9, %c0_10, %c0_11, %c0_12] : memref<16x2x8x16xbf16, #tpu.memory_space<vmem>>, vector<16x1x8x16xbf16>
    %16 = vector.shape_cast %15 : vector<16x1x8x16xbf16> to vector<16x8x16xbf16>
    %17 = vector.shape_cast %14 : vector<16x8x16xbf16> to vector<16x1x8x16xbf16>
    tpu.vector_store %arg5[%c0_9, %c0_10, %c0_11, %c0_12], %17 {strides = array<i32>} : memref<16x2x8x16xbf16, #tpu.memory_space<vmem>>, vector<16x1x8x16xbf16>,
    %18 = vector.extract_strided_slice %12 {offsets = [0, 16], sizes = [128, 16], strides = [1, 1]} : vector<128x32xbf16> to vector<128x16xbf16>
    %19 = vector.shape_cast %18 : vector<128x16xbf16> to vector<16x8x16xbf16>
    %c0_13 = arith.constant 0 : index
    %c1 = arith.constant 1 : index
    %c0_14 = arith.constant 0 : index
    %c0_15 = arith.constant 0 : index
    %20 = vector.load %arg5[%c0_13, %c1, %c0_14, %c0_15] : memref<16x2x8x16xbf16, #tpu.memory_space<vmem>>, vector<16x1x8x16xbf16>
    %21 = vector.shape_cast %20 : vector<16x1x8x16xbf16> to vector<16x8x16xbf16>
    %22 = vector.shape_cast %19 : vector<16x8x16xbf16> to vector<16x1x8x16xbf16>
    tpu.vector_store %arg5[%c0_13, %c1, %c0_14, %c0_15], %22 {strides = array<i32>} : memref<16x2x8x16xbf16, #tpu.memory_space<vmem>>, vector<16x1x8x16xbf16>,
    return
  }
  func.func @transform_0(%arg0: i32) -> (i32, i32, i32) {
    %c0_i32 = arith.constant 0 : i32
    %c0_i32_0 = arith.constant 0 : i32
    %c0_i32_1 = arith.constant 0 : i32
    return %arg0, %c0_i32, %c0_i32_0 : i32, i32, i32
  }
  func.func @transform_1(%arg0: i32) -> (i32, i32) {
    %c0_i32 = arith.constant 0 : i32
    %c0_i32_0 = arith.constant 0 : i32
    %c0_i32_1 = arith.constant 0 : i32
    return %c0_i32, %c0_i32_0 : i32, i32
  }
  func.func @transform_2(%arg0: i32) -> (i32, i32) {
    %c0_i32 = arith.constant 0 : i32
    %c0_i32_0 = arith.constant 0 : i32
    %c0_i32_1 = arith.constant 0 : i32
    return %c0_i32, %c0_i32_0 : i32, i32
  }
  func.func @transform_3(%arg0: i32) -> (i32, i32) {
    %c0_i32 = arith.constant 0 : i32
    %c0_i32_0 = arith.constant 0 : i32
    %c0_i32_1 = arith.constant 0 : i32
    return %c0_i32, %c0_i32_0 : i32, i32
  }
  func.func @transform_4(%arg0: i32) -> (i32, i32, i32, i32) {
    %c0_i32 = arith.constant 0 : i32
    %c0_i32_0 = arith.constant 0 : i32
    %c0_i32_1 = arith.constant 0 : i32
    %c0_i32_2 = arith.constant 0 : i32
    return %arg0, %c0_i32, %c0_i32_0, %c0_i32_1 : i32, i32, i32, i32
  }
}

module attributes {stable_mosaic.version = 11 : i64} {
  func.func @_csfg_kernel(%arg0: i32, %arg1: i32, %arg2: memref<1x256x8xbf16, #tpu.memory_space<vmem>>, %arg3: memref<1x256x8xbf16, #tpu.memory_space<vmem>>, %arg4: memref<1x1x8xf32, #tpu.memory_space<vmem>>, %arg5: memref<16x1xbf16, #tpu.memory_space<vmem>>, %arg6: memref<1x1xf32, #tpu.memory_space<vmem>>, %arg7: memref<1x1xf32, #tpu.memory_space<vmem>>, %arg8: memref<1x1xf32, #tpu.memory_space<vmem>>, %arg9: memref<8x8xbf16, #tpu.memory_space<vmem>>, %arg10: memref<1x8xf32, #tpu.memory_space<vmem>>, %arg11: memref<1x8xf32, #tpu.memory_space<vmem>>, %arg12: memref<1x256x8xbf16, #tpu.memory_space<vmem>>) attributes {dimension_semantics = [#tpu.dimension_semantics<parallel>, #tpu.dimension_semantics<parallel>], iteration_bounds = array<i64: 2, 1>, scalar_prefetch = 0 : i64, scratch_operands = 0 : i64, tpu.core_type = #tpu.core_type<tc>, window_params = [{transform_indices = @transform_0, window_bounds = array<i64: 1, 256, 8>}, {transform_indices = @transform_1, window_bounds = array<i64: 1, 256, 8>}, {transform_indices = @transform_2, window_bounds = array<i64: 1, 1, 8>}, {pipeline_mode = #tpu.pipeline_mode<synchronous>, transform_indices = @transform_3, window_bounds = array<i64: 16, 1>}, {pipeline_mode = #tpu.pipeline_mode<synchronous>, transform_indices = @transform_4, window_bounds = array<i64: 1, 1>}, {pipeline_mode = #tpu.pipeline_mode<synchronous>, transform_indices = @transform_5, window_bounds = array<i64: 1, 1>}, {pipeline_mode = #tpu.pipeline_mode<synchronous>, transform_indices = @transform_6, window_bounds = array<i64: 1, 1>}, {pipeline_mode = #tpu.pipeline_mode<synchronous>, transform_indices = @transform_7, window_bounds = array<i64: 8, 8>}, {pipeline_mode = #tpu.pipeline_mode<synchronous>, transform_indices = @transform_8, window_bounds = array<i64: 1, 8>}, {pipeline_mode = #tpu.pipeline_mode<synchronous>, transform_indices = @transform_9, window_bounds = array<i64: 1, 8>}, {transform_indices = @transform_10, window_bounds = array<i64: 1, 256, 8>}]} {
    %c0 = arith.constant 0 : index
    %c0_0 = arith.constant 0 : index
    %c0_1 = arith.constant 0 : index
    %0 = vector.load %arg2[%c0, %c0_0, %c0_1] : memref<1x256x8xbf16, #tpu.memory_space<vmem>>, vector<1x256x8xbf16>
    %1 = vector.shape_cast %0 : vector<1x256x8xbf16> to vector<256x8xbf16>
    %c0_2 = arith.constant 0 : index
    %c0_3 = arith.constant 0 : index
    %c0_4 = arith.constant 0 : index
    %2 = vector.load %arg3[%c0_2, %c0_3, %c0_4] : memref<1x256x8xbf16, #tpu.memory_space<vmem>>, vector<1x256x8xbf16>
    %3 = vector.shape_cast %2 : vector<1x256x8xbf16> to vector<256x8xbf16>
    %4 = tpu.concatenate %1, %3 in 1 : vector<256x8xbf16>, vector<256x8xbf16> -> vector<256x16xbf16>
    %c0_5 = arith.constant 0 : index
    %c0_6 = arith.constant 0 : index
    %5 = vector.load %arg5[%c0_5, %c0_6] : memref<16x1xbf16, #tpu.memory_space<vmem>>, vector<16x1xbf16>
    %cst = arith.constant dense<0.000000e+00> : vector<256x1xf32>
    %6 = tpu.matmul %4, %5, %cst {dimension_numbers = #tpu.dot_dimension_numbers<[1], [0], [0], [1], [0, 0, 1, 1], [], []>} : vector<256x16xbf16>, vector<16x1xbf16>, vector<256x1xf32> -> vector<256x1xf32>
    %c0_7 = arith.constant 0 : index
    %c0_8 = arith.constant 0 : index
    %7 = vector.load %arg6[%c0_7, %c0_8] : memref<1x1xf32, #tpu.memory_space<vmem>>, vector<1x1xf32>
    %8 = vector.broadcast %7 : vector<1x1xf32> to vector<256x1xf32>
    %9 = arith.addf %6, %8 : vector<256x1xf32>
    %cst_9 = arith.constant 0.000000e+00 : f32
    %10 = vector.broadcast %cst_9 : f32 to vector<256x1xf32>
    %11 = arith.maximumf %9, %10 : vector<256x1xf32>
    %c0_10 = arith.constant 0 : index
    %c0_11 = arith.constant 0 : index
    %12 = vector.load %arg7[%c0_10, %c0_11] : memref<1x1xf32, #tpu.memory_space<vmem>>, vector<1x1xf32>
    %13 = vector.broadcast %12 : vector<1x1xf32> to vector<256x1xf32>
    %14 = arith.mulf %11, %13 : vector<256x1xf32>
    %cst_12 = arith.constant dense<0.000000e+00> : vector<256xf32>
    %15 = vector.multi_reduction <add>, %14, %cst_12 [1] : vector<256x1xf32> to vector<256xf32>
    %16 = vector.shape_cast %15 : vector<256xf32> to vector<256x1xf32>
    %c0_13 = arith.constant 0 : index
    %c0_14 = arith.constant 0 : index
    %17 = vector.load %arg8[%c0_13, %c0_14] : memref<1x1xf32, #tpu.memory_space<vmem>>, vector<1x1xf32>
    %18 = vector.broadcast %17 : vector<1x1xf32> to vector<256x1xf32>
    %19 = arith.addf %16, %18 : vector<256x1xf32>
    %20 = arith.negf %19 : vector<256x1xf32>
    %21 = math.exp %20 : vector<256x1xf32>
    %cst_15 = arith.constant 1.000000e+00 : f32
    %22 = vector.broadcast %cst_15 : f32 to vector<256x1xf32>
    %23 = arith.addf %22, %21 : vector<256x1xf32>
    %24 = arith.divf %22, %23 : vector<256x1xf32>
    %c0_16 = arith.constant 0 : index
    %c0_17 = arith.constant 0 : index
    %c0_18 = arith.constant 0 : index
    %25 = vector.load %arg4[%c0_16, %c0_17, %c0_18] : memref<1x1x8xf32, #tpu.memory_space<vmem>>, vector<1x1x8xf32>
    %26 = vector.shape_cast %25 : vector<1x1x8xf32> to vector<1x8xf32>
    %27 = vector.broadcast %26 : vector<1x8xf32> to vector<256x8xf32>
    %28 = vector.broadcast %24 : vector<256x1xf32> to vector<256x8xf32>
    %29 = arith.mulf %27, %28 : vector<256x8xf32>
    %cst_19 = arith.constant 1.000000e+00 : f32
    %30 = vector.broadcast %cst_19 : f32 to vector<256x8xf32>
    %31 = arith.addf %29, %30 : vector<256x8xf32>
    %32 = arith.extf %1 : vector<256x8xbf16> to vector<256x8xf32>
    %33 = arith.mulf %32, %31 : vector<256x8xf32>
    %34 = arith.truncf %33 : vector<256x8xf32> to vector<256x8xbf16>
    %c0_20 = arith.constant 0 : index
    %c0_21 = arith.constant 0 : index
    %35 = vector.load %arg9[%c0_20, %c0_21] : memref<8x8xbf16, #tpu.memory_space<vmem>>, vector<8x8xbf16>
    %cst_22 = arith.constant dense<0.000000e+00> : vector<256x8xf32>
    %36 = tpu.matmul %34, %35, %cst_22 {dimension_numbers = #tpu.dot_dimension_numbers<[1], [0], [0], [1], [0, 0, 1, 1], [], []>} : vector<256x8xbf16>, vector<8x8xbf16>, vector<256x8xf32> -> vector<256x8xf32>
    %c0_23 = arith.constant 0 : index
    %c0_24 = arith.constant 0 : index
    %37 = vector.load %arg10[%c0_23, %c0_24] : memref<1x8xf32, #tpu.memory_space<vmem>>, vector<1x8xf32>
    %38 = vector.broadcast %37 : vector<1x8xf32> to vector<256x8xf32>
    %39 = arith.mulf %36, %38 : vector<256x8xf32>
    %c0_25 = arith.constant 0 : index
    %c0_26 = arith.constant 0 : index
    %40 = vector.load %arg11[%c0_25, %c0_26] : memref<1x8xf32, #tpu.memory_space<vmem>>, vector<1x8xf32>
    %41 = vector.broadcast %40 : vector<1x8xf32> to vector<256x8xf32>
    %42 = arith.addf %39, %41 : vector<256x8xf32>
    %cst_27 = arith.constant 0.000000e+00 : f32
    %43 = vector.broadcast %cst_27 : f32 to vector<256x8xf32>
    %44 = arith.maximumf %42, %43 : vector<256x8xf32>
    %45 = arith.truncf %44 : vector<256x8xf32> to vector<256x8xbf16>
    %c0_28 = arith.constant 0 : index
    %c0_29 = arith.constant 0 : index
    %c0_30 = arith.constant 0 : index
    %46 = vector.load %arg12[%c0_28, %c0_29, %c0_30] : memref<1x256x8xbf16, #tpu.memory_space<vmem>>, vector<1x256x8xbf16>
    %47 = vector.shape_cast %46 : vector<1x256x8xbf16> to vector<256x8xbf16>
    %48 = vector.shape_cast %45 : vector<256x8xbf16> to vector<1x256x8xbf16>
    tpu.vector_store %arg12[%c0_28, %c0_29, %c0_30], %48 {strides = array<i32>} : memref<1x256x8xbf16, #tpu.memory_space<vmem>>, vector<1x256x8xbf16>,
    return
  }
  func.func @transform_0(%arg0: i32, %arg1: i32) -> (i32, i32, i32) {
    %c0_i32 = arith.constant 0 : i32
    %c0_i32_0 = arith.constant 0 : i32
    return %arg0, %arg1, %c0_i32 : i32, i32, i32
  }
  func.func @transform_1(%arg0: i32, %arg1: i32) -> (i32, i32, i32) {
    %c0_i32 = arith.constant 0 : i32
    %c0_i32_0 = arith.constant 0 : i32
    return %arg0, %arg1, %c0_i32 : i32, i32, i32
  }
  func.func @transform_2(%arg0: i32, %arg1: i32) -> (i32, i32, i32) {
    %c0_i32 = arith.constant 0 : i32
    %c0_i32_0 = arith.constant 0 : i32
    %c0_i32_1 = arith.constant 0 : i32
    return %arg0, %c0_i32, %c0_i32_0 : i32, i32, i32
  }
  func.func @transform_3(%arg0: i32, %arg1: i32) -> (i32, i32) {
    %c0_i32 = arith.constant 0 : i32
    %c0_i32_0 = arith.constant 0 : i32
    %c0_i32_1 = arith.constant 0 : i32
    return %c0_i32, %c0_i32_0 : i32, i32
  }
  func.func @transform_4(%arg0: i32, %arg1: i32) -> (i32, i32) {
    %c0_i32 = arith.constant 0 : i32
    %c0_i32_0 = arith.constant 0 : i32
    %c0_i32_1 = arith.constant 0 : i32
    return %c0_i32, %c0_i32_0 : i32, i32
  }
  func.func @transform_5(%arg0: i32, %arg1: i32) -> (i32, i32) {
    %c0_i32 = arith.constant 0 : i32
    %c0_i32_0 = arith.constant 0 : i32
    %c0_i32_1 = arith.constant 0 : i32
    return %c0_i32, %c0_i32_0 : i32, i32
  }
  func.func @transform_6(%arg0: i32, %arg1: i32) -> (i32, i32) {
    %c0_i32 = arith.constant 0 : i32
    %c0_i32_0 = arith.constant 0 : i32
    %c0_i32_1 = arith.constant 0 : i32
    return %c0_i32, %c0_i32_0 : i32, i32
  }
  func.func @transform_7(%arg0: i32, %arg1: i32) -> (i32, i32) {
    %c0_i32 = arith.constant 0 : i32
    %c0_i32_0 = arith.constant 0 : i32
    %c0_i32_1 = arith.constant 0 : i32
    return %c0_i32, %c0_i32_0 : i32, i32
  }
  func.func @transform_8(%arg0: i32, %arg1: i32) -> (i32, i32) {
    %c0_i32 = arith.constant 0 : i32
    %c0_i32_0 = arith.constant 0 : i32
    %c0_i32_1 = arith.constant 0 : i32
    return %c0_i32, %c0_i32_0 : i32, i32
  }
  func.func @transform_9(%arg0: i32, %arg1: i32) -> (i32, i32) {
    %c0_i32 = arith.constant 0 : i32
    %c0_i32_0 = arith.constant 0 : i32
    %c0_i32_1 = arith.constant 0 : i32
    return %c0_i32, %c0_i32_0 : i32, i32
  }
  func.func @transform_10(%arg0: i32, %arg1: i32) -> (i32, i32, i32) {
    %c0_i32 = arith.constant 0 : i32
    %c0_i32_0 = arith.constant 0 : i32
    return %arg0, %arg1, %c0_i32 : i32, i32, i32
  }
}

module attributes {stable_mosaic.version = 11 : i64} {
  func.func @_adjust_kernel(%arg0: i32, %arg1: memref<1x16x16x8xbf16, #tpu.memory_space<vmem>>, %arg2: memref<1x16x16x8xbf16, #tpu.memory_space<vmem>>, %arg3: memref<3x48x8xbf16, #tpu.memory_space<vmem>>, %arg4: memref<1x8xf32, #tpu.memory_space<vmem>>, %arg5: memref<1x8xf32, #tpu.memory_space<vmem>>, %arg6: memref<1x16x16x8xbf16, #tpu.memory_space<vmem>>, %arg7: memref<18x16x48xbf16, #tpu.memory_space<vmem>>) attributes {dimension_semantics = [#tpu.dimension_semantics<parallel>], iteration_bounds = array<i64: 2>, scalar_prefetch = 0 : i64, scratch_operands = 1 : i64, tpu.core_type = #tpu.core_type<tc>, window_params = [{transform_indices = @transform_0, window_bounds = array<i64: 1, 16, 16, 8>}, {transform_indices = @transform_1, window_bounds = array<i64: 1, 16, 16, 8>}, {pipeline_mode = #tpu.pipeline_mode<synchronous>, transform_indices = @transform_2, window_bounds = array<i64: 3, 48, 8>}, {pipeline_mode = #tpu.pipeline_mode<synchronous>, transform_indices = @transform_3, window_bounds = array<i64: 1, 8>}, {pipeline_mode = #tpu.pipeline_mode<synchronous>, transform_indices = @transform_4, window_bounds = array<i64: 1, 8>}, {transform_indices = @transform_5, window_bounds = array<i64: 1, 16, 16, 8>}]} {
    %c0 = arith.constant 0 : index
    %c0_0 = arith.constant 0 : index
    %c0_1 = arith.constant 0 : index
    %c0_2 = arith.constant 0 : index
    %0 = vector.load %arg1[%c0, %c0_0, %c0_1, %c0_2] : memref<1x16x16x8xbf16, #tpu.memory_space<vmem>>, vector<1x16x16x8xbf16>
    %1 = vector.shape_cast %0 : vector<1x16x16x8xbf16> to vector<16x16x8xbf16>
    %c0_3 = arith.constant 0 : index
    %c0_4 = arith.constant 0 : index
    %c0_5 = arith.constant 0 : index
    %c0_6 = arith.constant 0 : index
    %2 = vector.load %arg2[%c0_3, %c0_4, %c0_5, %c0_6] : memref<1x16x16x8xbf16, #tpu.memory_space<vmem>>, vector<1x16x16x8xbf16>
    %3 = vector.shape_cast %2 : vector<1x16x16x8xbf16> to vector<16x16x8xbf16>
    %cst = arith.constant 0.000000e+00 : bf16
    %4 = vector.broadcast %cst : bf16 to vector<18x16x48xbf16>
    %c0_7 = arith.constant 0 : index
    %c0_8 = arith.constant 0 : index
    %c0_9 = arith.constant 0 : index
    %5 = vector.load %arg7[%c0_7, %c0_8, %c0_9] : memref<18x16x48xbf16, #tpu.memory_space<vmem>>, vector<18x16x48xbf16>
    tpu.vector_store %arg7[%c0_7, %c0_8, %c0_9], %4 {strides = array<i32>} : memref<18x16x48xbf16, #tpu.memory_space<vmem>>, vector<18x16x48xbf16>,
    %6 = vector.extract_strided_slice %1 {offsets = [0, 0, 0], sizes = [16, 15, 8], strides = [1, 1, 1]} : vector<16x16x8xbf16> to vector<16x15x8xbf16>
    %c1 = arith.constant 1 : index
    %c1_10 = arith.constant 1 : index
    %c0_11 = arith.constant 0 : index
    %7 = vector.load %arg7[%c1, %c1_10, %c0_11] : memref<18x16x48xbf16, #tpu.memory_space<vmem>>, vector<16x15x8xbf16>
    tpu.vector_store %arg7[%c1, %c1_10, %c0_11], %6 {strides = array<i32>} : memref<18x16x48xbf16, #tpu.memory_space<vmem>>, vector<16x15x8xbf16>,
    %c1_12 = arith.constant 1 : index
    %c0_13 = arith.constant 0 : index
    %c8 = arith.constant 8 : index
    %8 = vector.load %arg7[%c1_12, %c0_13, %c8] : memref<18x16x48xbf16, #tpu.memory_space<vmem>>, vector<16x16x8xbf16>
    tpu.vector_store %arg7[%c1_12, %c0_13, %c8], %1 {strides = array<i32>} : memref<18x16x48xbf16, #tpu.memory_space<vmem>>, vector<16x16x8xbf16>,
    %9 = vector.extract_strided_slice %1 {offsets = [0, 1, 0], sizes = [16, 15, 8], strides = [1, 1, 1]} : vector<16x16x8xbf16> to vector<16x15x8xbf16>
    %c1_14 = arith.constant 1 : index
    %c0_15 = arith.constant 0 : index
    %c16 = arith.constant 16 : index
    %10 = vector.load %arg7[%c1_14, %c0_15, %c16] : memref<18x16x48xbf16, #tpu.memory_space<vmem>>, vector<16x15x8xbf16>
    tpu.vector_store %arg7[%c1_14, %c0_15, %c16], %9 {strides = array<i32>} : memref<18x16x48xbf16, #tpu.memory_space<vmem>>, vector<16x15x8xbf16>,
    %11 = vector.extract_strided_slice %3 {offsets = [0, 0, 0], sizes = [16, 15, 8], strides = [1, 1, 1]} : vector<16x16x8xbf16> to vector<16x15x8xbf16>
    %c1_16 = arith.constant 1 : index
    %c1_17 = arith.constant 1 : index
    %c24 = arith.constant 24 : index
    %12 = vector.load %arg7[%c1_16, %c1_17, %c24] : memref<18x16x48xbf16, #tpu.memory_space<vmem>>, vector<16x15x8xbf16>
    tpu.vector_store %arg7[%c1_16, %c1_17, %c24], %11 {strides = array<i32>} : memref<18x16x48xbf16, #tpu.memory_space<vmem>>, vector<16x15x8xbf16>,
    %c1_18 = arith.constant 1 : index
    %c0_19 = arith.constant 0 : index
    %c32 = arith.constant 32 : index
    %13 = vector.load %arg7[%c1_18, %c0_19, %c32] : memref<18x16x48xbf16, #tpu.memory_space<vmem>>, vector<16x16x8xbf16>
    tpu.vector_store %arg7[%c1_18, %c0_19, %c32], %3 {strides = array<i32>} : memref<18x16x48xbf16, #tpu.memory_space<vmem>>, vector<16x16x8xbf16>,
    %14 = vector.extract_strided_slice %3 {offsets = [0, 1, 0], sizes = [16, 15, 8], strides = [1, 1, 1]} : vector<16x16x8xbf16> to vector<16x15x8xbf16>
    %c1_20 = arith.constant 1 : index
    %c0_21 = arith.constant 0 : index
    %c40 = arith.constant 40 : index
    %15 = vector.load %arg7[%c1_20, %c0_21, %c40] : memref<18x16x48xbf16, #tpu.memory_space<vmem>>, vector<16x15x8xbf16>
    tpu.vector_store %arg7[%c1_20, %c0_21, %c40], %14 {strides = array<i32>} : memref<18x16x48xbf16, #tpu.memory_space<vmem>>, vector<16x15x8xbf16>,
    %c0_22 = arith.constant 0 : index
    %c0_23 = arith.constant 0 : index
    %c0_24 = arith.constant 0 : index
    %16 = vector.load %arg7[%c0_22, %c0_23, %c0_24] : memref<18x16x48xbf16, #tpu.memory_space<vmem>>, vector<16x16x48xbf16>
    %17 = vector.shape_cast %16 : vector<16x16x48xbf16> to vector<256x48xbf16>
    %c0_25 = arith.constant 0 : index
    %c0_26 = arith.constant 0 : index
    %c0_27 = arith.constant 0 : index
    %18 = vector.load %arg3[%c0_25, %c0_26, %c0_27] : memref<3x48x8xbf16, #tpu.memory_space<vmem>>, vector<1x48x8xbf16>
    %19 = vector.shape_cast %18 : vector<1x48x8xbf16> to vector<48x8xbf16>
    %cst_28 = arith.constant dense<0.000000e+00> : vector<256x8xf32>
    %20 = tpu.matmul %17, %19, %cst_28 {dimension_numbers = #tpu.dot_dimension_numbers<[1], [0], [0], [1], [0, 0, 1, 1], [], []>} : vector<256x48xbf16>, vector<48x8xbf16>, vector<256x8xf32> -> vector<256x8xf32>
    %c1_29 = arith.constant 1 : index
    %c0_30 = arith.constant 0 : index
    %c0_31 = arith.constant 0 : index
    %21 = vector.load %arg7[%c1_29, %c0_30, %c0_31] : memref<18x16x48xbf16, #tpu.memory_space<vmem>>, vector<16x16x48xbf16>
    %22 = vector.shape_cast %21 : vector<16x16x48xbf16> to vector<256x48xbf16>
    %c1_32 = arith.constant 1 : index
    %c0_33 = arith.constant 0 : index
    %c0_34 = arith.constant 0 : index
    %23 = vector.load %arg3[%c1_32, %c0_33, %c0_34] : memref<3x48x8xbf16, #tpu.memory_space<vmem>>, vector<1x48x8xbf16>
    %24 = vector.shape_cast %23 : vector<1x48x8xbf16> to vector<48x8xbf16>
    %cst_35 = arith.constant dense<0.000000e+00> : vector<256x8xf32>
    %25 = tpu.matmul %22, %24, %cst_35 {dimension_numbers = #tpu.dot_dimension_numbers<[1], [0], [0], [1], [0, 0, 1, 1], [], []>} : vector<256x48xbf16>, vector<48x8xbf16>, vector<256x8xf32> -> vector<256x8xf32>
    %26 = arith.addf %20, %25 : vector<256x8xf32>
    %c2 = arith.constant 2 : index
    %c0_36 = arith.constant 0 : index
    %c0_37 = arith.constant 0 : index
    %27 = vector.load %arg7[%c2, %c0_36, %c0_37] : memref<18x16x48xbf16, #tpu.memory_space<vmem>>, vector<16x16x48xbf16>
    %28 = vector.shape_cast %27 : vector<16x16x48xbf16> to vector<256x48xbf16>
    %c2_38 = arith.constant 2 : index
    %c0_39 = arith.constant 0 : index
    %c0_40 = arith.constant 0 : index
    %29 = vector.load %arg3[%c2_38, %c0_39, %c0_40] : memref<3x48x8xbf16, #tpu.memory_space<vmem>>, vector<1x48x8xbf16>
    %30 = vector.shape_cast %29 : vector<1x48x8xbf16> to vector<48x8xbf16>
    %cst_41 = arith.constant dense<0.000000e+00> : vector<256x8xf32>
    %31 = tpu.matmul %28, %30, %cst_41 {dimension_numbers = #tpu.dot_dimension_numbers<[1], [0], [0], [1], [0, 0, 1, 1], [], []>} : vector<256x48xbf16>, vector<48x8xbf16>, vector<256x8xf32> -> vector<256x8xf32>
    %32 = arith.addf %26, %31 : vector<256x8xf32>
    %c0_42 = arith.constant 0 : index
    %c0_43 = arith.constant 0 : index
    %33 = vector.load %arg4[%c0_42, %c0_43] : memref<1x8xf32, #tpu.memory_space<vmem>>, vector<1x8xf32>
    %34 = vector.broadcast %33 : vector<1x8xf32> to vector<256x8xf32>
    %35 = arith.mulf %32, %34 : vector<256x8xf32>
    %c0_44 = arith.constant 0 : index
    %c0_45 = arith.constant 0 : index
    %36 = vector.load %arg5[%c0_44, %c0_45] : memref<1x8xf32, #tpu.memory_space<vmem>>, vector<1x8xf32>
    %37 = vector.broadcast %36 : vector<1x8xf32> to vector<256x8xf32>
    %38 = arith.addf %35, %37 : vector<256x8xf32>
    %cst_46 = arith.constant 0.000000e+00 : f32
    %39 = vector.broadcast %cst_46 : f32 to vector<256x8xf32>
    %40 = arith.maximumf %38, %39 : vector<256x8xf32>
    %41 = arith.truncf %40 : vector<256x8xf32> to vector<256x8xbf16>
    %42 = vector.shape_cast %41 : vector<256x8xbf16> to vector<16x16x8xbf16>
    %c0_47 = arith.constant 0 : index
    %c0_48 = arith.constant 0 : index
    %c0_49 = arith.constant 0 : index
    %c0_50 = arith.constant 0 : index
    %43 = vector.load %arg6[%c0_47, %c0_48, %c0_49, %c0_50] : memref<1x16x16x8xbf16, #tpu.memory_space<vmem>>, vector<1x16x16x8xbf16>
    %44 = vector.shape_cast %43 : vector<1x16x16x8xbf16> to vector<16x16x8xbf16>
    %45 = vector.shape_cast %42 : vector<16x16x8xbf16> to vector<1x16x16x8xbf16>
    tpu.vector_store %arg6[%c0_47, %c0_48, %c0_49, %c0_50], %45 {strides = array<i32>} : memref<1x16x16x8xbf16, #tpu.memory_space<vmem>>, vector<1x16x16x8xbf16>,
    return
  }
  func.func @transform_0(%arg0: i32) -> (i32, i32, i32, i32) {
    %c0_i32 = arith.constant 0 : i32
    %c0_i32_0 = arith.constant 0 : i32
    %c0_i32_1 = arith.constant 0 : i32
    %c0_i32_2 = arith.constant 0 : i32
    return %arg0, %c0_i32, %c0_i32_0, %c0_i32_1 : i32, i32, i32, i32
  }
  func.func @transform_1(%arg0: i32) -> (i32, i32, i32, i32) {
    %c0_i32 = arith.constant 0 : i32
    %c0_i32_0 = arith.constant 0 : i32
    %c0_i32_1 = arith.constant 0 : i32
    %c0_i32_2 = arith.constant 0 : i32
    return %arg0, %c0_i32, %c0_i32_0, %c0_i32_1 : i32, i32, i32, i32
  }
  func.func @transform_2(%arg0: i32) -> (i32, i32, i32) {
    %c0_i32 = arith.constant 0 : i32
    %c0_i32_0 = arith.constant 0 : i32
    %c0_i32_1 = arith.constant 0 : i32
    %c0_i32_2 = arith.constant 0 : i32
    return %c0_i32, %c0_i32_0, %c0_i32_1 : i32, i32, i32
  }
  func.func @transform_3(%arg0: i32) -> (i32, i32) {
    %c0_i32 = arith.constant 0 : i32
    %c0_i32_0 = arith.constant 0 : i32
    %c0_i32_1 = arith.constant 0 : i32
    return %c0_i32, %c0_i32_0 : i32, i32
  }
  func.func @transform_4(%arg0: i32) -> (i32, i32) {
    %c0_i32 = arith.constant 0 : i32
    %c0_i32_0 = arith.constant 0 : i32
    %c0_i32_1 = arith.constant 0 : i32
    return %c0_i32, %c0_i32_0 : i32, i32
  }
  func.func @transform_5(%arg0: i32) -> (i32, i32, i32, i32) {
    %c0_i32 = arith.constant 0 : i32
    %c0_i32_0 = arith.constant 0 : i32
    %c0_i32_1 = arith.constant 0 : i32
    %c0_i32_2 = arith.constant 0 : i32
    return %arg0, %c0_i32, %c0_i32_0, %c0_i32_1 : i32, i32, i32, i32
  }
}

module attributes {stable_mosaic.version = 11 : i64} {
  func.func @_resblock_kernel(%arg0: i32, %arg1: memref<1x16x16x8xbf16, #tpu.memory_space<vmem>>, %arg2: memref<3x24x8xbf16, #tpu.memory_space<vmem>>, %arg3: memref<1x8xf32, #tpu.memory_space<vmem>>, %arg4: memref<1x8xf32, #tpu.memory_space<vmem>>, %arg5: memref<3x24x8xbf16, #tpu.memory_space<vmem>>, %arg6: memref<1x8xf32, #tpu.memory_space<vmem>>, %arg7: memref<1x8xf32, #tpu.memory_space<vmem>>, %arg8: memref<1x16x16x8xbf16, #tpu.memory_space<vmem>>, %arg9: memref<18x16x24xbf16, #tpu.memory_space<vmem>>) attributes {dimension_semantics = [#tpu.dimension_semantics<parallel>], iteration_bounds = array<i64: 2>, scalar_prefetch = 0 : i64, scratch_operands = 1 : i64, tpu.core_type = #tpu.core_type<tc>, window_params = [{transform_indices = @transform_0, window_bounds = array<i64: 1, 16, 16, 8>}, {pipeline_mode = #tpu.pipeline_mode<synchronous>, transform_indices = @transform_1, window_bounds = array<i64: 3, 24, 8>}, {pipeline_mode = #tpu.pipeline_mode<synchronous>, transform_indices = @transform_2, window_bounds = array<i64: 1, 8>}, {pipeline_mode = #tpu.pipeline_mode<synchronous>, transform_indices = @transform_3, window_bounds = array<i64: 1, 8>}, {pipeline_mode = #tpu.pipeline_mode<synchronous>, transform_indices = @transform_4, window_bounds = array<i64: 3, 24, 8>}, {pipeline_mode = #tpu.pipeline_mode<synchronous>, transform_indices = @transform_5, window_bounds = array<i64: 1, 8>}, {pipeline_mode = #tpu.pipeline_mode<synchronous>, transform_indices = @transform_6, window_bounds = array<i64: 1, 8>}, {transform_indices = @transform_7, window_bounds = array<i64: 1, 16, 16, 8>}]} {
    %c0 = arith.constant 0 : index
    %c0_0 = arith.constant 0 : index
    %c0_1 = arith.constant 0 : index
    %c0_2 = arith.constant 0 : index
    %0 = vector.load %arg1[%c0, %c0_0, %c0_1, %c0_2] : memref<1x16x16x8xbf16, #tpu.memory_space<vmem>>, vector<1x16x16x8xbf16>
    %1 = vector.shape_cast %0 : vector<1x16x16x8xbf16> to vector<16x16x8xbf16>
    %cst = arith.constant 0.000000e+00 : bf16
    %2 = vector.broadcast %cst : bf16 to vector<18x16x24xbf16>
    %c0_3 = arith.constant 0 : index
    %c0_4 = arith.constant 0 : index
    %c0_5 = arith.constant 0 : index
    %3 = vector.load %arg9[%c0_3, %c0_4, %c0_5] : memref<18x16x24xbf16, #tpu.memory_space<vmem>>, vector<18x16x24xbf16>
    tpu.vector_store %arg9[%c0_3, %c0_4, %c0_5], %2 {strides = array<i32>} : memref<18x16x24xbf16, #tpu.memory_space<vmem>>, vector<18x16x24xbf16>,
    %4 = vector.extract_strided_slice %1 {offsets = [0, 0, 0], sizes = [16, 15, 8], strides = [1, 1, 1]} : vector<16x16x8xbf16> to vector<16x15x8xbf16>
    %c1 = arith.constant 1 : index
    %c1_6 = arith.constant 1 : index
    %c0_7 = arith.constant 0 : index
    %5 = vector.load %arg9[%c1, %c1_6, %c0_7] : memref<18x16x24xbf16, #tpu.memory_space<vmem>>, vector<16x15x8xbf16>
    tpu.vector_store %arg9[%c1, %c1_6, %c0_7], %4 {strides = array<i32>} : memref<18x16x24xbf16, #tpu.memory_space<vmem>>, vector<16x15x8xbf16>,
    %c1_8 = arith.constant 1 : index
    %c0_9 = arith.constant 0 : index
    %c8 = arith.constant 8 : index
    %6 = vector.load %arg9[%c1_8, %c0_9, %c8] : memref<18x16x24xbf16, #tpu.memory_space<vmem>>, vector<16x16x8xbf16>
    tpu.vector_store %arg9[%c1_8, %c0_9, %c8], %1 {strides = array<i32>} : memref<18x16x24xbf16, #tpu.memory_space<vmem>>, vector<16x16x8xbf16>,
    %7 = vector.extract_strided_slice %1 {offsets = [0, 1, 0], sizes = [16, 15, 8], strides = [1, 1, 1]} : vector<16x16x8xbf16> to vector<16x15x8xbf16>
    %c1_10 = arith.constant 1 : index
    %c0_11 = arith.constant 0 : index
    %c16 = arith.constant 16 : index
    %8 = vector.load %arg9[%c1_10, %c0_11, %c16] : memref<18x16x24xbf16, #tpu.memory_space<vmem>>, vector<16x15x8xbf16>
    tpu.vector_store %arg9[%c1_10, %c0_11, %c16], %7 {strides = array<i32>} : memref<18x16x24xbf16, #tpu.memory_space<vmem>>, vector<16x15x8xbf16>,
    %c0_12 = arith.constant 0 : index
    %c0_13 = arith.constant 0 : index
    %c0_14 = arith.constant 0 : index
    %9 = vector.load %arg9[%c0_12, %c0_13, %c0_14] : memref<18x16x24xbf16, #tpu.memory_space<vmem>>, vector<16x16x24xbf16>
    %10 = vector.shape_cast %9 : vector<16x16x24xbf16> to vector<256x24xbf16>
    %c0_15 = arith.constant 0 : index
    %c0_16 = arith.constant 0 : index
    %c0_17 = arith.constant 0 : index
    %11 = vector.load %arg2[%c0_15, %c0_16, %c0_17] : memref<3x24x8xbf16, #tpu.memory_space<vmem>>, vector<1x24x8xbf16>
    %12 = vector.shape_cast %11 : vector<1x24x8xbf16> to vector<24x8xbf16>
    %cst_18 = arith.constant dense<0.000000e+00> : vector<256x8xf32>
    %13 = tpu.matmul %10, %12, %cst_18 {dimension_numbers = #tpu.dot_dimension_numbers<[1], [0], [0], [1], [0, 0, 1, 1], [], []>} : vector<256x24xbf16>, vector<24x8xbf16>, vector<256x8xf32> -> vector<256x8xf32>
    %c1_19 = arith.constant 1 : index
    %c0_20 = arith.constant 0 : index
    %c0_21 = arith.constant 0 : index
    %14 = vector.load %arg9[%c1_19, %c0_20, %c0_21] : memref<18x16x24xbf16, #tpu.memory_space<vmem>>, vector<16x16x24xbf16>
    %15 = vector.shape_cast %14 : vector<16x16x24xbf16> to vector<256x24xbf16>
    %c1_22 = arith.constant 1 : index
    %c0_23 = arith.constant 0 : index
    %c0_24 = arith.constant 0 : index
    %16 = vector.load %arg2[%c1_22, %c0_23, %c0_24] : memref<3x24x8xbf16, #tpu.memory_space<vmem>>, vector<1x24x8xbf16>
    %17 = vector.shape_cast %16 : vector<1x24x8xbf16> to vector<24x8xbf16>
    %cst_25 = arith.constant dense<0.000000e+00> : vector<256x8xf32>
    %18 = tpu.matmul %15, %17, %cst_25 {dimension_numbers = #tpu.dot_dimension_numbers<[1], [0], [0], [1], [0, 0, 1, 1], [], []>} : vector<256x24xbf16>, vector<24x8xbf16>, vector<256x8xf32> -> vector<256x8xf32>
    %19 = arith.addf %13, %18 : vector<256x8xf32>
    %c2 = arith.constant 2 : index
    %c0_26 = arith.constant 0 : index
    %c0_27 = arith.constant 0 : index
    %20 = vector.load %arg9[%c2, %c0_26, %c0_27] : memref<18x16x24xbf16, #tpu.memory_space<vmem>>, vector<16x16x24xbf16>
    %21 = vector.shape_cast %20 : vector<16x16x24xbf16> to vector<256x24xbf16>
    %c2_28 = arith.constant 2 : index
    %c0_29 = arith.constant 0 : index
    %c0_30 = arith.constant 0 : index
    %22 = vector.load %arg2[%c2_28, %c0_29, %c0_30] : memref<3x24x8xbf16, #tpu.memory_space<vmem>>, vector<1x24x8xbf16>
    %23 = vector.shape_cast %22 : vector<1x24x8xbf16> to vector<24x8xbf16>
    %cst_31 = arith.constant dense<0.000000e+00> : vector<256x8xf32>
    %24 = tpu.matmul %21, %23, %cst_31 {dimension_numbers = #tpu.dot_dimension_numbers<[1], [0], [0], [1], [0, 0, 1, 1], [], []>} : vector<256x24xbf16>, vector<24x8xbf16>, vector<256x8xf32> -> vector<256x8xf32>
    %25 = arith.addf %19, %24 : vector<256x8xf32>
    %c0_32 = arith.constant 0 : index
    %c0_33 = arith.constant 0 : index
    %26 = vector.load %arg3[%c0_32, %c0_33] : memref<1x8xf32, #tpu.memory_space<vmem>>, vector<1x8xf32>
    %27 = vector.broadcast %26 : vector<1x8xf32> to vector<256x8xf32>
    %28 = arith.mulf %25, %27 : vector<256x8xf32>
    %c0_34 = arith.constant 0 : index
    %c0_35 = arith.constant 0 : index
    %29 = vector.load %arg4[%c0_34, %c0_35] : memref<1x8xf32, #tpu.memory_space<vmem>>, vector<1x8xf32>
    %30 = vector.broadcast %29 : vector<1x8xf32> to vector<256x8xf32>
    %31 = arith.addf %28, %30 : vector<256x8xf32>
    %cst_36 = arith.constant 0.000000e+00 : f32
    %32 = vector.broadcast %cst_36 : f32 to vector<256x8xf32>
    %33 = arith.maximumf %31, %32 : vector<256x8xf32>
    %34 = arith.truncf %33 : vector<256x8xf32> to vector<256x8xbf16>
    %35 = vector.shape_cast %34 : vector<256x8xbf16> to vector<16x16x8xbf16>
    %cst_37 = arith.constant 0.000000e+00 : bf16
    %36 = vector.broadcast %cst_37 : bf16 to vector<18x16x24xbf16>
    %c0_38 = arith.constant 0 : index
    %c0_39 = arith.constant 0 : index
    %c0_40 = arith.constant 0 : index
    %37 = vector.load %arg9[%c0_38, %c0_39, %c0_40] : memref<18x16x24xbf16, #tpu.memory_space<vmem>>, vector<18x16x24xbf16>
    tpu.vector_store %arg9[%c0_38, %c0_39, %c0_40], %36 {strides = array<i32>} : memref<18x16x24xbf16, #tpu.memory_space<vmem>>, vector<18x16x24xbf16>,
    %38 = vector.extract_strided_slice %35 {offsets = [0, 0, 0], sizes = [16, 15, 8], strides = [1, 1, 1]} : vector<16x16x8xbf16> to vector<16x15x8xbf16>
    %c1_41 = arith.constant 1 : index
    %c1_42 = arith.constant 1 : index
    %c0_43 = arith.constant 0 : index
    %39 = vector.load %arg9[%c1_41, %c1_42, %c0_43] : memref<18x16x24xbf16, #tpu.memory_space<vmem>>, vector<16x15x8xbf16>
    tpu.vector_store %arg9[%c1_41, %c1_42, %c0_43], %38 {strides = array<i32>} : memref<18x16x24xbf16, #tpu.memory_space<vmem>>, vector<16x15x8xbf16>,
    %c1_44 = arith.constant 1 : index
    %c0_45 = arith.constant 0 : index
    %c8_46 = arith.constant 8 : index
    %40 = vector.load %arg9[%c1_44, %c0_45, %c8_46] : memref<18x16x24xbf16, #tpu.memory_space<vmem>>, vector<16x16x8xbf16>
    tpu.vector_store %arg9[%c1_44, %c0_45, %c8_46], %35 {strides = array<i32>} : memref<18x16x24xbf16, #tpu.memory_space<vmem>>, vector<16x16x8xbf16>,
    %41 = vector.extract_strided_slice %35 {offsets = [0, 1, 0], sizes = [16, 15, 8], strides = [1, 1, 1]} : vector<16x16x8xbf16> to vector<16x15x8xbf16>
    %c1_47 = arith.constant 1 : index
    %c0_48 = arith.constant 0 : index
    %c16_49 = arith.constant 16 : index
    %42 = vector.load %arg9[%c1_47, %c0_48, %c16_49] : memref<18x16x24xbf16, #tpu.memory_space<vmem>>, vector<16x15x8xbf16>
    tpu.vector_store %arg9[%c1_47, %c0_48, %c16_49], %41 {strides = array<i32>} : memref<18x16x24xbf16, #tpu.memory_space<vmem>>, vector<16x15x8xbf16>,
    %c0_50 = arith.constant 0 : index
    %c0_51 = arith.constant 0 : index
    %c0_52 = arith.constant 0 : index
    %43 = vector.load %arg9[%c0_50, %c0_51, %c0_52] : memref<18x16x24xbf16, #tpu.memory_space<vmem>>, vector<16x16x24xbf16>
    %44 = vector.shape_cast %43 : vector<16x16x24xbf16> to vector<256x24xbf16>
    %c0_53 = arith.constant 0 : index
    %c0_54 = arith.constant 0 : index
    %c0_55 = arith.constant 0 : index
    %45 = vector.load %arg5[%c0_53, %c0_54, %c0_55] : memref<3x24x8xbf16, #tpu.memory_space<vmem>>, vector<1x24x8xbf16>
    %46 = vector.shape_cast %45 : vector<1x24x8xbf16> to vector<24x8xbf16>
    %cst_56 = arith.constant dense<0.000000e+00> : vector<256x8xf32>
    %47 = tpu.matmul %44, %46, %cst_56 {dimension_numbers = #tpu.dot_dimension_numbers<[1], [0], [0], [1], [0, 0, 1, 1], [], []>} : vector<256x24xbf16>, vector<24x8xbf16>, vector<256x8xf32> -> vector<256x8xf32>
    %c1_57 = arith.constant 1 : index
    %c0_58 = arith.constant 0 : index
    %c0_59 = arith.constant 0 : index
    %48 = vector.load %arg9[%c1_57, %c0_58, %c0_59] : memref<18x16x24xbf16, #tpu.memory_space<vmem>>, vector<16x16x24xbf16>
    %49 = vector.shape_cast %48 : vector<16x16x24xbf16> to vector<256x24xbf16>
    %c1_60 = arith.constant 1 : index
    %c0_61 = arith.constant 0 : index
    %c0_62 = arith.constant 0 : index
    %50 = vector.load %arg5[%c1_60, %c0_61, %c0_62] : memref<3x24x8xbf16, #tpu.memory_space<vmem>>, vector<1x24x8xbf16>
    %51 = vector.shape_cast %50 : vector<1x24x8xbf16> to vector<24x8xbf16>
    %cst_63 = arith.constant dense<0.000000e+00> : vector<256x8xf32>
    %52 = tpu.matmul %49, %51, %cst_63 {dimension_numbers = #tpu.dot_dimension_numbers<[1], [0], [0], [1], [0, 0, 1, 1], [], []>} : vector<256x24xbf16>, vector<24x8xbf16>, vector<256x8xf32> -> vector<256x8xf32>
    %53 = arith.addf %47, %52 : vector<256x8xf32>
    %c2_64 = arith.constant 2 : index
    %c0_65 = arith.constant 0 : index
    %c0_66 = arith.constant 0 : index
    %54 = vector.load %arg9[%c2_64, %c0_65, %c0_66] : memref<18x16x24xbf16, #tpu.memory_space<vmem>>, vector<16x16x24xbf16>
    %55 = vector.shape_cast %54 : vector<16x16x24xbf16> to vector<256x24xbf16>
    %c2_67 = arith.constant 2 : index
    %c0_68 = arith.constant 0 : index
    %c0_69 = arith.constant 0 : index
    %56 = vector.load %arg5[%c2_67, %c0_68, %c0_69] : memref<3x24x8xbf16, #tpu.memory_space<vmem>>, vector<1x24x8xbf16>
    %57 = vector.shape_cast %56 : vector<1x24x8xbf16> to vector<24x8xbf16>
    %cst_70 = arith.constant dense<0.000000e+00> : vector<256x8xf32>
    %58 = tpu.matmul %55, %57, %cst_70 {dimension_numbers = #tpu.dot_dimension_numbers<[1], [0], [0], [1], [0, 0, 1, 1], [], []>} : vector<256x24xbf16>, vector<24x8xbf16>, vector<256x8xf32> -> vector<256x8xf32>
    %59 = arith.addf %53, %58 : vector<256x8xf32>
    %c0_71 = arith.constant 0 : index
    %c0_72 = arith.constant 0 : index
    %60 = vector.load %arg6[%c0_71, %c0_72] : memref<1x8xf32, #tpu.memory_space<vmem>>, vector<1x8xf32>
    %61 = vector.broadcast %60 : vector<1x8xf32> to vector<256x8xf32>
    %62 = arith.mulf %59, %61 : vector<256x8xf32>
    %c0_73 = arith.constant 0 : index
    %c0_74 = arith.constant 0 : index
    %63 = vector.load %arg7[%c0_73, %c0_74] : memref<1x8xf32, #tpu.memory_space<vmem>>, vector<1x8xf32>
    %64 = vector.broadcast %63 : vector<1x8xf32> to vector<256x8xf32>
    %65 = arith.addf %62, %64 : vector<256x8xf32>
    %66 = vector.shape_cast %1 : vector<16x16x8xbf16> to vector<256x8xbf16>
    %67 = arith.extf %66 : vector<256x8xbf16> to vector<256x8xf32>
    %68 = arith.addf %65, %67 : vector<256x8xf32>
    %cst_75 = arith.constant 0.000000e+00 : f32
    %69 = vector.broadcast %cst_75 : f32 to vector<256x8xf32>
    %70 = arith.maximumf %68, %69 : vector<256x8xf32>
    %71 = arith.truncf %70 : vector<256x8xf32> to vector<256x8xbf16>
    %72 = vector.shape_cast %71 : vector<256x8xbf16> to vector<16x16x8xbf16>
    %c0_76 = arith.constant 0 : index
    %c0_77 = arith.constant 0 : index
    %c0_78 = arith.constant 0 : index
    %c0_79 = arith.constant 0 : index
    %73 = vector.load %arg8[%c0_76, %c0_77, %c0_78, %c0_79] : memref<1x16x16x8xbf16, #tpu.memory_space<vmem>>, vector<1x16x16x8xbf16>
    %74 = vector.shape_cast %73 : vector<1x16x16x8xbf16> to vector<16x16x8xbf16>
    %75 = vector.shape_cast %72 : vector<16x16x8xbf16> to vector<1x16x16x8xbf16>
    tpu.vector_store %arg8[%c0_76, %c0_77, %c0_78, %c0_79], %75 {strides = array<i32>} : memref<1x16x16x8xbf16, #tpu.memory_space<vmem>>, vector<1x16x16x8xbf16>,
    return
  }
  func.func @transform_0(%arg0: i32) -> (i32, i32, i32, i32) {
    %c0_i32 = arith.constant 0 : i32
    %c0_i32_0 = arith.constant 0 : i32
    %c0_i32_1 = arith.constant 0 : i32
    %c0_i32_2 = arith.constant 0 : i32
    return %arg0, %c0_i32, %c0_i32_0, %c0_i32_1 : i32, i32, i32, i32
  }
  func.func @transform_1(%arg0: i32) -> (i32, i32, i32) {
    %c0_i32 = arith.constant 0 : i32
    %c0_i32_0 = arith.constant 0 : i32
    %c0_i32_1 = arith.constant 0 : i32
    %c0_i32_2 = arith.constant 0 : i32
    return %c0_i32, %c0_i32_0, %c0_i32_1 : i32, i32, i32
  }
  func.func @transform_2(%arg0: i32) -> (i32, i32) {
    %c0_i32 = arith.constant 0 : i32
    %c0_i32_0 = arith.constant 0 : i32
    %c0_i32_1 = arith.constant 0 : i32
    return %c0_i32, %c0_i32_0 : i32, i32
  }
  func.func @transform_3(%arg0: i32) -> (i32, i32) {
    %c0_i32 = arith.constant 0 : i32
    %c0_i32_0 = arith.constant 0 : i32
    %c0_i32_1 = arith.constant 0 : i32
    return %c0_i32, %c0_i32_0 : i32, i32
  }
  func.func @transform_4(%arg0: i32) -> (i32, i32, i32) {
    %c0_i32 = arith.constant 0 : i32
    %c0_i32_0 = arith.constant 0 : i32
    %c0_i32_1 = arith.constant 0 : i32
    %c0_i32_2 = arith.constant 0 : i32
    return %c0_i32, %c0_i32_0, %c0_i32_1 : i32, i32, i32
  }
  func.func @transform_5(%arg0: i32) -> (i32, i32) {
    %c0_i32 = arith.constant 0 : i32
    %c0_i32_0 = arith.constant 0 : i32
    %c0_i32_1 = arith.constant 0 : i32
    return %c0_i32, %c0_i32_0 : i32, i32
  }
  func.func @transform_6(%arg0: i32) -> (i32, i32) {
    %c0_i32 = arith.constant 0 : i32
    %c0_i32_0 = arith.constant 0 : i32
    %c0_i32_1 = arith.constant 0 : i32
    return %c0_i32, %c0_i32_0 : i32, i32
  }
  func.func @transform_7(%arg0: i32) -> (i32, i32, i32, i32) {
    %c0_i32 = arith.constant 0 : i32
    %c0_i32_0 = arith.constant 0 : i32
    %c0_i32_1 = arith.constant 0 : i32
    %c0_i32_2 = arith.constant 0 : i32
    return %arg0, %c0_i32, %c0_i32_0, %c0_i32_1 : i32, i32, i32, i32
  }
}

</mosaic_0001>

<bundles_post_ra>
// kernel: _lambda_.5
= control target key start
LH: loop header
LB: loop body
LE: loop exit
PB: predicated region body
PF: predicated region fallthrough
CT: control target
= control target key end

     0   :  { %vm82_vm0 = vcmask 130048   ;;  %vm330_vm1 = vcmask 125952   ;;  %s769_s1 = inlined_call_operand.vmem [shape: bf16[16,32], index: 1, kind: input, shape index: {}]   ;;  %s770_s0 = inlined_call_operand.vmem [shape: bf16[16,8,16], index: 0, kind: input, shape index: {}]   ;;  %s771_s2 = inlined_call_operand.vmem [shape: f32[1,32], index: 2, kind: input, shape index: {}]   ;;  %s772_s3 = inlined_call_operand.vmem [shape: f32[1,32], index: 3, kind: input, shape index: {}]   ;;  %s773_s4 = inlined_call_operand.vmem [shape: bf16[16,2,8,16], index: 4, kind: output, shape index: {}]  }
   0x1   :  { %v513_v0 = vld [vmem:[%s769_s1] sm:$0xff]   ;;  %v516_v3 = vld [vmem:[%s770_s0 + $0x8] sm:$0xff]   ;;  %v518_v5 = vld [vmem:[%s770_s0 + $0x10] sm:$0xff]  }
   0x2   :  { %v514_v1 = vld [vmem:[%s770_s0] sm:$0xff]   ;;  %492 = vmatprep.subr.bf16.mxu0 %v513_v0  ;;  %510 = vmatprep.subr.bf16.mxu1 %v513_v0  ;;  %v517_v4 = vld [vmem:[%s770_s0 + $0x28] sm:$0xff]   ;;  %v520_v6 = vld [vmem:[%s770_s0 + $0x30] sm:$0xff]  }
   0x3   :  { %v515_v2 = vld [vmem:[%s770_s0 + $0x20] sm:$0xff]   ;;  %493 = vmatpush3.bf16.msra.mxu0 %v513_v0  ;;  %511 = vmatpush3.bf16.msra.mxu1 %v513_v0  ;;  %v519_v7 = vld [vmem:[%s770_s0 + $0x18] sm:$0xff]  }
   0x4   :  { %494 = vmatprep.mubr.msk.bf16.mxu0 %vm82_vm0, %v514_v1  ;;  %502 = vmatprep.mubr.msk.bf16.mxu1 %vm82_vm0, %v515_v2  ;;  %v521_v8 = vld [vmem:[%s770_s0 + $0x38] sm:$0xff]   ;;  %v586_v9 = vld [vmem:[%s771_s2] ss:$0 sm:$0xff]  ;;  %s522_s0 = smov 112  }
   0x5   :  { %v591_v12 = vld [vmem:[%s772_s3] ss:$0 sm:$0xff] }
   0x6   :  { %495 = vmatmul.mubr.msk.bf16.vlgmr.msra.gmra.mrb[0].mxu0 %vm82_vm0, %v516_v3  ;;  %503 = vmatmul.mubr.msk.bf16.vlgmr.msra.gmra.mrb[0].mxu1 %vm82_vm0, %v517_v4 }
   0x7   :  { %498 = vmatprep.mubr.msk.bf16.mxu0 %vm82_vm0, %v518_v5  ;;  %506 = vmatprep.mubr.msk.bf16.mxu1 %vm82_vm0, %v520_v6 }
   0xe   :  { %499 = vmatmul.mubr.msk.bf16.gmra.mrb[4].mxu0 %vm82_vm0, %v519_v7  ;;  %507 = vmatmul.mubr.msk.bf16.gmra.mrb[4].mxu1 %vm82_vm0, %v521_v8 }
  0xd9   :  { %v496_v10 = vpop.f32.mrb[0].mxu0  ;;  %v504_v11 = vpop.f32.mrb[0].mxu1 }
  0xda   :  { %v213_v13 = vmul.f32 %v496_v10, %v586_v9  ;;  %v221_v14 = vmul.f32 %v504_v11, %v586_v9  ;;  %v141_v15 = vpop.f32.mrb[1].mxu0  ;;  %v173_v16 = vpop.f32.mrb[1].mxu1 }
  0xdb   :  { %v211_v17 = vmul.f32 %v586_v9, %v141_v15  ;;  %v219_v18 = vmul.f32 %v586_v9, %v173_v16  ;;  %v497_v19 = vpop.f32.mrb[2].mxu0  ;;  %v505_v20 = vpop.f32.mrb[2].mxu1 }
  0xdc   :  { %v214_v21 = vmul.f32 %v497_v19, %v586_v9  ;;  %v222_v22 = vmul.f32 %v505_v20, %v586_v9  ;;  %v144_v23 = vpop.f32.mrb[3].mxu0  ;;  %v176_v24 = vpop.f32.mrb[3].mxu1  ;;  %v244_v25 = vadd.f32 %v591_v12, %v221_v14  ;;  %v236_v26 = vadd.f32 %v591_v12, %v213_v13 }
  0xdd   :  { %v234_v27 = vadd.f32 %v591_v12, %v211_v17  ;;  %v242_v28 = vadd.f32 %v591_v12, %v219_v18  ;;  %v212_v29 = vmul.f32 %v586_v9, %v144_v23  ;;  %v220_v30 = vmul.f32 %v586_v9, %v176_v24 }
  0xde   :  { %v237_v31 = vadd.f32 %v591_v12, %v214_v21  ;;  %v245_v32 = vadd.f32 %v591_v12, %v222_v22  ;;  %v260_v33 = vmax.f32 %v244_v25, 0.0  ;;  %v252_v34 = vmax.f32 %v236_v26, 0.0 }
  0xdf   :  { %v250_v35 = vmax.f32 %v234_v27, 0.0  ;;  %v258_v36 = vmax.f32 %v242_v28, 0.0  ;;  %v235_v37 = vadd.f32 %v591_v12, %v212_v29  ;;  %v243_v38 = vadd.f32 %v591_v12, %v220_v30 }
  0xe0   :  { %v253_v39 = vmax.f32 %v237_v31, 0.0  ;;  %v261_v40 = vmax.f32 %v245_v32, 0.0  ;;  %v477_v41 = vpack.c.bf16 %v260_v33, %v260_v33  ;;  %v469_v42 = vpack.c.bf16 %v252_v34, %v252_v34 }
  0xe1   :  { %v467_v43 = vpack.c.bf16 %v250_v35, %v250_v35  ;;  %v475_v44 = vpack.c.bf16 %v258_v36, %v258_v36  ;;  %v251_v45 = vmax.f32 %v235_v37, 0.0  ;;  %v259_v46 = vmax.f32 %v243_v38, 0.0  ;;  %v500_v47 = vpop.f32.mrb[4].mxu0  ;;  %v508_v48 = vpop.f32.mrb[4].mxu1 }
  0xe2   :  { %v470_v49 = vpack.c.bf16 %v253_v39, %v253_v39  ;;  %v478_v50 = vpack.c.bf16 %v261_v40, %v261_v40  ;;  %367 = vrot.lane.b32.xlu0 %v477_v41, %s522_s0  ;;  %341 = vst.msk [vmem:[%s773_s4 + $0x50] sm:$0xf] %vm330_vm1, %v477_v41  ;;  %351 = vrot.lane.b32.xlu1 %v469_v42, %s522_s0  ;;  %333 = vst.msk [vmem:[%s773_s4 + $0x10] sm:$0xf] %vm330_vm1, %v469_v42  ;;  %v157_v52 = vpop.f32.mrb[5].mxu0  ;;  %v189_v53 = vpop.f32.mrb[5].mxu1 }
  0xe3   :  { %v217_v51 = vmul.f32 %v500_v47, %v586_v9  ;;  %331 = vst.msk [vmem:[%s773_s4] sm:$0xf] %vm330_vm1, %v467_v43  ;;  %339 = vst.msk [vmem:[%s773_s4 + $0x40] sm:$0xf] %vm330_vm1, %v475_v44  ;;  %v468_v54 = vpack.c.bf16 %v251_v45, %v251_v45  ;;  %v476_v55 = vpack.c.bf16 %v259_v46, %v259_v46  ;;  %v501_v57 = vpop.f32.mrb[6].mxu0  ;;  %v509_v59 = vpop.f32.mrb[6].mxu1 }
  0xe4   :  { %v215_v56 = vmul.f32 %v586_v9, %v157_v52  ;;  %v225_v58 = vmul.f32 %v508_v48, %v586_v9  ;;  %334 = vst.msk [vmem:[%s773_s4 + $0x18] sm:$0xf] %vm330_vm1, %v470_v49  ;;  %342 = vst.msk [vmem:[%s773_s4 + $0x58] sm:$0xf] %vm330_vm1, %v478_v50  ;;  %v218_v61 = vmul.f32 %v501_v57, %v586_v9  ;;  %v160_v62 = vpop.f32.mrb[7].mxu0  ;;  %v192_v1 = vpop.f32.mrb[7].mxu1 }
  0xe5   :  { %v240_v60 = vadd.f32 %v591_v12, %v217_v51  ;;  %v223_v63 = vmul.f32 %v586_v9, %v189_v53  ;;  %v226_v0 = vmul.f32 %v509_v59, %v586_v9  ;;  %332 = vst.msk [vmem:[%s773_s4 + $0x8] sm:$0xf] %vm330_vm1, %v468_v54  ;;  %340 = vst.msk [vmem:[%s773_s4 + $0x48] sm:$0xf] %vm330_vm1, %v476_v55 }
  0xe6   :  { %v238_v2 = vadd.f32 %v591_v12, %v215_v56  ;;  %v216_v3 = vmul.f32 %v586_v9, %v160_v62  ;;  %v248_v4 = vadd.f32 %v591_v12, %v225_v58  ;;  %v224_v5 = vmul.f32 %v586_v9, %v192_v1  ;;  %347 = vrot.lane.b32.xlu0 %v467_v43, %s522_s0 }
  0xe7   :  { %v256_v6 = vmax.f32 %v240_v60, 0.0  ;;  %353 = vrot.lane.b32.xlu1 %v470_v49, %s522_s0  ;;  %v241_v7 = vadd.f32 %v591_v12, %v218_v61  ;;  %v246_v8 = vadd.f32 %v591_v12, %v223_v63  ;;  %v249_v10 = vadd.f32 %v591_v12, %v226_v0 }
  0xe8   :  { %v254_v11 = vmax.f32 %v238_v2, 0.0  ;;  %v239_v13 = vadd.f32 %v591_v12, %v216_v3  ;;  %v264_v14 = vmax.f32 %v248_v4, 0.0  ;;  %v247_v15 = vadd.f32 %v591_v12, %v224_v5 }
  0xe9   :  { %v473_v16 = vpack.c.bf16 %v256_v6, %v256_v6  ;;  %v257_v17 = vmax.f32 %v241_v7, 0.0  ;;  %v262_v9 = vmax.f32 %v246_v8, 0.0  ;;  %v265_v18 = vmax.f32 %v249_v10, 0.0 }
  0xea   :  { %v471_v19 = vpack.c.bf16 %v254_v11, %v254_v11  ;;  %v255_v20 = vmax.f32 %v239_v13, 0.0  ;;  %v481_v21 = vpack.c.bf16 %v264_v14, %v264_v14  ;;  %v263_v22 = vmax.f32 %v247_v15, 0.0  ;;  %363 = vrot.lane.b32.xlu0 %v475_v44, %s522_s0 }
  0xeb   :  { %337 = vst.msk [vmem:[%s773_s4 + $0x30] sm:$0xf] %vm330_vm1, %v473_v16  ;;  %v474_v23 = vpack.c.bf16 %v257_v17, %v257_v17  ;;  %369 = vrot.lane.b32.xlu1 %v478_v50, %s522_s0  ;;  %v479_v24 = vpack.c.bf16 %v262_v9, %v262_v9  ;;  %v482_v12 = vpack.c.bf16 %v265_v18, %v265_v18 }
  0xec   :  { %335 = vst.msk [vmem:[%s773_s4 + $0x20] sm:$0xf] %vm330_vm1, %v471_v19  ;;  %v472_v25 = vpack.c.bf16 %v255_v20, %v255_v20  ;;  %345 = vst.msk [vmem:[%s773_s4 + $0x70] sm:$0xf] %vm330_vm1, %v481_v21  ;;  %v480_v26 = vpack.c.bf16 %v263_v22, %v263_v22 }
  0xed   :  { %338 = vst.msk [vmem:[%s773_s4 + $0x38] sm:$0xf] %vm330_vm1, %v474_v23  ;;  %343 = vst.msk [vmem:[%s773_s4 + $0x60] sm:$0xf] %vm330_vm1, %v479_v24 }
  0xee   :  { %346 = vst.msk [vmem:[%s773_s4 + $0x78] sm:$0xf] %vm330_vm1, %v482_v12  ;;  %336 = vst.msk [vmem:[%s773_s4 + $0x28] sm:$0xf] %vm330_vm1, %v472_v25  ;;  %349 = vrot.lane.b32.xlu0 %v468_v54, %s522_s0 }
  0xef   :  { %344 = vst.msk [vmem:[%s773_s4 + $0x68] sm:$0xf] %vm330_vm1, %v480_v26  ;;  %365 = vrot.lane.b32.xlu1 %v476_v55, %s522_s0 }
  0xf2   :  { %359 = vrot.lane.b32.xlu0 %v473_v16, %s522_s0 }
  0xf3   :  { %361 = vrot.lane.b32.xlu1 %v474_v23, %s522_s0 }
  0xf6   :  { %355 = vrot.lane.b32.xlu0 %v471_v19, %s522_s0 }
  0xf7   :  { %357 = vrot.lane.b32.xlu1 %v472_v25, %s522_s0 }
  0xfa   :  { %371 = vrot.lane.b32.xlu0 %v479_v24, %s522_s0 }
  0xfb   :  { %373 = vrot.lane.b32.xlu1 %v480_v26, %s522_s0 }
  0xfe   :  { %375 = vrot.lane.b32.xlu0 %v481_v21, %s522_s0 }
  0xff   :  { %377 = vrot.lane.b32.xlu1 %v482_v12, %s522_s0 }
 0x154   :  { %v368_v27 = vpop.permute.xlu0 %367  ;;  %v352_v28 = vpop.permute.xlu1 %351 }
 0x155   :  { %461 = vst.msk [vmem:[%s773_s4 + $0x54] sm:$0xf] %vm330_vm1, %v368_v27  ;;  %453 = vst.msk [vmem:[%s773_s4 + $0x14] sm:$0xf] %vm330_vm1, %v352_v28 }
 0x158   :  { %v348_v29 = vpop.permute.xlu0 %347 }
 0x159   :  { %v354_v30 = vpop.permute.xlu1 %353  ;;  %451 = vst.msk [vmem:[%s773_s4 + $0x4] sm:$0xf] %vm330_vm1, %v348_v29 }
 0x15a   :  { %454 = vst.msk [vmem:[%s773_s4 + $0x1c] sm:$0xf] %vm330_vm1, %v354_v30 }
 0x15c   :  { %v364_v31 = vpop.permute.xlu0 %363 }
 0x15d   :  { %v370_v32 = vpop.permute.xlu1 %369  ;;  %459 = vst.msk [vmem:[%s773_s4 + $0x44] sm:$0xf] %vm330_vm1, %v364_v31 }
 0x15e   :  { %462 = vst.msk [vmem:[%s773_s4 + $0x5c] sm:$0xf] %vm330_vm1, %v370_v32 }
 0x160   :  { %v350_v34 = vpop.permute.xlu0 %349 }
 0x161   :  { %v366_v33 = vpop.permute.xlu1 %365  ;;  %452 = vst.msk [vmem:[%s773_s4 + $0xc] sm:$0xf] %vm330_vm1, %v350_v34 }
 0x162   :  { %460 = vst.msk [vmem:[%s773_s4 + $0x4c] sm:$0xf] %vm330_vm1, %v366_v33 }
 0x164   :  { %v360_v35 = vpop.permute.xlu0 %359 }
 0x165   :  { %v362_v36 = vpop.permute.xlu1 %361  ;;  %457 = vst.msk [vmem:[%s773_s4 + $0x34] sm:$0xf] %vm330_vm1, %v360_v35 }
 0x166   :  { %458 = vst.msk [vmem:[%s773_s4 + $0x3c] sm:$0xf] %vm330_vm1, %v362_v36 }
 0x168   :  { %v356_v37 = vpop.permute.xlu0 %355 }
 0x169   :  { %v358_v38 = vpop.permute.xlu1 %357  ;;  %455 = vst.msk [vmem:[%s773_s4 + $0x24] sm:$0xf] %vm330_vm1, %v356_v37 }
 0x16a   :  { %456 = vst.msk [vmem:[%s773_s4 + $0x2c] sm:$0xf] %vm330_vm1, %v358_v38 }
 0x16c   :  { %v372_v39 = vpop.permute.xlu0 %371 }
 0x16d   :  { %v374_v40 = vpop.permute.xlu1 %373  ;;  %463 = vst.msk [vmem:[%s773_s4 + $0x64] sm:$0xf] %vm330_vm1, %v372_v39 }
 0x16e   :  { %464 = vst.msk [vmem:[%s773_s4 + $0x6c] sm:$0xf] %vm330_vm1, %v374_v40 }
 0x170   :  { %v376_v41 = vpop.permute.xlu0 %375 }
 0x171   :  { %v378_v42 = vpop.permute.xlu1 %377  ;;  %465 = vst.msk [vmem:[%s773_s4 + $0x74] sm:$0xf] %vm330_vm1, %v376_v41 }
 0x172   :  { %466 = vst.msk [vmem:[%s773_s4 + $0x7c] sm:$0xf] %vm330_vm1, %v378_v42 }

// kernel: _lambda_.6
= control target key start
LH: loop header
LB: loop body
LE: loop exit
PB: predicated region body
PF: predicated region fallthrough
CT: control target
= control target key end

     0   :  { %s2807_s19 = smov 0   ;;  %s2809_s20 = smov 0   ;;  %s3261_s0 = inlined_call_operand.vmem [shape: bf16[2,256,8], index: 0, kind: input, shape index: {}]   ;;  %s3262_s1 = inlined_call_operand.vmem [shape: bf16[2,256,8], index: 1, kind: input, shape index: {}]   ;;  %s3263_s2 = inlined_call_operand.vmem [shape: f32[2,1,8], index: 2, kind: input, shape index: {}]   ;;  %s3264_s3 = inlined_call_operand.vmem [shape: bf16[16,1], index: 3, kind: input, shape index: {}]   ;;  %s3265_s4 = inlined_call_operand.<no memory space> [shape: f32[1,1], index: 4, kind: input, shape index: {}, may-alias: {4,6}]   ;;  %s3266_s7 = inlined_call_operand.vmem [shape: bf16[8,8], index: 7, kind: input, shape index: {}]   ;;  %s3267_s8 = inlined_call_operand.vmem [shape: f32[1,8], index: 8, kind: input, shape index: {}]   ;;  %s3268_s9 = inlined_call_operand.vmem [shape: f32[1,8], index: 9, kind: input, shape index: {}]   ;;  %s3269_s10 = inlined_call_operand.vmem [shape: bf16[2,256,8], index: 10, kind: output, shape index: {}]   ;;  %s3270_s5 = inlined_call_operand.<no memory space> [shape: f32[1,1], index: 5, kind: input, shape index: {}]   ;;  %s3271_s6 = inlined_call_operand.<no memory space> [shape: f32[1,1], index: 6, kind: input, shape index: {}, may-alias: {4,6}]  }
   0x1   :  { %v15_v0 = vstv %s3265_s4  ;;  %v17_v1 = vstv %s3270_s5  ;;  %v19_v2 = vstv %s3271_s6  ;;  %s2811_s21 = smov 0  }
   0x2   :  { %16 = vst [vmem:[#allocation2] sm:$0x1] %v15_v0  ;;  %18 = vst [vmem:[#allocation3] sm:$0x1] %v17_v1 }
   0x3   :  { %20 = vst [vmem:[#allocation4] sm:$0x1] %v19_v2 }
   0x4 LB: > { %s38_s4 = sadd.s32 1, %s2735_s20  ;;  %p2218_p0 = scmp.ge.s32.totalorder %s2739_s21, 1  ;;  %s2739_s21 = sphi %s2811_s21, %s26_s21   ;;  %s2735_s20 = sphi %s2809_s20, %s3273_s20   ;;  %s2731_s19 = sphi %s2807_s19, %s3272_s19  }
   0x5   : > { %p40_p1 = scmp.ge.s32.totalorder %s38_s4, 2  ;;  %p364_p2 = scmp.lt.s32.totalorder %s2739_s21, 3 }
   0x7   : > { %s3275_s4 = smov (%p40_p1, %s38_s4), 0  ;;  %p365_p3 = pnand %p2218_p0, %p364_p2 }
   0x8   : > { %p423_p4 = scmp.lt.s32.totalorder (!%p365_p3), %s2731_s19, 1  ;;  %v2544_v3 = vld [vmem:[%s3264_s3] sm:$0xff] (!%p365_p3)   ;;  %s2741_s26 = smov (!%p365_p3), 8   ;;  %vm712_vm0 = vcmask (!%p365_p3), 64512   ;;  %vm776_vm1 = vcmask (!%p365_p3), 130048   ;;  %vm1664_vm2 = vcmask (!%p365_p3), 1043456  }
   0x9   : > { %368 = sbr.rel (%p365_p3) target bundleno = 812 (0x32c), region = 60  ;;  %2431 = vmatprep.subr.bf16.mxu0 (!%p365_p3), %v2544_v3  ;;  %vm2067_vm3 = vcmask (!%p365_p3), 60416  }
   0xa   : > { %2432 = vmatpush3.bf16.msra.mxu0 (!%p365_p3), %v2544_v3 }
  0x10   : > { %s3277_s19 = smov (!%p423_p4, %s2731_s19), 1 }
  0x11   : > { %s2831_s22 = sshll.u32 %s3277_s19, 7  ;;  %s444_s14 = scalar_lea.vmem %s3263_s2, %s3277_s19 }
  0x12   : > { %s2837_s25 = scalar_lea.vmem %s3262_s1, %s2831_s22  ;;  %s2859_s29 = scalar_lea.vmem %s3261_s0, %s2831_s22 }
  0x13   : > { %v2528_v4 = vld [vmem:[%s2837_s25] sm:$0xff]   ;;  %v2529_v5 = vld [vmem:[%s2837_s25 + $0x8] sm:$0xff]   ;;  %v2530_v6 = vld [vmem:[%s2837_s25 + $0x10] sm:$0xff]   ;;  %s3129_s6 = scalar_lea.vmem %s3269_s10, %s2831_s22 }
  0x14   : > { %680 = vrot.lane.b32.xlu0 %v2528_v4, %s2741_s26  ;;  %684 = vrot.lane.b32.xlu1 %v2530_v6, %s2741_s26  ;;  %v2531_v7 = vld [vmem:[%s2837_s25 + $0x18] sm:$0xff]   ;;  %v2532_v8 = vld [vmem:[%s2837_s25 + $0x20] sm:$0xff]   ;;  %v2742_v4 = vmov 0  }
  0x15   : > { %v2533_v9 = vld [vmem:[%s2837_s25 + $0x28] sm:$0xff]   ;;  %v2534_v10 = vld [vmem:[%s2837_s25 + $0x30] sm:$0xff]   ;;  %v2535_v11 = vld [vmem:[%s2837_s25 + $0x38] sm:$0xff]   ;;  %2526 = vset.pattern.permute.xlu0 %v2742_v4  ;;  %2527 = vset.pattern.permute.xlu1 %v2742_v4 }
  0x16   : > { %v2536_v12 = vld [vmem:[%s2837_s25 + $0x40] sm:$0xff]   ;;  %v2537_v13 = vld [vmem:[%s2837_s25 + $0x48] sm:$0xff]   ;;  %v2538_v14 = vld [vmem:[%s2837_s25 + $0x50] sm:$0xff]  }
  0x17   : > { %v2539_v15 = vld [vmem:[%s2837_s25 + $0x58] sm:$0xff]   ;;  %v2540_v16 = vld [vmem:[%s2837_s25 + $0x60] sm:$0xff]   ;;  %v2541_v17 = vld [vmem:[%s2837_s25 + $0x68] sm:$0xff]  }
  0x18   : > { %682 = vrot.lane.b32.xlu0 %v2529_v5, %s2741_s26  ;;  %686 = vrot.lane.b32.xlu1 %v2531_v7, %s2741_s26  ;;  %v2542_v18 = vld [vmem:[%s2837_s25 + $0x70] sm:$0xff]   ;;  %v2543_v19 = vld [vmem:[%s2837_s25 + $0x78] sm:$0xff]   ;;  %v2927_v5 = vld [vmem:[#allocation2] ss:$0 sm:$0xff] }
  0x19   : > { %v2862_v20 = vld [vmem:[%s2859_s29] sm:$0xff]   ;;  %v2865_v21 = vld [vmem:[%s2859_s29 + $0x10] sm:$0xff]   ;;  %v2868_v22 = vld [vmem:[%s2859_s29 + $0x8] sm:$0xff]  }
  0x1a   : > { %v2876_v28 = vld [vmem:[%s2859_s29 + $0x18] sm:$0xff]   ;;  %v2881_v30 = vld [vmem:[%s2859_s29 + $0x20] sm:$0xff]   ;;  %v2890_v35 = vld [vmem:[%s2859_s29 + $0x28] sm:$0xff]  }
  0x1b   : > { %v468_v36 = vld [vmem:[%s2859_s29 + $0x30] sm:$0xff]   ;;  %v470_v41 = vld [vmem:[%s2859_s29 + $0x38] sm:$0xff]   ;;  %v472_v42 = vld [vmem:[%s2859_s29 + $0x40] sm:$0xff]  }
  0x1c   : > { %688 = vrot.lane.b32.xlu0 %v2532_v8, %s2741_s26  ;;  %690 = vrot.lane.b32.xlu1 %v2533_v9, %s2741_s26  ;;  %v474_v47 = vld [vmem:[%s2859_s29 + $0x48] sm:$0xff]   ;;  %v476_v48 = vld [vmem:[%s2859_s29 + $0x50] sm:$0xff]   ;;  %v2930_v9 = vld [vmem:[#allocation3] ss:$0 sm:$0xff] }
  0x1d   : > { %v478_v53 = vld [vmem:[%s2859_s29 + $0x58] sm:$0xff]   ;;  %v480_v54 = vld [vmem:[%s2859_s29 + $0x60] sm:$0xff]   ;;  %v482_v59 = vld [vmem:[%s2859_s29 + $0x68] sm:$0xff]  }
  0x1e   : > { %v484_v60 = vld [vmem:[%s2859_s29 + $0x70] sm:$0xff]   ;;  %v486_v1 = vld [vmem:[%s2859_s29 + $0x78] sm:$0xff]  }
  0x20   : > { %692 = vrot.lane.b32.xlu0 %v2534_v10, %s2741_s26  ;;  %694 = vrot.lane.b32.xlu1 %v2535_v11, %s2741_s26 }
  0x24   : > { %696 = vrot.lane.b32.xlu0 %v2536_v12, %s2741_s26  ;;  %698 = vrot.lane.b32.xlu1 %v2537_v13, %s2741_s26 }
  0x28   : > { %700 = vrot.lane.b32.xlu0 %v2538_v14, %s2741_s26  ;;  %702 = vrot.lane.b32.xlu1 %v2539_v15, %s2741_s26  ;;  %v2934_v15 = vld [vmem:[#allocation4] ss:$0 sm:$0xff] }
  0x2c   : > { %704 = vrot.lane.b32.xlu0 %v2540_v16, %s2741_s26  ;;  %706 = vrot.lane.b32.xlu1 %v2541_v17, %s2741_s26 }
  0x30   : > { %708 = vrot.lane.b32.xlu0 %v2542_v18, %s2741_s26  ;;  %710 = vrot.lane.b32.xlu1 %v2543_v19, %s2741_s26 }
  0x86   : > { %v681_v23 = vpop.permute.xlu0 %680  ;;  %v685_v25 = vpop.permute.xlu1 %684 }
  0x87   : > { %v715_v24 = vsel %vm712_vm0, %v2862_v20, %v681_v23  ;;  %v721_v27 = vsel %vm712_vm0, %v2865_v21, %v685_v25 }
  0x88   : > { %2433 = vmatprep.mubr.msk.bf16.mxu0 %vm776_vm1, %v715_v24 }
  0x8a   : > { %v683_v26 = vpop.permute.xlu0 %682  ;;  %v687_v31 = vpop.permute.xlu1 %686 }
  0x8b   : > { %v718_v29 = vsel %vm712_vm0, %v2868_v22, %v683_v26  ;;  %v724_v33 = vsel %vm712_vm0, %v2876_v28, %v687_v31 }
  0x8c   : > { %2434 = vmatmul.mubr.msk.bf16.vlgmr.msra.gmra.mrb[0].mxu0 %vm776_vm1, %v718_v29 }
  0x8d   : > { %2437 = vmatprep.mubr.msk.bf16.mxu0 %vm776_vm1, %v721_v27 }
  0x8e   : > { %v689_v32 = vpop.permute.xlu0 %688  ;;  %v691_v37 = vpop.permute.xlu1 %690 }
  0x8f   : > { %v727_v34 = vsel %vm712_vm0, %v2881_v30, %v689_v32  ;;  %v730_v39 = vsel %vm712_vm0, %v2890_v35, %v691_v37 }
  0x92   : > { %v693_v38 = vpop.permute.xlu0 %692  ;;  %v695_v43 = vpop.permute.xlu1 %694 }
  0x93   : > { %v733_v40 = vsel %vm712_vm0, %v468_v36, %v693_v38  ;;  %v736_v45 = vsel %vm712_vm0, %v470_v41, %v695_v43 }
  0x94   : > { %2438 = vmatmul.mubr.msk.bf16.gmra.mrb[4].mxu0 %vm776_vm1, %v724_v33 }
  0x95   : > { %2441 = vmatprep.mubr.msk.bf16.mxu0 %vm776_vm1, %v727_v34 }
  0x96   : > { %v697_v44 = vpop.permute.xlu0 %696  ;;  %v699_v49 = vpop.permute.xlu1 %698 }
  0x97   : > { %v739_v46 = vsel %vm712_vm0, %v472_v42, %v697_v44  ;;  %v742_v51 = vsel %vm712_vm0, %v474_v47, %v699_v49 }
  0x9a   : > { %v701_v50 = vpop.permute.xlu0 %700  ;;  %v703_v55 = vpop.permute.xlu1 %702 }
  0x9b   : > { %v745_v52 = vsel %vm712_vm0, %v476_v48, %v701_v50  ;;  %v748_v57 = vsel %vm712_vm0, %v478_v53, %v703_v55 }
  0x9c   : > { %2442 = vmatmul.mubr.msk.bf16.gmra.mrb[8].mxu0 %vm776_vm1, %v730_v39 }
  0x9d   : > { %2445 = vmatprep.mubr.msk.bf16.mxu0 %vm776_vm1, %v733_v40 }
  0x9e   : > { %v705_v56 = vpop.permute.xlu0 %704  ;;  %v707_v61 = vpop.permute.xlu1 %706 }
  0x9f   : > { %v751_v58 = vsel %vm712_vm0, %v480_v54, %v705_v56  ;;  %v754_v63 = vsel %vm712_vm0, %v482_v59, %v707_v61 }
  0xa2   : > { %v709_v62 = vpop.permute.xlu0 %708  ;;  %v711_v2 = vpop.permute.xlu1 %710 }
  0xa3   : > { %v757_v0 = vsel %vm712_vm0, %v484_v60, %v709_v62  ;;  %v760_v3 = vsel %vm712_vm0, %v486_v1, %v711_v2 }
  0xa4   : > { %2446 = vmatmul.mubr.msk.bf16.gmra.mrb[12].mxu0 %vm776_vm1, %v736_v45 }
  0xa5   : > { %2449 = vmatprep.mubr.msk.bf16.mxu0 %vm776_vm1, %v739_v46 }
  0xac   : > { %2450 = vmatmul.mubr.msk.bf16.gmra.mrb[16].mxu0 %vm776_vm1, %v742_v51 }
  0xad   : > { %2453 = vmatprep.mubr.msk.bf16.mxu0 %vm776_vm1, %v745_v52 }
  0xb4   : > { %2454 = vmatmul.mubr.msk.bf16.gmra.mrb[20].mxu0 %vm776_vm1, %v748_v57 }
  0xb5   : > { %2457 = vmatprep.mubr.msk.bf16.mxu0 %vm776_vm1, %v751_v58 }
  0xbc   : > { %2458 = vmatmul.mubr.msk.bf16.gmra.mrb[24].mxu0 %vm776_vm1, %v754_v63 }
  0xbd   : > { %2461 = vmatprep.mubr.msk.bf16.mxu0 %vm776_vm1, %v757_v0 }
  0xc4   : > { %2462 = vmatmul.mubr.msk.bf16.gmra.mrb[28].mxu0 %vm776_vm1, %v760_v3 }
 0x15f   : > { %v2435_v6 = vpop.f32.mrb[0].mxu0 }
 0x160   : > { %v852_v7 = vadd.f32 %v2435_v6, %v2927_v5  ;;  %v843_v8 = vpop.f32.mrb[1].mxu0 }
 0x161   : > { %v844_v10 = vadd.f32 %v2927_v5, %v843_v8  ;;  %v2436_v11 = vpop.f32.mrb[2].mxu0 }
 0x162   : > { %v972_v12 = vmax.f32 %v852_v7, 0.0  ;;  %v855_v13 = vadd.f32 %v2436_v11, %v2927_v5  ;;  %v846_v14 = vpop.f32.mrb[3].mxu0 }
 0x163   : > { %v970_v16 = vmax.f32 %v844_v10, 0.0  ;;  %v847_v17 = vadd.f32 %v2927_v5, %v846_v14 }
 0x164   : > { %v1011_v18 = vmul.f32 %v2930_v9, %v972_v12  ;;  %v973_v19 = vmax.f32 %v855_v13, 0.0 }
 0x165   : > { %v1009_v23 = vmul.f32 %v2930_v9, %v970_v16  ;;  %v971_v24 = vmax.f32 %v847_v17, 0.0 }
 0x166   : > { %v1082_v25 = vadd.f32 %v2934_v15, %v1011_v18  ;;  %v1012_v26 = vmul.f32 %v2930_v9, %v973_v19 }
 0x167   : > { %v1080_v27 = vadd.f32 %v2934_v15, %v1009_v23  ;;  %v1010_v29 = vmul.f32 %v2930_v9, %v971_v24  ;;  %v2439_v31 = vpop.f32.mrb[4].mxu0 }
 0x168   : > { %v2279_v32 = vmul.f32 -1.442695, %v1082_v25  ;;  %v1083_v33 = vadd.f32 %v2934_v15, %v1012_v26  ;;  %v868_v34 = vadd.f32 %v2439_v31, %v2927_v5  ;;  %v859_v36 = vpop.f32.mrb[5].mxu0 }
 0x169   : > { %v2277_v37 = vmul.f32 -1.442695, %v1080_v27  ;;  %v1081_v38 = vadd.f32 %v2934_v15, %v1010_v29  ;;  %v860_v39 = vadd.f32 %v2927_v5, %v859_v36  ;;  %v2440_v40 = vpop.f32.mrb[6].mxu0 }
 0x16a   : > { %2577 = vpow2.f32 %v2279_v32  ;;  %v2280_v41 = vmul.f32 -1.442695, %v1083_v33  ;;  %v976_v42 = vmax.f32 %v868_v34, 0.0  ;;  %v871_v43 = vadd.f32 %v2440_v40, %v2927_v5  ;;  %v862_v44 = vpop.f32.mrb[7].mxu0 }
 0x16b   : > { %2579 = vpow2.f32 %v2277_v37  ;;  %v2278_v45 = vmul.f32 -1.442695, %v1081_v38  ;;  %v974_v46 = vmax.f32 %v860_v39, 0.0  ;;  %v863_v47 = vadd.f32 %v2927_v5, %v862_v44 }
 0x16c   : > { %2581 = vpow2.f32 %v2280_v41  ;;  %v1015_v48 = vmul.f32 %v2930_v9, %v976_v42  ;;  %v977_v49 = vmax.f32 %v871_v43, 0.0 }
 0x16d   : > { %2583 = vpow2.f32 %v2278_v45  ;;  %v1013_v50 = vmul.f32 %v2930_v9, %v974_v46  ;;  %v975_v51 = vmax.f32 %v863_v47, 0.0 }
 0x16e   : > { %v1086_v52 = vadd.f32 %v2934_v15, %v1015_v48  ;;  %v1016_v53 = vmul.f32 %v2930_v9, %v977_v49 }
 0x16f   : > { %v1084_v54 = vadd.f32 %v2934_v15, %v1013_v50  ;;  %v1014_v55 = vmul.f32 %v2930_v9, %v975_v51  ;;  %v2443_v56 = vpop.f32.mrb[8].mxu0 }
 0x170   : > { %v2283_v57 = vmul.f32 -1.442695, %v1086_v52  ;;  %v1087_v58 = vadd.f32 %v2934_v15, %v1016_v53  ;;  %v884_v59 = vadd.f32 %v2443_v56, %v2927_v5  ;;  %v875_v60 = vpop.f32.mrb[9].mxu0 }
 0x171   : > { %v2281_v61 = vmul.f32 -1.442695, %v1084_v54  ;;  %v1085_v62 = vadd.f32 %v2934_v15, %v1014_v55  ;;  %v876_v63 = vadd.f32 %v2927_v5, %v875_v60  ;;  %v2444_v0 = vpop.f32.mrb[10].mxu0 }
 0x172   : > { %2585 = vpow2.f32 %v2283_v57  ;;  %v2284_v1 = vmul.f32 -1.442695, %v1087_v58  ;;  %v980_v2 = vmax.f32 %v884_v59, 0.0  ;;  %v887_v3 = vadd.f32 %v2444_v0, %v2927_v5  ;;  %v878_v4 = vpop.f32.mrb[11].mxu0 }
 0x173   : > { %2587 = vpow2.f32 %v2281_v61  ;;  %v2282_v6 = vmul.f32 -1.442695, %v1085_v62  ;;  %v978_v7 = vmax.f32 %v876_v63, 0.0  ;;  %v879_v8 = vadd.f32 %v2927_v5, %v878_v4 }
 0x174   : > { %v2578_v10 = vpop.eup %2577  ;;  %2589 = vpow2.f32 %v2284_v1  ;;  %v1019_v11 = vmul.f32 %v2930_v9, %v980_v2  ;;  %v981_v12 = vmax.f32 %v887_v3, 0.0 }
 0x175   : > { %v2580_v13 = vpop.eup %2579  ;;  %v1210_v14 = vadd.f32 1.0, %v2578_v10  ;;  %2591 = vpow2.f32 %v2282_v6  ;;  %v1017_v16 = vmul.f32 %v2930_v9, %v978_v7  ;;  %v979_v17 = vmax.f32 %v879_v8, 0.0 }
 0x176   : > { %v2582_v18 = vpop.eup %2581  ;;  %v1208_v19 = vadd.f32 1.0, %v2580_v13  ;;  %v1090_v23 = vadd.f32 %v2934_v15, %v1019_v11  ;;  %v1020_v24 = vmul.f32 %v2930_v9, %v981_v12 }
 0x177   : > { %v2584_v25 = vpop.eup %2583  ;;  %2593 = vrcp.f32 %v1210_v14  ;;  %v1211_v26 = vadd.f32 1.0, %v2582_v18  ;;  %v1088_v27 = vadd.f32 %v2934_v15, %v1017_v16  ;;  %v1018_v29 = vmul.f32 %v2930_v9, %v979_v17  ;;  %v2447_v31 = vpop.f32.mrb[12].mxu0 }
 0x178   : > { %2595 = vrcp.f32 %v1208_v19  ;;  %v1209_v32 = vadd.f32 1.0, %v2584_v25  ;;  %v2287_v33 = vmul.f32 -1.442695, %v1090_v23  ;;  %v1091_v34 = vadd.f32 %v2934_v15, %v1020_v24  ;;  %v891_v36 = vpop.f32.mrb[13].mxu0 }
 0x179   : > { %2597 = vrcp.f32 %v1211_v26  ;;  %v2285_v37 = vmul.f32 -1.442695, %v1088_v27  ;;  %v1089_v38 = vadd.f32 %v2934_v15, %v1018_v29  ;;  %v900_v39 = vadd.f32 %v2447_v31, %v2927_v5  ;;  %v2448_v40 = vpop.f32.mrb[14].mxu0 }
 0x17a   : > { %2599 = vrcp.f32 %v1209_v32  ;;  %v2288_v41 = vmul.f32 -1.442695, %v1091_v34  ;;  %v892_v42 = vadd.f32 %v2927_v5, %v891_v36  ;;  %v903_v43 = vadd.f32 %v2448_v40, %v2927_v5  ;;  %v894_v44 = vpop.f32.mrb[15].mxu0 }
 0x17b   : > { %2601 = vpow2.f32 %v2287_v33  ;;  %v2286_v45 = vmul.f32 -1.442695, %v1089_v38  ;;  %v984_v46 = vmax.f32 %v900_v39, 0.0  ;;  %v895_v47 = vadd.f32 %v2927_v5, %v894_v44 }
 0x17c   : > { %v2586_v48 = vpop.eup %2585  ;;  %2603 = vpow2.f32 %v2285_v37  ;;  %v982_v49 = vmax.f32 %v892_v42, 0.0  ;;  %v985_v50 = vmax.f32 %v903_v43, 0.0 }
 0x17d   : > { %v2588_v51 = vpop.eup %2587  ;;  %v1214_v52 = vadd.f32 1.0, %v2586_v48  ;;  %2605 = vpow2.f32 %v2288_v41  ;;  %v1023_v53 = vmul.f32 %v2930_v9, %v984_v46  ;;  %v983_v54 = vmax.f32 %v895_v47, 0.0 }
 0x17e   : > { %v2590_v55 = vpop.eup %2589  ;;  %v1212_v56 = vadd.f32 1.0, %v2588_v51  ;;  %2607 = vpow2.f32 %v2286_v45  ;;  %v1021_v57 = vmul.f32 %v2930_v9, %v982_v49  ;;  %v1024_v58 = vmul.f32 %v2930_v9, %v985_v50 }
 0x17f   : > { %v2592_v59 = vpop.eup %2591  ;;  %2609 = vrcp.f32 %v1214_v52  ;;  %v1215_v60 = vadd.f32 1.0, %v2590_v55  ;;  %v1094_v61 = vadd.f32 %v2934_v15, %v1023_v53  ;;  %v1022_v62 = vmul.f32 %v2930_v9, %v983_v54  ;;  %v2451_v63 = vpop.f32.mrb[16].mxu0 }
 0x180   : > { %2611 = vrcp.f32 %v1212_v56  ;;  %v1213_v0 = vadd.f32 1.0, %v2592_v59  ;;  %v1092_v1 = vadd.f32 %v2934_v15, %v1021_v57  ;;  %v1095_v2 = vadd.f32 %v2934_v15, %v1024_v58  ;;  %v907_v3 = vpop.f32.mrb[17].mxu0 }
 0x181   : > { %v2594_v4 = vpop.eup %2593  ;;  %2613 = vrcp.f32 %v1215_v60  ;;  %v2291_v6 = vmul.f32 -1.442695, %v1094_v61  ;;  %v1093_v7 = vadd.f32 %v2934_v15, %v1022_v62  ;;  %v916_v8 = vadd.f32 %v2451_v63, %v2927_v5  ;;  %v2452_v10 = vpop.f32.mrb[18].mxu0 }
 0x182   : > { %v2596_v11 = vpop.eup %2595  ;;  %2615 = vrcp.f32 %v1213_v0  ;;  %v2289_v12 = vmul.f32 -1.442695, %v1092_v1  ;;  %v2292_v13 = vmul.f32 -1.442695, %v1095_v2  ;;  %v908_v14 = vadd.f32 %v2927_v5, %v907_v3  ;;  %v910_v16 = vpop.f32.mrb[19].mxu0 }
 0x183   : > { %v2598_v17 = vpop.eup %2597  ;;  %2617 = vpow2.f32 %v2291_v6  ;;  %v2290_v18 = vmul.f32 -1.442695, %v1093_v7  ;;  %v988_v19 = vmax.f32 %v916_v8, 0.0  ;;  %v919_v23 = vadd.f32 %v2452_v10, %v2927_v5  ;;  %1313 = vperm.xlu0 %2526, %v2596_v11  }
 0x184   : > { %v2600_v24 = vpop.eup %2599  ;;  %2619 = vpow2.f32 %v2289_v12  ;;  %v986_v25 = vmax.f32 %v908_v14, 0.0  ;;  %v911_v26 = vadd.f32 %v2927_v5, %v910_v16 }
 0x185   : > { %v2602_v27 = vpop.eup %2601  ;;  %2621 = vpow2.f32 %v2292_v13  ;;  %v1027_v29 = vmul.f32 %v2930_v9, %v988_v19  ;;  %v989_v31 = vmax.f32 %v919_v23, 0.0  ;;  %1318 = vperm.xlu1 %2527, %v2600_v24  }
 0x186   : > { %v2604_v32 = vpop.eup %2603  ;;  %v1218_v33 = vadd.f32 1.0, %v2602_v27  ;;  %2623 = vpow2.f32 %v2290_v18  ;;  %v1025_v34 = vmul.f32 %v2930_v9, %v986_v25  ;;  %v987_v36 = vmax.f32 %v911_v26, 0.0 }
 0x187   : > { %v2606_v37 = vpop.eup %2605  ;;  %v1216_v38 = vadd.f32 1.0, %v2604_v32  ;;  %v1098_v39 = vadd.f32 %v2934_v15, %v1027_v29  ;;  %v1028_v40 = vmul.f32 %v2930_v9, %v989_v31  ;;  %v2455_v41 = vpop.f32.mrb[20].mxu0  ;;  %1328 = vperm.xlu0 %2526, %v2598_v17  }
 0x188   : > { %v2608_v42 = vpop.eup %2607  ;;  %2625 = vrcp.f32 %v1218_v33  ;;  %v1219_v43 = vadd.f32 1.0, %v2606_v37  ;;  %v1096_v44 = vadd.f32 %v2934_v15, %v1025_v34  ;;  %v1026_v45 = vmul.f32 %v2930_v9, %v987_v36  ;;  %v923_v46 = vpop.f32.mrb[21].mxu0 }
 0x189   : > { %v2610_v47 = vpop.eup %2609  ;;  %2627 = vrcp.f32 %v1216_v38  ;;  %v1217_v48 = vadd.f32 1.0, %v2608_v42  ;;  %v2295_v49 = vmul.f32 -1.442695, %v1098_v39  ;;  %v1099_v50 = vadd.f32 %v2934_v15, %v1028_v40  ;;  %v2456_v51 = vpop.f32.mrb[22].mxu0  ;;  %1323 = vperm.xlu1 %2527, %v2594_v4  }
 0x18a   : > { %v2612_v52 = vpop.eup %2611  ;;  %2629 = vrcp.f32 %v1219_v43  ;;  %v2293_v53 = vmul.f32 -1.442695, %v1096_v44  ;;  %v1097_v54 = vadd.f32 %v2934_v15, %v1026_v45  ;;  %v932_v55 = vadd.f32 %v2455_v41, %v2927_v5  ;;  %v926_v56 = vpop.f32.mrb[23].mxu0 }
 0x18b   : > { %v2614_v57 = vpop.eup %2613  ;;  %2631 = vrcp.f32 %v1217_v48  ;;  %v2296_v58 = vmul.f32 -1.442695, %v1099_v50  ;;  %v924_v59 = vadd.f32 %v2927_v5, %v923_v46  ;;  %v935_v60 = vadd.f32 %v2456_v51, %v2927_v5 }
 0x18c   : > { %v2616_v61 = vpop.eup %2615  ;;  %2633 = vpow2.f32 %v2295_v49  ;;  %v2294_v62 = vmul.f32 -1.442695, %v1097_v54  ;;  %v992_v63 = vmax.f32 %v932_v55, 0.0  ;;  %v927_v0 = vadd.f32 %v2927_v5, %v926_v56 }
 0x18d   : > { %v2618_v1 = vpop.eup %2617  ;;  %2635 = vpow2.f32 %v2293_v53  ;;  %v990_v2 = vmax.f32 %v924_v59, 0.0  ;;  %v993_v3 = vmax.f32 %v935_v60, 0.0  ;;  %1333 = vperm.xlu1 %2527, %v2612_v52   ;;  %1338 = vperm.xlu0 %2526, %v2616_v61  }
 0x18e   : > { %v2620_v4 = vpop.eup %2619  ;;  %v1222_v6 = vadd.f32 1.0, %v2618_v1  ;;  %2637 = vpow2.f32 %v2296_v58  ;;  %v1031_v7 = vmul.f32 %v2930_v9, %v992_v63  ;;  %v991_v8 = vmax.f32 %v927_v0, 0.0 }
 0x18f   : > { %v2622_v10 = vpop.eup %2621  ;;  %v1220_v11 = vadd.f32 1.0, %v2620_v4  ;;  %2639 = vpow2.f32 %v2294_v62  ;;  %v1029_v12 = vmul.f32 %v2930_v9, %v990_v2  ;;  %v1032_v13 = vmul.f32 %v2930_v9, %v993_v3  ;;  %v2459_v14 = vpop.f32.mrb[24].mxu0 }
 0x190   : > { %v2624_v16 = vpop.eup %2623  ;;  %2641 = vrcp.f32 %v1222_v6  ;;  %v1223_v17 = vadd.f32 1.0, %v2622_v10  ;;  %v1102_v18 = vadd.f32 %v2934_v15, %v1031_v7  ;;  %v1030_v19 = vmul.f32 %v2930_v9, %v991_v8  ;;  %v939_v23 = vpop.f32.mrb[25].mxu0 }
 0x191   : > { %2643 = vrcp.f32 %v1220_v11  ;;  %v1221_v24 = vadd.f32 1.0, %v2624_v16  ;;  %v1100_v25 = vadd.f32 %v2934_v15, %v1029_v12  ;;  %v1103_v26 = vadd.f32 %v2934_v15, %v1032_v13  ;;  %v2460_v27 = vpop.f32.mrb[26].mxu0  ;;  %1343 = vperm.xlu1 %2527, %v2610_v47   ;;  %1348 = vperm.xlu0 %2526, %v2614_v57  }
 0x192   : > { %v2626_v29 = vpop.eup %2625  ;;  %2645 = vrcp.f32 %v1223_v17  ;;  %v2299_v31 = vmul.f32 -1.442695, %v1102_v18  ;;  %v1101_v32 = vadd.f32 %v2934_v15, %v1030_v19  ;;  %v948_v33 = vadd.f32 %v2459_v14, %v2927_v5  ;;  %v942_v34 = vpop.f32.mrb[27].mxu0 }
 0x193   : > { %v2628_v36 = vpop.eup %2627  ;;  %2647 = vrcp.f32 %v1221_v24  ;;  %v2297_v37 = vmul.f32 -1.442695, %v1100_v25  ;;  %v2300_v38 = vmul.f32 -1.442695, %v1103_v26  ;;  %v940_v39 = vadd.f32 %v2927_v5, %v939_v23 }
 0x194   : > { %v2630_v40 = vpop.eup %2629  ;;  %2649 = vpow2.f32 %v2299_v31  ;;  %v2298_v41 = vmul.f32 -1.442695, %v1101_v32  ;;  %v996_v42 = vmax.f32 %v948_v33, 0.0  ;;  %v951_v43 = vadd.f32 %v2460_v27, %v2927_v5 }
 0x195   : > { %v2632_v44 = vpop.eup %2631  ;;  %2651 = vpow2.f32 %v2297_v37  ;;  %v994_v45 = vmax.f32 %v940_v39, 0.0  ;;  %v943_v46 = vadd.f32 %v2927_v5, %v942_v34  ;;  %1353 = vperm.xlu1 %2527, %v2628_v36  }
 0x196   : > { %v2634_v47 = vpop.eup %2633  ;;  %2653 = vpow2.f32 %v2300_v38  ;;  %v1035_v48 = vmul.f32 %v2930_v9, %v996_v42  ;;  %v997_v49 = vmax.f32 %v951_v43, 0.0  ;;  %1358 = vperm.xlu0 %2526, %v2632_v44   ;;  %v1615_v42 = vld [vmem:[%s3266_s7] sm:$0xf] }
 0x197   : > { %v2636_v50 = vpop.eup %2635  ;;  %v1226_v51 = vadd.f32 1.0, %v2634_v47  ;;  %2655 = vpow2.f32 %v2298_v41  ;;  %v1033_v52 = vmul.f32 %v2930_v9, %v994_v45  ;;  %v995_v53 = vmax.f32 %v943_v46, 0.0  ;;  %v2463_v54 = vpop.f32.mrb[28].mxu0  ;;  %2499 = vmatprep.subr.msk.bf16.mxu1 %vm1664_vm2, %v1615_v42 }
 0x198   : > { %v2638_v55 = vpop.eup %2637  ;;  %v1224_v56 = vadd.f32 1.0, %v2636_v50  ;;  %v1106_v57 = vadd.f32 %v2934_v15, %v1035_v48  ;;  %v1036_v58 = vmul.f32 %v2930_v9, %v997_v49  ;;  %v964_v59 = vadd.f32 %v2463_v54, %v2927_v5  ;;  %v955_v60 = vpop.f32.mrb[29].mxu0 }
 0x199   : > { %v2640_v61 = vpop.eup %2639  ;;  %2657 = vrcp.f32 %v1226_v51  ;;  %v1227_v62 = vadd.f32 1.0, %v2638_v55  ;;  %v1104_v63 = vadd.f32 %v2934_v15, %v1033_v52  ;;  %v1034_v0 = vmul.f32 %v2930_v9, %v995_v53  ;;  %v2464_v1 = vpop.f32.mrb[30].mxu0  ;;  %1363 = vperm.xlu1 %2527, %v2626_v29  }
 0x19a   : > { %v2642_v2 = vpop.eup %2641  ;;  %2659 = vrcp.f32 %v1224_v56  ;;  %v1225_v3 = vadd.f32 1.0, %v2640_v61  ;;  %v2303_v4 = vmul.f32 -1.442695, %v1106_v57  ;;  %v1107_v6 = vadd.f32 %v2934_v15, %v1036_v58  ;;  %1368 = vperm.xlu0 %2526, %v2630_v40   ;;  %v958_v7 = vpop.f32.mrb[31].mxu0 }
 0x19b   : > { %v2644_v8 = vpop.eup %2643  ;;  %2661 = vrcp.f32 %v1227_v62  ;;  %v2301_v10 = vmul.f32 -1.442695, %v1104_v63  ;;  %v1105_v11 = vadd.f32 %v2934_v15, %v1034_v0  ;;  %v1000_v12 = vmax.f32 %v964_v59, 0.0 }
 0x19c   : > { %v2646_v13 = vpop.eup %2645  ;;  %2663 = vrcp.f32 %v1225_v3  ;;  %v2304_v14 = vmul.f32 -1.442695, %v1107_v6  ;;  %v956_v16 = vadd.f32 %v2927_v5, %v955_v60  ;;  %v967_v17 = vadd.f32 %v2464_v1, %v2927_v5 }
 0x19d   : > { %v2648_v18 = vpop.eup %2647  ;;  %2665 = vpow2.f32 %v2303_v4  ;;  %v2302_v19 = vmul.f32 -1.442695, %v1105_v11  ;;  %v1039_v23 = vmul.f32 %v2930_v9, %v1000_v12  ;;  %v959_v24 = vadd.f32 %v2927_v5, %v958_v7  ;;  %1373 = vperm.xlu1 %2527, %v2644_v8  }
 0x19e   : > { %v2650_v25 = vpop.eup %2649  ;;  %2667 = vpow2.f32 %v2301_v10  ;;  %v998_v26 = vmax.f32 %v956_v16, 0.0  ;;  %v1001_v27 = vmax.f32 %v967_v17, 0.0  ;;  %1378 = vperm.xlu0 %2526, %v2648_v18   ;;  %v1666_v50 = vsel %vm1664_vm2, %v1615_v42, 0 }
 0x19f   : > { %v2652_v29 = vpop.eup %2651  ;;  %v1230_v31 = vadd.f32 1.0, %v2650_v25  ;;  %2669 = vpow2.f32 %v2304_v14  ;;  %v1110_v32 = vadd.f32 %v2934_v15, %v1039_v23  ;;  %v999_v33 = vmax.f32 %v959_v24, 0.0  ;;  %2466 = vmatpush3.bf16.msra.mxu1 %v1666_v50  ;;  %v3036_v23 = vld [vmem:[%s444_s14] ss:$0 sm:$0xff] }
 0x1a0   : > { %v2654_v34 = vpop.eup %2653  ;;  %v1228_v36 = vadd.f32 1.0, %v2652_v29  ;;  %2671 = vpow2.f32 %v2302_v19  ;;  %v1037_v37 = vmul.f32 %v2930_v9, %v998_v26  ;;  %v1040_v38 = vmul.f32 %v2930_v9, %v1001_v27 }
 0x1a1   : > { %v2656_v5 = vpop.eup %2655  ;;  %2673 = vrcp.f32 %v1230_v31  ;;  %v1231_v39 = vadd.f32 1.0, %v2654_v34  ;;  %v2307_v40 = vmul.f32 -1.442695, %v1110_v32  ;;  %v1038_v41 = vmul.f32 %v2930_v9, %v999_v33  ;;  %1383 = vperm.xlu1 %2527, %v2642_v2  }
 0x1a2   : > { %2675 = vrcp.f32 %v1228_v36  ;;  %v1229_v43 = vadd.f32 1.0, %v2656_v5  ;;  %v1108_v44 = vadd.f32 %v2934_v15, %v1037_v37  ;;  %v1111_v45 = vadd.f32 %v2934_v15, %v1040_v38  ;;  %1388 = vperm.xlu0 %2526, %v2646_v13  }
 0x1a3   : > { %v2658_v46 = vpop.eup %2657  ;;  %2677 = vrcp.f32 %v1231_v39  ;;  %v1109_v47 = vadd.f32 %v2934_v15, %v1038_v41  ;;  %v1535_v27 = vunpack.c.l.bf16 %v2862_v20  ;;  %v1536_v31 = vunpack.c.h.bf16 %v2862_v20 }
 0x1a4   : > { %v2660_v48 = vpop.eup %2659  ;;  %2679 = vrcp.f32 %v1229_v43  ;;  %v2305_v9 = vmul.f32 -1.442695, %v1108_v44  ;;  %v2308_v49 = vmul.f32 -1.442695, %v1111_v45  ;;  %v1538_v37 = vunpack.c.h.bf16 %v2868_v22 }
 0x1a5   : > { %v2662_v51 = vpop.eup %2661  ;;  %2681 = vpow2.f32 %v2307_v40  ;;  %v2306_v52 = vmul.f32 -1.442695, %v1109_v47  ;;  %1393 = vperm.xlu1 %2527, %v2660_v48   ;;  %v1537_v38 = vunpack.c.l.bf16 %v2868_v22  ;;  %v1539_v20 = vunpack.c.l.bf16 %v2865_v21 }
 0x1a6   : > { %v2664_v53 = vpop.eup %2663  ;;  %2683 = vpow2.f32 %v2305_v9 }
 0x1a7   : > { %v2666_v54 = vpop.eup %2665  ;;  %2685 = vpow2.f32 %v2308_v49  ;;  %1398 = vperm.xlu0 %2526, %v2664_v53   ;;  %v1541_v53 = vunpack.c.l.bf16 %v2876_v28 }
 0x1a8   : > { %v2668_v55 = vpop.eup %2667  ;;  %2687 = vpow2.f32 %v2306_v52  ;;  %v1234_v59 = vadd.f32 1.0, %v2666_v54 }
 0x1a9   : > { %v2670_v15 = vpop.eup %2669  ;;  %v1232_v56 = vadd.f32 1.0, %v2668_v55  ;;  %1403 = vperm.xlu1 %2527, %v2658_v46   ;;  %v1540_v46 = vunpack.c.h.bf16 %v2865_v21  ;;  %v1542_v55 = vunpack.c.h.bf16 %v2876_v28 }
 0x1aa   : > { %v2672_v57 = vpop.eup %2671  ;;  %v1235_v63 = vadd.f32 1.0, %v2670_v15 }
 0x1ab   : > { %v2674_v58 = vpop.eup %2673  ;;  %2689 = vrcp.f32 %v1232_v56  ;;  %v1233_v60 = vadd.f32 1.0, %v2672_v57  ;;  %1408 = vperm.xlu0 %2526, %v2662_v51  }
 0x1ac   : > { %v2676_v61 = vpop.eup %2675 }
 0x1ad   : > { %v2678_v62 = vpop.eup %2677  ;;  %2691 = vrcp.f32 %v1233_v60  ;;  %1413 = vperm.xlu1 %2527, %v2676_v61  }
 0x1ae   : > { %v2680_v0 = vpop.eup %2679  ;;  %2693 = vrcp.f32 %v1234_v59 }
 0x1af   : > { %v2682_v1 = vpop.eup %2681  ;;  %1418 = vperm.xlu0 %2526, %v2680_v0   ;;  %2695 = vrcp.f32 %v1235_v63 }
 0x1b0   : > { %v2684_v2 = vpop.eup %2683  ;;  %v1238_v7 = vadd.f32 1.0, %v2682_v1  ;;  %v1543_v1 = vunpack.c.l.bf16 %v2881_v30 }
 0x1b1   : > { %v2686_v3 = vpop.eup %2685  ;;  %v1236_v4 = vadd.f32 1.0, %v2684_v2  ;;  %1423 = vperm.xlu1 %2527, %v2674_v58  }
 0x1b2   : > { %v2688_v6 = vpop.eup %2687  ;;  %v1239_v11 = vadd.f32 1.0, %v2686_v3  ;;  %v2705_v3 = vld [vmem:[%s2859_s29 + $0x20] sm:$0xff]  }
 0x1b3   : > { %2697 = vrcp.f32 %v1236_v4  ;;  %v1237_v8 = vadd.f32 1.0, %v2688_v6  ;;  %1428 = vperm.xlu0 %2526, %v2678_v62   ;;  %v1544_v4 = vunpack.c.h.bf16 %v2705_v3 }
 0x1b5   : > { %v2690_v10 = vpop.eup %2689  ;;  %2699 = vrcp.f32 %v1237_v8 }
 0x1b6   : > { %1433 = vperm.xlu1 %2527, %v2690_v10   ;;  %2701 = vrcp.f32 %v1238_v7 }
 0x1b7   : > { %v2692_v12 = vpop.eup %2691  ;;  %2703 = vrcp.f32 %v1239_v11 }
 0x1b8   : > { %1438 = vperm.xlu0 %2526, %v2692_v12   ;;  %v2694_v13 = vpop.eup %2693 }
 0x1b9   : > { %v2696_v14 = vpop.eup %2695 }
 0x1ba   : > { %1443 = vperm.xlu1 %2527, %v2694_v13   ;;  %v1545_v13 = vunpack.c.l.bf16 %v2890_v35 }
 0x1bc   : > { %1448 = vperm.xlu0 %2526, %v2696_v14  }
 0x1bd   : > { %v2698_v16 = vpop.eup %2697 }
 0x1be   : > { %1453 = vperm.xlu1 %2527, %v2698_v16  }
 0x1bf   : > { %v2700_v17 = vpop.eup %2699 }
 0x1c0   : > { %1458 = vperm.xlu0 %2526, %v2700_v17   ;;  %v2702_v18 = vpop.eup %2701  ;;  %v2706_v17 = vld [vmem:[%s2859_s29 + $0x28] sm:$0xff]  }
 0x1c1   : > { %v2704_v19 = vpop.eup %2703 }
 0x1c2   : > { %1463 = vperm.xlu1 %2527, %v2702_v18   ;;  %v1546_v18 = vunpack.c.h.bf16 %v2706_v17 }
 0x1c4   : > { %1468 = vperm.xlu0 %2526, %v2704_v19  }
 0x202   : > { %v1314_v24 = vpop.permute.xlu0 %1313 }
 0x203   : > { %v1471_v25 = vmul.f32 %v3036_v23, %v1314_v24 }
 0x204   : > { %v1319_v26 = vpop.permute.xlu1 %1318 }
 0x205   : > { %v1503_v29 = vadd.f32 1.0, %v1471_v25  ;;  %v1472_v32 = vmul.f32 %v3036_v23, %v1319_v26 }
 0x206   : > { %v1329_v33 = vpop.permute.xlu0 %1328 }
 0x207   : > { %v1504_v34 = vadd.f32 1.0, %v1472_v32  ;;  %v1474_v36 = vmul.f32 %v3036_v23, %v1329_v33  ;;  %v1567_v39 = vmul.f32 %v1535_v27, %v1503_v29 }
 0x208   : > { %v1324_v5 = vpop.permute.xlu1 %1323 }
 0x209   : > { %v1568_v40 = vmul.f32 %v1536_v31, %v1504_v34  ;;  %v1506_v41 = vadd.f32 1.0, %v1474_v36  ;;  %v1473_v42 = vmul.f32 %v3036_v23, %v1324_v5  ;;  %v2707_v31 = vld [vmem:[%s2859_s29 + $0x30] sm:$0xff]  }
 0x20a   : > { %v1547_v32 = vunpack.c.l.bf16 %v2707_v31  ;;  %v1548_v36 = vunpack.c.h.bf16 %v2707_v31 }
 0x20b   : > { %v1505_v43 = vadd.f32 1.0, %v1473_v42  ;;  %v1599_v44 = vpack.c.bf16 %v1568_v40, %v1567_v39  ;;  %v1570_v48 = vmul.f32 %v1538_v37, %v1506_v41  ;;  %v2708_v42 = vld [vmem:[%s2859_s29 + $0x38] sm:$0xff]  }
 0x20c   : > { %v1334_v45 = vpop.permute.xlu1 %1333  ;;  %v1339_v47 = vpop.permute.xlu0 %1338 }
 0x20d   : > { %v1569_v9 = vmul.f32 %v1537_v38, %v1505_v43  ;;  %v1475_v49 = vmul.f32 %v3036_v23, %v1334_v45  ;;  %v1476_v22 = vmul.f32 %v3036_v23, %v1339_v47  ;;  %2467 = vmatprep.mubr.msk.bf16.mxu1 %vm712_vm0, %v1599_v44  ;;  %v1549_v43 = vunpack.c.l.bf16 %v2708_v42 }
 0x20f   : > { %v1600_v50 = vpack.c.bf16 %v1570_v48, %v1569_v9  ;;  %v1507_v51 = vadd.f32 1.0, %v1475_v49  ;;  %v1508_v52 = vadd.f32 1.0, %v1476_v22 }
 0x210   : > { %v1344_v54 = vpop.permute.xlu1 %1343  ;;  %v1349_v15 = vpop.permute.xlu0 %1348 }
 0x211   : > { %v1571_v21 = vmul.f32 %v1539_v20, %v1507_v51  ;;  %v1572_v56 = vmul.f32 %v1540_v46, %v1508_v52  ;;  %v1477_v57 = vmul.f32 %v3036_v23, %v1344_v54  ;;  %v1478_v58 = vmul.f32 %v3036_v23, %v1349_v15  ;;  %2468 = vmatmul.mubr.msk.bf16.vlgmr.msra.gmra.mrb[0].mxu1 %vm712_vm0, %v1600_v50  ;;  %v2709_v51 = vld [vmem:[%s2859_s29 + $0x40] sm:$0xff]  }
 0x212   : > { %v1550_v46 = vunpack.c.h.bf16 %v2708_v42  ;;  %v1551_v52 = vunpack.c.l.bf16 %v2709_v51 }
 0x213   : > { %v1601_v59 = vpack.c.bf16 %v1572_v56, %v1571_v21  ;;  %v1509_v60 = vadd.f32 1.0, %v1477_v57  ;;  %v1510_v61 = vadd.f32 1.0, %v1478_v58  ;;  %v1552_v21 = vunpack.c.h.bf16 %v2709_v51 }
 0x214   : > { %v1354_v62 = vpop.permute.xlu1 %1353 }
 0x215   : > { %v1573_v63 = vmul.f32 %v1541_v53, %v1509_v60  ;;  %v1574_v0 = vmul.f32 %v1542_v55, %v1510_v61  ;;  %v1479_v28 = vmul.f32 %v3036_v23, %v1354_v62  ;;  %v1359_v2 = vpop.permute.xlu0 %1358  ;;  %2471 = vmatprep.mubr.msk.bf16.mxu1 %vm712_vm0, %v1601_v59  ;;  %v2710_v61 = vld [vmem:[%s2859_s29 + $0x48] sm:$0xff]  }
 0x216   : > { %v1480_v6 = vmul.f32 %v3036_v23, %v1359_v2  ;;  %v1553_v62 = vunpack.c.l.bf16 %v2710_v61  ;;  %v1554_v2 = vunpack.c.h.bf16 %v2710_v61 }
 0x217   : > { %v1602_v7 = vpack.c.bf16 %v1574_v0, %v1573_v63  ;;  %v1511_v8 = vadd.f32 1.0, %v1479_v28 }
 0x218   : > { %v1512_v10 = vadd.f32 1.0, %v1480_v6  ;;  %v1364_v11 = vpop.permute.xlu1 %1363 }
 0x219   : > { %v1575_v12 = vmul.f32 %v1543_v1, %v1511_v8  ;;  %v1481_v30 = vmul.f32 %v3036_v23, %v1364_v11  ;;  %v1369_v14 = vpop.permute.xlu0 %1368  ;;  %2472 = vmatmul.mubr.msk.bf16.gmra.mrb[4].mxu1 %vm712_vm0, %v1602_v7 }
 0x21a   : > { %v1576_v16 = vmul.f32 %v1544_v4, %v1512_v10  ;;  %v1482_v19 = vmul.f32 %v3036_v23, %v1369_v14  ;;  %v2711_v4 = vld [vmem:[%s2859_s29 + $0x50] sm:$0xff]  }
 0x21b   : > { %v1513_v24 = vadd.f32 1.0, %v1481_v30  ;;  %v1555_v6 = vunpack.c.l.bf16 %v2711_v4 }
 0x21c   : > { %v1603_v25 = vpack.c.bf16 %v1576_v16, %v1575_v12  ;;  %v1514_v26 = vadd.f32 1.0, %v1482_v19  ;;  %v1374_v27 = vpop.permute.xlu1 %1373  ;;  %v1556_v16 = vunpack.c.h.bf16 %v2711_v4 }
 0x21d   : > { %v1577_v29 = vmul.f32 %v1545_v13, %v1513_v24  ;;  %v1483_v35 = vmul.f32 %v3036_v23, %v1374_v27  ;;  %v1379_v33 = vpop.permute.xlu0 %1378 }
 0x21e   : > { %v1578_v34 = vmul.f32 %v1546_v18, %v1514_v26  ;;  %v1484_v37 = vmul.f32 %v3036_v23, %v1379_v33  ;;  %2475 = vmatprep.mubr.msk.bf16.mxu1 %vm712_vm0, %v1603_v25  ;;  %v2712_v18 = vld [vmem:[%s2859_s29 + $0x58] sm:$0xff]  }
 0x21f   : > { %v1515_v38 = vadd.f32 1.0, %v1483_v35  ;;  %v1557_v19 = vunpack.c.l.bf16 %v2712_v18  ;;  %v1558_v33 = vunpack.c.h.bf16 %v2712_v18 }
 0x220   : > { %v1604_v5 = vpack.c.bf16 %v1578_v34, %v1577_v29  ;;  %v1516_v39 = vadd.f32 1.0, %v1484_v37  ;;  %v1384_v40 = vpop.permute.xlu1 %1383 }
 0x221   : > { %v1579_v41 = vmul.f32 %v1547_v32, %v1515_v38  ;;  %v1485_v44 = vmul.f32 %v3036_v23, %v1384_v40  ;;  %v1389_v20 = vpop.permute.xlu0 %1388 }
 0x222   : > { %v1580_v45 = vmul.f32 %v1548_v36, %v1516_v39  ;;  %v1486_v47 = vmul.f32 %v3036_v23, %v1389_v20  ;;  %2476 = vmatmul.mubr.msk.bf16.gmra.mrb[8].mxu1 %vm712_vm0, %v1604_v5  ;;  %v2713_v39 = vld [vmem:[%s2859_s29 + $0x60] sm:$0xff]  }
 0x223   : > { %v1517_v48 = vadd.f32 1.0, %v1485_v44  ;;  %v1559_v40 = vunpack.c.l.bf16 %v2713_v39  ;;  %v1560_v20 = vunpack.c.h.bf16 %v2713_v39 }
 0x224   : > { %v1605_v9 = vpack.c.bf16 %v1580_v45, %v1579_v41  ;;  %v1518_v49 = vadd.f32 1.0, %v1486_v47  ;;  %v1394_v22 = vpop.permute.xlu1 %1393 }
 0x225   : > { %v1581_v50 = vmul.f32 %v1549_v43, %v1517_v48  ;;  %v1487_v53 = vmul.f32 %v3036_v23, %v1394_v22 }
 0x226   : > { %v1582_v54 = vmul.f32 %v1550_v46, %v1518_v49  ;;  %v1399_v55 = vpop.permute.xlu0 %1398  ;;  %2479 = vmatprep.mubr.msk.bf16.mxu1 %vm712_vm0, %v1605_v9  ;;  %v2714_v49 = vld [vmem:[%s2859_s29 + $0x68] sm:$0xff]  }
 0x227   : > { %v1519_v15 = vadd.f32 1.0, %v1487_v53  ;;  %v1488_v56 = vmul.f32 %v3036_v23, %v1399_v55  ;;  %v1561_v22 = vunpack.c.l.bf16 %v2714_v49 }
 0x228   : > { %v1606_v57 = vpack.c.bf16 %v1582_v54, %v1581_v50  ;;  %v1404_v58 = vpop.permute.xlu1 %1403  ;;  %v1562_v54 = vunpack.c.h.bf16 %v2714_v49 }
 0x229   : > { %v1583_v59 = vmul.f32 %v1551_v52, %v1519_v15  ;;  %v1520_v60 = vadd.f32 1.0, %v1488_v56  ;;  %v1489_v63 = vmul.f32 %v3036_v23, %v1404_v58  ;;  %v2715_v15 = vld [vmem:[%s2859_s29 + $0x70] sm:$0xff]  }
 0x22a   : > { %v1409_v0 = vpop.permute.xlu0 %1408  ;;  %2480 = vmatmul.mubr.msk.bf16.gmra.mrb[12].mxu1 %vm712_vm0, %v1606_v57 }
 0x22b   : > { %v1584_v1 = vmul.f32 %v1552_v21, %v1520_v60  ;;  %v1521_v28 = vadd.f32 1.0, %v1489_v63  ;;  %v1490_v3 = vmul.f32 %v3036_v23, %v1409_v0  ;;  %v1563_v21 = vunpack.c.l.bf16 %v2715_v15 }
 0x22c   : > { %v1414_v7 = vpop.permute.xlu1 %1413  ;;  %v1564_v0 = vunpack.c.h.bf16 %v2715_v15 }
 0x22d   : > { %v1607_v8 = vpack.c.bf16 %v1584_v1, %v1583_v59  ;;  %v1585_v10 = vmul.f32 %v1553_v62, %v1521_v28  ;;  %v1522_v11 = vadd.f32 1.0, %v1490_v3  ;;  %v1491_v12 = vmul.f32 %v3036_v23, %v1414_v7  ;;  %v2716_v28 = vld [vmem:[%s2859_s29 + $0x78] sm:$0xff]  }
 0x22e   : > { %v1419_v13 = vpop.permute.xlu0 %1418 }
 0x22f   : > { %v1586_v30 = vmul.f32 %v1554_v2, %v1522_v11  ;;  %v1523_v14 = vadd.f32 1.0, %v1491_v12  ;;  %v1492_v17 = vmul.f32 %v3036_v23, %v1419_v13  ;;  %2483 = vmatprep.mubr.msk.bf16.mxu1 %vm712_vm0, %v1607_v8  ;;  %v1565_v2 = vunpack.c.l.bf16 %v2716_v28 }
 0x230   : > { %v1424_v24 = vpop.permute.xlu1 %1423  ;;  %v1566_v13 = vunpack.c.h.bf16 %v2716_v28 }
 0x231   : > { %v1608_v25 = vpack.c.bf16 %v1586_v30, %v1585_v10  ;;  %v1587_v26 = vmul.f32 %v1555_v6, %v1523_v14  ;;  %v1524_v27 = vadd.f32 1.0, %v1492_v17  ;;  %v1493_v29 = vmul.f32 %v3036_v23, %v1424_v24  ;;  %v3111_v24 = vld [vmem:[%s3267_s8] ss:$0 sm:$0xff] }
 0x232   : > { %v1429_v31 = vpop.permute.xlu0 %1428 }
 0x233   : > { %v1588_v32 = vmul.f32 %v1556_v16, %v1524_v27  ;;  %v1525_v35 = vadd.f32 1.0, %v1493_v29  ;;  %v1494_v34 = vmul.f32 %v3036_v23, %v1429_v31  ;;  %2484 = vmatmul.mubr.msk.bf16.gmra.mrb[16].mxu1 %vm712_vm0, %v1608_v25 }
 0x235   : > { %v1609_v36 = vpack.c.bf16 %v1588_v32, %v1587_v26  ;;  %v1589_v37 = vmul.f32 %v1557_v19, %v1525_v35  ;;  %v1526_v38 = vadd.f32 1.0, %v1494_v34  ;;  %v1434_v5 = vpop.permute.xlu1 %1433 }
 0x236   : > { %v1495_v41 = vmul.f32 %v3036_v23, %v1434_v5 }
 0x237   : > { %v1590_v42 = vmul.f32 %v1558_v33, %v1526_v38  ;;  %v1439_v43 = vpop.permute.xlu0 %1438  ;;  %2487 = vmatprep.mubr.msk.bf16.mxu1 %vm712_vm0, %v1609_v36 }
 0x238   : > { %v1527_v44 = vadd.f32 1.0, %v1495_v41  ;;  %v1496_v45 = vmul.f32 %v3036_v23, %v1439_v43 }
 0x239   : > { %v1610_v46 = vpack.c.bf16 %v1590_v42, %v1589_v37  ;;  %v1444_v47 = vpop.permute.xlu1 %1443 }
 0x23a   : > { %v1591_v48 = vmul.f32 %v1559_v40, %v1527_v44  ;;  %v1528_v9 = vadd.f32 1.0, %v1496_v45  ;;  %v1497_v50 = vmul.f32 %v3036_v23, %v1444_v47 }
 0x23b   : > { %v1449_v51 = vpop.permute.xlu0 %1448  ;;  %2488 = vmatmul.mubr.msk.bf16.gmra.mrb[20].mxu1 %vm712_vm0, %v1610_v46 }
 0x23c   : > { %v1592_v52 = vmul.f32 %v1560_v20, %v1528_v9  ;;  %v1529_v53 = vadd.f32 1.0, %v1497_v50  ;;  %v1498_v55 = vmul.f32 %v3036_v23, %v1449_v51 }
 0x23d   : > { %v1454_v56 = vpop.permute.xlu1 %1453 }
 0x23e   : > { %v1611_v57 = vpack.c.bf16 %v1592_v52, %v1591_v48  ;;  %v1593_v58 = vmul.f32 %v1561_v22, %v1529_v53  ;;  %v1530_v59 = vadd.f32 1.0, %v1498_v55  ;;  %v1499_v60 = vmul.f32 %v3036_v23, %v1454_v56 }
 0x23f   : > { %v1459_v61 = vpop.permute.xlu0 %1458 }
 0x240   : > { %v1594_v62 = vmul.f32 %v1562_v54, %v1530_v59  ;;  %v1531_v63 = vadd.f32 1.0, %v1499_v60  ;;  %v1500_v1 = vmul.f32 %v3036_v23, %v1459_v61  ;;  %2491 = vmatprep.mubr.msk.bf16.mxu1 %vm712_vm0, %v1611_v57 }
 0x241   : > { %v1464_v3 = vpop.permute.xlu1 %1463 }
 0x242   : > { %v1612_v4 = vpack.c.bf16 %v1594_v62, %v1593_v58  ;;  %v1595_v6 = vmul.f32 %v1563_v21, %v1531_v63  ;;  %v1532_v7 = vadd.f32 1.0, %v1500_v1  ;;  %v1501_v8 = vmul.f32 %v3036_v23, %v1464_v3 }
 0x243   : > { %v1469_v10 = vpop.permute.xlu0 %1468 }
 0x244   : > { %v1596_v11 = vmul.f32 %v1564_v0, %v1532_v7  ;;  %v1533_v12 = vadd.f32 1.0, %v1501_v8  ;;  %v1502_v30 = vmul.f32 %v3036_v23, %v1469_v10  ;;  %2492 = vmatmul.mubr.msk.bf16.gmra.mrb[24].mxu1 %vm712_vm0, %v1612_v4  ;;  %v3116_v23 = vld [vmem:[%s3268_s9] ss:$0 sm:$0xff] }
 0x246   : > { %v1613_v14 = vpack.c.bf16 %v1596_v11, %v1595_v6  ;;  %v1597_v16 = vmul.f32 %v1565_v2, %v1533_v12  ;;  %v1534_v17 = vadd.f32 1.0, %v1502_v30 }
 0x248   : > { %v1598_v18 = vmul.f32 %v1566_v13, %v1534_v17  ;;  %2495 = vmatprep.mubr.msk.bf16.mxu1 %vm712_vm0, %v1613_v14 }
 0x24a   : > { %v1614_v19 = vpack.c.bf16 %v1598_v18, %v1597_v16 }
 0x24c   : > { %2496 = vmatmul.mubr.msk.bf16.gmra.mrb[28].mxu1 %vm712_vm0, %v1614_v19 }
 0x2e4   : > { %v2469_v25 = vpop.f32.mrb[0].mxu1 }
 0x2e5   : > { %v1838_v26 = vmul.f32 %v2469_v25, %v3111_v24  ;;  %v1702_v27 = vpop.f32.mrb[1].mxu1 }
 0x2e6   : > { %v1836_v29 = vmul.f32 %v3111_v24, %v1702_v27  ;;  %v2470_v31 = vpop.f32.mrb[2].mxu1 }
 0x2e7   : > { %v1877_v32 = vadd.f32 %v3116_v23, %v1838_v26  ;;  %v1839_v35 = vmul.f32 %v2470_v31, %v3111_v24  ;;  %v1705_v33 = vpop.f32.mrb[3].mxu1 }
 0x2e8   : > { %v1875_v34 = vadd.f32 %v3116_v23, %v1836_v29  ;;  %v1837_v36 = vmul.f32 %v3111_v24, %v1705_v33 }
 0x2e9   : > { %v1909_v37 = vmax.f32 %v1877_v32, 0.0  ;;  %v1878_v38 = vadd.f32 %v3116_v23, %v1839_v35 }
 0x2ea   : > { %v1907_v5 = vmax.f32 %v1875_v34, 0.0  ;;  %v1876_v39 = vadd.f32 %v3116_v23, %v1837_v36 }
 0x2eb   : > { %v2367_v40 = vpack.c.bf16 %v1909_v37, %v1909_v37  ;;  %v1910_v41 = vmax.f32 %v1878_v38, 0.0 }
 0x2ec   : > { %v2365_v42 = vpack.c.bf16 %v1907_v5, %v1907_v5  ;;  %v1908_v43 = vmax.f32 %v1876_v39, 0.0  ;;  %v2473_v44 = vpop.f32.mrb[4].mxu1 }
 0x2ed   : > { %2070 = vst.msk [vmem:[%s3129_s6 + $0x8] sm:$0xf] %vm2067_vm3, %v2367_v40  ;;  %v2368_v20 = vpack.c.bf16 %v1910_v41, %v1910_v41  ;;  %v1842_v45 = vmul.f32 %v2473_v44, %v3111_v24  ;;  %v1718_v46 = vpop.f32.mrb[5].mxu1 }
 0x2ee   : > { %2068 = vst.msk [vmem:[%s3129_s6] sm:$0xf] %vm2067_vm3, %v2365_v42  ;;  %v2366_v47 = vpack.c.bf16 %v1908_v43, %v1908_v43  ;;  %v1840_v48 = vmul.f32 %v3111_v24, %v1718_v46  ;;  %v2474_v9 = vpop.f32.mrb[6].mxu1 }
 0x2ef   : > { %2071 = vst.msk [vmem:[%s3129_s6 + $0xc] sm:$0xf] %vm2067_vm3, %v2368_v20  ;;  %v1881_v49 = vadd.f32 %v3116_v23, %v1842_v45  ;;  %v1843_v22 = vmul.f32 %v2474_v9, %v3111_v24  ;;  %v1721_v50 = vpop.f32.mrb[7].mxu1 }
 0x2f0   : > { %2069 = vst.msk [vmem:[%s3129_s6 + $0x4] sm:$0xf] %vm2067_vm3, %v2366_v47  ;;  %v1879_v51 = vadd.f32 %v3116_v23, %v1840_v48  ;;  %v1841_v52 = vmul.f32 %v3111_v24, %v1721_v50 }
 0x2f1   : > { %v1913_v53 = vmax.f32 %v1881_v49, 0.0  ;;  %v1882_v54 = vadd.f32 %v3116_v23, %v1843_v22 }
 0x2f2   : > { %v1911_v55 = vmax.f32 %v1879_v51, 0.0  ;;  %v1880_v15 = vadd.f32 %v3116_v23, %v1841_v52 }
 0x2f3   : > { %v2371_v21 = vpack.c.bf16 %v1913_v53, %v1913_v53  ;;  %v1914_v56 = vmax.f32 %v1882_v54, 0.0 }
 0x2f4   : > { %v2369_v57 = vpack.c.bf16 %v1911_v55, %v1911_v55  ;;  %v1912_v58 = vmax.f32 %v1880_v15, 0.0 }
 0x2f5   : > { %2074 = vst.msk [vmem:[%s3129_s6 + $0x18] sm:$0xf] %vm2067_vm3, %v2371_v21  ;;  %v2372_v59 = vpack.c.bf16 %v1914_v56, %v1914_v56  ;;  %v2477_v60 = vpop.f32.mrb[8].mxu1 }
 0x2f6   : > { %2072 = vst.msk [vmem:[%s3129_s6 + $0x10] sm:$0xf] %vm2067_vm3, %v2369_v57  ;;  %v2370_v61 = vpack.c.bf16 %v1912_v58, %v1912_v58  ;;  %v1846_v62 = vmul.f32 %v2477_v60, %v3111_v24  ;;  %v1734_v63 = vpop.f32.mrb[9].mxu1 }
 0x2f7   : > { %2075 = vst.msk [vmem:[%s3129_s6 + $0x1c] sm:$0xf] %vm2067_vm3, %v2372_v59  ;;  %v1844_v0 = vmul.f32 %v3111_v24, %v1734_v63  ;;  %v2478_v1 = vpop.f32.mrb[10].mxu1 }
 0x2f8   : > { %2073 = vst.msk [vmem:[%s3129_s6 + $0x14] sm:$0xf] %vm2067_vm3, %v2370_v61  ;;  %v1885_v28 = vadd.f32 %v3116_v23, %v1846_v62  ;;  %v1847_v2 = vmul.f32 %v2478_v1, %v3111_v24  ;;  %v1737_v3 = vpop.f32.mrb[11].mxu1 }
 0x2f9   : > { %v1883_v4 = vadd.f32 %v3116_v23, %v1844_v0  ;;  %v1845_v6 = vmul.f32 %v3111_v24, %v1737_v3 }
 0x2fa   : > { %v1917_v7 = vmax.f32 %v1885_v28, 0.0  ;;  %v1886_v8 = vadd.f32 %v3116_v23, %v1847_v2 }
 0x2fb   : > { %v1915_v10 = vmax.f32 %v1883_v4, 0.0  ;;  %v1884_v11 = vadd.f32 %v3116_v23, %v1845_v6 }
 0x2fc   : > { %v2375_v12 = vpack.c.bf16 %v1917_v7, %v1917_v7  ;;  %v1918_v13 = vmax.f32 %v1886_v8, 0.0 }
 0x2fd   : > { %v2373_v30 = vpack.c.bf16 %v1915_v10, %v1915_v10  ;;  %v1916_v14 = vmax.f32 %v1884_v11, 0.0  ;;  %v2481_v16 = vpop.f32.mrb[12].mxu1 }
 0x2fe   : > { %2078 = vst.msk [vmem:[%s3129_s6 + $0x28] sm:$0xf] %vm2067_vm3, %v2375_v12  ;;  %v2376_v17 = vpack.c.bf16 %v1918_v13, %v1918_v13  ;;  %v1850_v18 = vmul.f32 %v2481_v16, %v3111_v24  ;;  %v1750_v19 = vpop.f32.mrb[13].mxu1 }
 0x2ff   : > { %2076 = vst.msk [vmem:[%s3129_s6 + $0x20] sm:$0xf] %vm2067_vm3, %v2373_v30  ;;  %v2374_v25 = vpack.c.bf16 %v1916_v14, %v1916_v14  ;;  %v1848_v26 = vmul.f32 %v3111_v24, %v1750_v19  ;;  %v2482_v27 = vpop.f32.mrb[14].mxu1 }
 0x300   : > { %2079 = vst.msk [vmem:[%s3129_s6 + $0x2c] sm:$0xf] %vm2067_vm3, %v2376_v17  ;;  %v1889_v29 = vadd.f32 %v3116_v23, %v1850_v18  ;;  %v1851_v31 = vmul.f32 %v2482_v27, %v3111_v24  ;;  %v1753_v32 = vpop.f32.mrb[15].mxu1 }
 0x301   : > { %2077 = vst.msk [vmem:[%s3129_s6 + $0x24] sm:$0xf] %vm2067_vm3, %v2374_v25  ;;  %v1887_v35 = vadd.f32 %v3116_v23, %v1848_v26  ;;  %v1849_v33 = vmul.f32 %v3111_v24, %v1753_v32 }
 0x302   : > { %v1921_v34 = vmax.f32 %v1889_v29, 0.0  ;;  %v1890_v36 = vadd.f32 %v3116_v23, %v1851_v31 }
 0x303   : > { %v1919_v37 = vmax.f32 %v1887_v35, 0.0  ;;  %v1888_v38 = vadd.f32 %v3116_v23, %v1849_v33 }
 0x304   : > { %v2379_v5 = vpack.c.bf16 %v1921_v34, %v1921_v34  ;;  %v1922_v39 = vmax.f32 %v1890_v36, 0.0 }
 0x305   : > { %v2377_v40 = vpack.c.bf16 %v1919_v37, %v1919_v37  ;;  %v1920_v41 = vmax.f32 %v1888_v38, 0.0 }
 0x306   : > { %2082 = vst.msk [vmem:[%s3129_s6 + $0x38] sm:$0xf] %vm2067_vm3, %v2379_v5  ;;  %v2380_v42 = vpack.c.bf16 %v1922_v39, %v1922_v39  ;;  %v2485_v43 = vpop.f32.mrb[16].mxu1 }
 0x307   : > { %2080 = vst.msk [vmem:[%s3129_s6 + $0x30] sm:$0xf] %vm2067_vm3, %v2377_v40  ;;  %v2378_v44 = vpack.c.bf16 %v1920_v41, %v1920_v41  ;;  %v1854_v20 = vmul.f32 %v2485_v43, %v3111_v24  ;;  %v1766_v45 = vpop.f32.mrb[17].mxu1 }
 0x308   : > { %2083 = vst.msk [vmem:[%s3129_s6 + $0x3c] sm:$0xf] %vm2067_vm3, %v2380_v42  ;;  %v1852_v46 = vmul.f32 %v3111_v24, %v1766_v45  ;;  %v2486_v47 = vpop.f32.mrb[18].mxu1 }
 0x309   : > { %2081 = vst.msk [vmem:[%s3129_s6 + $0x34] sm:$0xf] %vm2067_vm3, %v2378_v44  ;;  %v1893_v48 = vadd.f32 %v3116_v23, %v1854_v20  ;;  %v1855_v9 = vmul.f32 %v2486_v47, %v3111_v24  ;;  %v1769_v49 = vpop.f32.mrb[19].mxu1 }
 0x30a   : > { %v1891_v22 = vadd.f32 %v3116_v23, %v1852_v46  ;;  %v1853_v50 = vmul.f32 %v3111_v24, %v1769_v49 }
 0x30b   : > { %v1925_v51 = vmax.f32 %v1893_v48, 0.0  ;;  %v1894_v52 = vadd.f32 %v3116_v23, %v1855_v9 }
 0x30c   : > { %v1923_v53 = vmax.f32 %v1891_v22, 0.0  ;;  %v1892_v54 = vadd.f32 %v3116_v23, %v1853_v50 }
 0x30d   : > { %v2383_v55 = vpack.c.bf16 %v1925_v51, %v1925_v51  ;;  %v1926_v15 = vmax.f32 %v1894_v52, 0.0 }
 0x30e   : > { %v2381_v21 = vpack.c.bf16 %v1923_v53, %v1923_v53  ;;  %v1924_v56 = vmax.f32 %v1892_v54, 0.0  ;;  %v2489_v57 = vpop.f32.mrb[20].mxu1 }
 0x30f   : > { %2086 = vst.msk [vmem:[%s3129_s6 + $0x48] sm:$0xf] %vm2067_vm3, %v2383_v55  ;;  %v2384_v58 = vpack.c.bf16 %v1926_v15, %v1926_v15  ;;  %v1858_v59 = vmul.f32 %v2489_v57, %v3111_v24  ;;  %v1782_v60 = vpop.f32.mrb[21].mxu1 }
 0x310   : > { %2084 = vst.msk [vmem:[%s3129_s6 + $0x40] sm:$0xf] %vm2067_vm3, %v2381_v21  ;;  %v2382_v61 = vpack.c.bf16 %v1924_v56, %v1924_v56  ;;  %v1856_v62 = vmul.f32 %v3111_v24, %v1782_v60  ;;  %v2490_v63 = vpop.f32.mrb[22].mxu1 }
 0x311   : > { %2087 = vst.msk [vmem:[%s3129_s6 + $0x4c] sm:$0xf] %vm2067_vm3, %v2384_v58  ;;  %v1897_v0 = vadd.f32 %v3116_v23, %v1858_v59  ;;  %v1859_v1 = vmul.f32 %v2490_v63, %v3111_v24  ;;  %v1785_v28 = vpop.f32.mrb[23].mxu1 }
 0x312   : > { %2085 = vst.msk [vmem:[%s3129_s6 + $0x44] sm:$0xf] %vm2067_vm3, %v2382_v61  ;;  %v1895_v2 = vadd.f32 %v3116_v23, %v1856_v62  ;;  %v1857_v3 = vmul.f32 %v3111_v24, %v1785_v28 }
 0x313   : > { %v1929_v4 = vmax.f32 %v1897_v0, 0.0  ;;  %v1898_v6 = vadd.f32 %v3116_v23, %v1859_v1 }
 0x314   : > { %v1927_v7 = vmax.f32 %v1895_v2, 0.0  ;;  %v1896_v8 = vadd.f32 %v3116_v23, %v1857_v3 }
 0x315   : > { %v2387_v10 = vpack.c.bf16 %v1929_v4, %v1929_v4  ;;  %v1930_v11 = vmax.f32 %v1898_v6, 0.0 }
 0x316   : > { %v2385_v12 = vpack.c.bf16 %v1927_v7, %v1927_v7  ;;  %v1928_v13 = vmax.f32 %v1896_v8, 0.0 }
 0x317   : > { %2090 = vst.msk [vmem:[%s3129_s6 + $0x58] sm:$0xf] %vm2067_vm3, %v2387_v10  ;;  %v2388_v30 = vpack.c.bf16 %v1930_v11, %v1930_v11  ;;  %v2493_v14 = vpop.f32.mrb[24].mxu1 }
 0x318   : > { %2088 = vst.msk [vmem:[%s3129_s6 + $0x50] sm:$0xf] %vm2067_vm3, %v2385_v12  ;;  %v2386_v16 = vpack.c.bf16 %v1928_v13, %v1928_v13  ;;  %v1862_v17 = vmul.f32 %v2493_v14, %v3111_v24  ;;  %v1798_v18 = vpop.f32.mrb[25].mxu1 }
 0x319   : > { %2091 = vst.msk [vmem:[%s3129_s6 + $0x5c] sm:$0xf] %vm2067_vm3, %v2388_v30  ;;  %v1860_v19 = vmul.f32 %v3111_v24, %v1798_v18  ;;  %v2494_v25 = vpop.f32.mrb[26].mxu1 }
 0x31a   : > { %2089 = vst.msk [vmem:[%s3129_s6 + $0x54] sm:$0xf] %vm2067_vm3, %v2386_v16  ;;  %v1901_v26 = vadd.f32 %v3116_v23, %v1862_v17  ;;  %v1863_v27 = vmul.f32 %v2494_v25, %v3111_v24  ;;  %v1801_v29 = vpop.f32.mrb[27].mxu1 }
 0x31b   : > { %v1899_v31 = vadd.f32 %v3116_v23, %v1860_v19  ;;  %v1861_v32 = vmul.f32 %v3111_v24, %v1801_v29 }
 0x31c   : > { %v1933_v35 = vmax.f32 %v1901_v26, 0.0  ;;  %v1902_v33 = vadd.f32 %v3116_v23, %v1863_v27 }
 0x31d   : > { %v1931_v34 = vmax.f32 %v1899_v31, 0.0  ;;  %v1900_v36 = vadd.f32 %v3116_v23, %v1861_v32 }
 0x31e   : > { %v2391_v37 = vpack.c.bf16 %v1933_v35, %v1933_v35  ;;  %v1934_v38 = vmax.f32 %v1902_v33, 0.0 }
 0x31f   : > { %v2389_v5 = vpack.c.bf16 %v1931_v34, %v1931_v34  ;;  %v1932_v39 = vmax.f32 %v1900_v36, 0.0  ;;  %v2497_v40 = vpop.f32.mrb[28].mxu1 }
 0x320   : > { %2094 = vst.msk [vmem:[%s3129_s6 + $0x68] sm:$0xf] %vm2067_vm3, %v2391_v37  ;;  %v2392_v41 = vpack.c.bf16 %v1934_v38, %v1934_v38  ;;  %v1866_v42 = vmul.f32 %v2497_v40, %v3111_v24  ;;  %v1814_v43 = vpop.f32.mrb[29].mxu1 }
 0x321   : > { %2092 = vst.msk [vmem:[%s3129_s6 + $0x60] sm:$0xf] %vm2067_vm3, %v2389_v5  ;;  %v2390_v44 = vpack.c.bf16 %v1932_v39, %v1932_v39  ;;  %v1864_v20 = vmul.f32 %v3111_v24, %v1814_v43  ;;  %v2498_v45 = vpop.f32.mrb[30].mxu1 }
 0x322   : > { %2095 = vst.msk [vmem:[%s3129_s6 + $0x6c] sm:$0xf] %vm2067_vm3, %v2392_v41  ;;  %v1905_v46 = vadd.f32 %v3116_v23, %v1866_v42  ;;  %v1867_v47 = vmul.f32 %v2498_v45, %v3111_v24  ;;  %v1817_v48 = vpop.f32.mrb[31].mxu1 }
 0x323   : > { %2093 = vst.msk [vmem:[%s3129_s6 + $0x64] sm:$0xf] %vm2067_vm3, %v2390_v44  ;;  %v1903_v9 = vadd.f32 %v3116_v23, %v1864_v20  ;;  %v1865_v49 = vmul.f32 %v3111_v24, %v1817_v48 }
 0x324   : > { %v1937_v22 = vmax.f32 %v1905_v46, 0.0  ;;  %v1906_v50 = vadd.f32 %v3116_v23, %v1867_v47 }
 0x325   : > { %v1935_v51 = vmax.f32 %v1903_v9, 0.0  ;;  %v1904_v52 = vadd.f32 %v3116_v23, %v1865_v49 }
 0x326   : > { %v2395_v53 = vpack.c.bf16 %v1937_v22, %v1937_v22  ;;  %v1938_v54 = vmax.f32 %v1906_v50, 0.0 }
 0x327   : > { %v2393_v55 = vpack.c.bf16 %v1935_v51, %v1935_v51  ;;  %v1936_v15 = vmax.f32 %v1904_v52, 0.0 }
 0x328   : > { %2098 = vst.msk [vmem:[%s3129_s6 + $0x78] sm:$0xf] %vm2067_vm3, %v2395_v53  ;;  %v2396_v21 = vpack.c.bf16 %v1938_v54, %v1938_v54 }
 0x329   : > { %2096 = vst.msk [vmem:[%s3129_s6 + $0x70] sm:$0xf] %vm2067_vm3, %v2393_v55  ;;  %v2394_v56 = vpack.c.bf16 %v1936_v15, %v1936_v15 }
 0x32a   : > { %2099 = vst.msk [vmem:[%s3129_s6 + $0x7c] sm:$0xf] %vm2067_vm3, %v2396_v21 }
 0x32b   : > { %2097 = vst.msk [vmem:[%s3129_s6 + $0x74] sm:$0xf] %vm2067_vm3, %v2394_v56 }
 0x32c PF: > { %s26_s21 = sadd.s32 1, %s2739_s21   ;;  %s3272_s19 = smov %s2735_s20 }
 0x32d   : > { %p23_p5 = scmp.ge.s32.totalorder %s26_s21, 4   ;;  %s3273_s20 = smov %s3275_s4 }
 0x32f   :  { %25 = sbr.rel (!%p23_p5) target bundleno = 4 (0x4), region = 96 }

// kernel: _lambda_.7
= control target key start
LH: loop header
LB: loop body
LE: loop exit
PB: predicated region body
PF: predicated region fallthrough
CT: control target
= control target key end

     0   :  { %s2913_s18 = smov 0   ;;  %s3898_s0 = inlined_call_operand.vmem [shape: bf16[2,16,16,8], index: 0, kind: input, shape index: {}]   ;;  %s3899_s1 = inlined_call_operand.vmem [shape: bf16[2,16,16,8], index: 1, kind: input, shape index: {}]   ;;  %s3900_s2 = inlined_call_operand.vmem [shape: bf16[3,48,8], index: 2, kind: input, shape index: {}]   ;;  %s3901_s3 = inlined_call_operand.vmem [shape: f32[1,8], index: 3, kind: input, shape index: {}]   ;;  %s3902_s4 = inlined_call_operand.vmem [shape: f32[1,8], index: 4, kind: input, shape index: {}]   ;;  %s3903_s5 = inlined_call_operand.vmem [shape: bf16[2,16,16,8], index: 5, kind: output, shape index: {}]  }
   0x1 LB: > { %s2390_s19 = sadd.s32 4294967295, %s2875_s18   ;;  %p2394_p0 = scmp.ge.s32.totalorder %s2875_s18, 1  ;;  %s2875_s18 = sphi %s2913_s18, %s15_s18  }
   0x2   : > { %p197_p1 = scmp.lt.s32.totalorder %s2875_s18, 3 }
   0x4   : > { %p198_p2 = pnand %p2394_p0, %p197_p1 }
   0x5   : > { %p2921_p3 = scmp.lt.s32.totalorder (!%p198_p2), %s2390_s19, 1  ;;  %vm310_vm0 = vcmask (!%p198_p2), 392192   ;;  %v2877_v0 = vmov (!%p198_p2), 0   ;;  %s2878_s25 = smov (!%p198_p2), 8   ;;  %vm538_vm1 = vcmask (!%p198_p2), 64512   ;;  %vm637_vm4 = vcmask (!%p198_p2), 130112  }
   0x6   : > { %201 = sbr.rel (%p198_p2) target bundleno = 553 (0x229), region = 40  ;;  %312 = vst.msk [vmem:[#allocation2 + $0x8] sm:$0xff] (!%p198_p2), %vm310_vm0, %v2877_v0  ;;  %311 = vst.msk [vmem:[#allocation2] sm:$0xff] (!%p198_p2), %vm310_vm0, %v2877_v0  ;;  %s2879_s29 = smov (!%p198_p2), 16   ;;  %vm539_vm2 = vsmask.f32 (!%p198_p2), 7938 }
   0x7   : > { %313 = vst.msk [vmem:[#allocation2 + $0x10] sm:$0xff] (!%p198_p2), %vm310_vm0, %v2877_v0  ;;  %314 = vst.msk [vmem:[#allocation2 + $0x18] sm:$0xff] (!%p198_p2), %vm310_vm0, %v2877_v0  ;;  %s2880_s30 = smov (!%p198_p2), 24   ;;  %s2881_s6 = smov (!%p198_p2), 32   ;;  %vm734_vm5 = vcmask (!%p198_p2), 195712   ;;  %vm1025_vm7 = vcmask (!%p198_p2), 261312  }
   0x8   : > { %315 = vst.msk [vmem:[#allocation2 + $0x20] sm:$0xff] (!%p198_p2), %vm310_vm0, %v2877_v0  ;;  %316 = vst.msk [vmem:[#allocation2 + $0x28] sm:$0xff] (!%p198_p2), %vm310_vm0, %v2877_v0  ;;  %s2882_s7 = smov (!%p198_p2), 40   ;;  %vm735_vm6 = vsmask.f32 (!%p198_p2), 7424  ;;  %vm1123_vm10 = vcmask (!%p198_p2), 326912  }
   0x9   : > { %317 = vst.msk [vmem:[#allocation2 + $0x30] sm:$0xff] (!%p198_p2), %vm310_vm0, %v2877_v0  ;;  %318 = vst.msk [vmem:[#allocation2 + $0x38] sm:$0xff] (!%p198_p2), %vm310_vm0, %v2877_v0  ;;  %vm1220_vm11 = vcmask (!%p198_p2), 392512   ;;  %vm2290_vm13 = vcmask (!%p198_p2), 60416  }
   0xa   : > { %319 = vst.msk [vmem:[#allocation2 + $0x40] sm:$0xff] (!%p198_p2), %vm310_vm0, %v2877_v0  ;;  %320 = vst.msk [vmem:[#allocation2 + $0x48] sm:$0xff] (!%p198_p2), %vm310_vm0, %v2877_v0 }
   0xb   : > { %321 = vst.msk [vmem:[#allocation2 + $0x50] sm:$0xff] (!%p198_p2), %vm310_vm0, %v2877_v0  ;;  %322 = vst.msk [vmem:[#allocation2 + $0x58] sm:$0xff] (!%p198_p2), %vm310_vm0, %v2877_v0 }
   0xc   : > { %323 = vst.msk [vmem:[#allocation2 + $0x60] sm:$0xff] (!%p198_p2), %vm310_vm0, %v2877_v0  ;;  %324 = vst.msk [vmem:[#allocation2 + $0x68] sm:$0xff] (!%p198_p2), %vm310_vm0, %v2877_v0 }
   0xd   : > { %325 = vst.msk [vmem:[#allocation2 + $0x70] sm:$0xff] %vm310_vm0, %v2877_v0  ;;  %326 = vst.msk [vmem:[#allocation2 + $0x78] sm:$0xff] %vm310_vm0, %v2877_v0  ;;  %s3914_s19 = smov (!%p2921_p3, %s2390_s19), 1  ;;  %v541_v62 = vld [vmem:[#allocation2 + $0x8] sm:$0xff] }
   0xe   : > { %327 = vst.msk [vmem:[#allocation2 + $0x80] sm:$0xff] %vm310_vm0, %v2877_v0  ;;  %328 = vst.msk [vmem:[#allocation2 + $0x88] sm:$0xff] %vm310_vm0, %v2877_v0  ;;  %s2945_s21 = sshll.u32 %s3914_s19, 7  ;;  %v547_v63 = vld [vmem:[#allocation2 + $0x18] sm:$0xff] }
   0xf   : > { %s2951_s24 = scalar_lea.vmem %s3898_s0, %s2945_s21  ;;  %s2972_s28 = scalar_lea.vmem %s3899_s1, %s2945_s21  ;;  %vm3063_vm3 = vmand %vm538_vm1, %vm539_vm2 }
  0x10   : > { %v2954_v1 = vld [vmem:[%s2951_s24] sm:$0xff]   ;;  %v2957_v2 = vld [vmem:[%s2951_s24 + $0x10] sm:$0xff]   ;;  %v2962_v3 = vld [vmem:[%s2951_s24 + $0x8] sm:$0xff]   ;;  %s3747_s9 = scalar_lea.vmem %s3903_s5, %s2945_s21 }
  0x11   : > { %589 = vrot.lane.b32.xlu0 %v2954_v1, %s2878_s25  ;;  %593 = vrot.lane.b32.xlu1 %v2957_v2, %s2878_s25  ;;  %v410_v4 = vshrl.u32 %v2954_v1, 16  ;;  %v413_v5 = vshll.u32 %v2954_v1, 16  ;;  %v420_v6 = vshll.u32 %v2962_v3, 16  ;;  %v417_v8 = vshrl.u32 %v2962_v3, 16  ;;  %v2982_v10 = vld [vmem:[%s2951_s24 + $0x18] sm:$0xff]   ;;  %v2987_v13 = vld [vmem:[%s2972_s28] sm:$0xff]   ;;  %vm3432_vm8 = vmand %vm734_vm5, %vm735_vm6 }
  0x12   : > { %v427_v9 = vshll.u32 %v2957_v2, 16  ;;  %v424_v14 = vshrl.u32 %v2957_v2, 16  ;;  %v434_v17 = vshll.u32 %v2982_v10, 16  ;;  %v2995_v18 = vld [vmem:[%s2972_s28 + $0x8] sm:$0xff]   ;;  %v3000_v19 = vld [vmem:[%s2951_s24 + $0x20] sm:$0xff]   ;;  %v866_v20 = vshrl.u32 %v2987_v13, 16  ;;  %vm3443_vm9 = vmand %vm1025_vm7, %vm539_vm2 }
  0x13   : > { %v654_v7 = vrot.slane %v413_v5, 1  ;;  %v656_v11 = vrot.slane %v420_v6, 1  ;;  %v431_v21 = vshrl.u32 %v2982_v10, 16  ;;  %v873_v24 = vshrl.u32 %v2995_v18, 16  ;;  %v3011_v25 = vld [vmem:[%s2951_s24 + $0x28] sm:$0xff]   ;;  %v3026_v34 = vld [vmem:[%s2972_s28 + $0x10] sm:$0xff]   ;;  %vm3502_vm12 = vmand %vm1220_vm11, %vm735_vm6 }
  0x14   : > { %v658_v15 = vrot.slane %v427_v9, 1  ;;  %v660_v23 = vrot.slane %v434_v17, 1  ;;  %v868_v26 = vrot.slane %v866_v20, 7  ;;  %v869_v27 = vshll.u32 %v2987_v13, 16  ;;  %v3032_v38 = vld [vmem:[%s2972_s28 + $0x18] sm:$0xff]   ;;  %v3037_v39 = vld [vmem:[%s2951_s24 + $0x30] sm:$0xff]  }
  0x15   : > { %591 = vrot.lane.b32.xlu0 %v2962_v3, %s2878_s25  ;;  %v655_v12 = vor.u32 %v654_v7, %v410_v4  ;;  %v657_v16 = vor.u32 %v656_v11, %v417_v8  ;;  %v875_v29 = vrot.slane %v873_v24, 7  ;;  %v876_v30 = vshll.u32 %v2995_v18, 16  ;;  %v3047_v46 = vld [vmem:[%s2951_s24 + $0x38] sm:$0xff]   ;;  %v544_v3 = vld [vmem:[#allocation2 + $0x10] sm:$0xff]  ;;  %v550_v7 = vld [vmem:[#allocation2 + $0x20] sm:$0xff] }
  0x16   : > { %v659_v22 = vor.u32 %v658_v15, %v424_v14  ;;  %v661_v28 = vor.u32 %v660_v23, %v431_v21  ;;  %v871_v31 = vor.u32 %v869_v27, %v868_v26  ;;  %v441_v33 = vshll.u32 %v3000_v19, 16  ;;  %v3088_v15 = vld [vmem:[%s2951_s24 + $0x40] sm:$0xff]  }
  0x17   : > { %686 = vrot.lane.b32.xlu1 %v655_v12, %s2879_s29  ;;  %v878_v32 = vor.u32 %v876_v30, %v875_v29  ;;  %v438_v35 = vshrl.u32 %v3000_v19, 16  ;;  %v448_v36 = vshll.u32 %v3011_v25, 16  ;;  %v880_v40 = vshrl.u32 %v3026_v34, 16  ;;  %v553_v12 = vld [vmem:[#allocation2 + $0x28] sm:$0xff] }
  0x18   : > { %v662_v37 = vrot.slane %v441_v33, 1  ;;  %v412_v41 = vrot.slane %v410_v4, 7  ;;  %v445_v42 = vshrl.u32 %v3011_v25, 16  ;;  %v887_v45 = vshrl.u32 %v3032_v38, 16 }
  0x19   : > { %595 = vrot.lane.b32.xlu0 %v2982_v10, %s2878_s25  ;;  %v664_v44 = vrot.slane %v448_v36, 1  ;;  %v882_v47 = vrot.slane %v880_v40, 7  ;;  %v883_v48 = vshll.u32 %v3026_v34, 16  ;;  %v426_v49 = vrot.slane %v424_v14, 7 }
  0x1a   : > { %v663_v43 = vor.u32 %v662_v37, %v438_v35  ;;  %v419_v50 = vrot.slane %v417_v8, 7  ;;  %v415_v51 = vor.u32 %v413_v5, %v412_v41  ;;  %v889_v53 = vrot.slane %v887_v45, 7 }
  0x1b   : > { %688 = vrot.lane.b32.xlu1 %v657_v16, %s2879_s29  ;;  %v665_v52 = vor.u32 %v664_v44, %v445_v42  ;;  %v890_v54 = vshll.u32 %v3032_v38, 16  ;;  %v433_v55 = vrot.slane %v431_v21, 7  ;;  %v440_v56 = vrot.slane %v438_v35, 7  ;;  %v3138_v44 = vld [vmem:[%s3900_s2 + $0x8] sm:$0xff]  }
  0x1c   : > { %v885_v57 = vor.u32 %v883_v48, %v882_v47  ;;  %v429_v59 = vor.u32 %v427_v9, %v426_v49  ;;  %v422_v60 = vor.u32 %v420_v6, %v419_v50  ;;  %v447_v61 = vrot.slane %v445_v42, 7  ;;  %v559_v42 = vld [vmem:[#allocation2 + $0x38] sm:$0xff]  ;;  %v562_v50 = vld [vmem:[#allocation2 + $0x40] sm:$0xff] }
  0x1d   : > { %597 = vrot.lane.b32.xlu0 %v3000_v19, %s2878_s25  ;;  %v892_v0 = vor.u32 %v890_v54, %v889_v53  ;;  %v1140_v1 = vrot.slane %v869_v27, 1  ;;  %v542_v4 = vsel %vm3063_vm3, %v415_v51, %v541_v62  ;;  %v436_v2 = vor.u32 %v434_v17, %v433_v55  ;;  %v556_v19 = vld [vmem:[#allocation2 + $0x30] sm:$0xff]  ;;  %v3108_v27 = vld [vmem:[%s2972_s28 + $0x28] sm:$0xff]   ;;  %v2863_v51 = vld [vmem:[%s3900_s2 + $0x20] sm:$0xff]  }
  0x1e   : > { %v443_v5 = vor.u32 %v441_v33, %v440_v56  ;;  %543 = vst [vmem:[#allocation2 + $0x8] sm:$0xff] %v542_v4  ;;  %v548_v6 = vsel %vm3063_vm3, %v429_v59, %v547_v63  ;;  %v450_v8 = vor.u32 %v448_v36, %v447_v61  ;;  %v1142_v9 = vrot.slane %v876_v30, 1  ;;  %v3121_v36 = vld [vmem:[%s2951_s24 + $0x50] sm:$0xff]   ;;  %v3150_v56 = vld [vmem:[%s2951_s24 + $0x58] sm:$0xff]  }
  0x1f   : > { %690 = vrot.lane.b32.xlu1 %v659_v22, %s2879_s29  ;;  %v452_v11 = vshrl.u32 %v3037_v39, 16  ;;  %549 = vst [vmem:[#allocation2 + $0x18] sm:$0xff] %v548_v6  ;;  %v545_v10 = vsel %vm3063_vm3, %v422_v60, %v544_v3  ;;  %v1141_v14 = vor.u32 %v1140_v1, %v866_v20  ;;  %v455_v16 = vshll.u32 %v3037_v39, 16  ;;  %v3095_v22 = vld [vmem:[%s2972_s28 + $0x20] sm:$0xff]   ;;  %v3102_v20 = vld [vmem:[%s2951_s24 + $0x48] sm:$0xff]   ;;  %v3167_v63 = vld [vmem:[%s3900_s2 + $0x10] sm:$0xff]  }
  0x20   : > { %v459_v17 = vshrl.u32 %v3047_v46, 16  ;;  %546 = vst [vmem:[#allocation2 + $0x10] sm:$0xff] %v545_v10  ;;  %v551_v23 = vsel %vm3063_vm3, %v436_v2, %v550_v7  ;;  %v462_v26 = vshll.u32 %v3047_v46, 16  ;;  %v557_v29 = vsel %vm3063_vm3, %v450_v8, %v556_v19  ;;  %v2865_v3 = vld [vmem:[%s3900_s2 + $0x28] sm:$0xff]   ;;  %v568_v7 = vld [vmem:[#allocation2 + $0x50] sm:$0xff] }
  0x21   : > { %599 = vrot.lane.b32.xlu0 %v3011_v25, %s2878_s25  ;;  %v454_v21 = vrot.slane %v452_v11, 7  ;;  %552 = vst [vmem:[#allocation2 + $0x20] sm:$0xff] %v551_v23  ;;  %v1143_v30 = vor.u32 %v1142_v9, %v873_v24  ;;  %558 = vst [vmem:[#allocation2 + $0x30] sm:$0xff] %v557_v29  ;;  %v894_v35 = vshrl.u32 %v3095_v22, 16  ;;  %v469_v47 = vshll.u32 %v3088_v15, 16 }
  0x22   : > { %v461_v25 = vrot.slane %v459_v17, 7  ;;  %v480_v49 = vshrl.u32 %v3121_v36, 16  ;;  %v897_v53 = vshll.u32 %v3095_v22, 16  ;;  %v901_v55 = vshrl.u32 %v3108_v27, 16 }
  0x23   : > { %692 = vrot.lane.b32.xlu1 %v661_v28, %s2879_s29  ;;  %v466_v28 = vshrl.u32 %v3088_v15, 16  ;;  %v457_v33 = vor.u32 %v455_v16, %v454_v21  ;;  %v896_v59 = vrot.slane %v894_v35, 7  ;;  %v487_v4 = vshrl.u32 %v3150_v56, 16 }
  0x24   : > { %v464_v24 = vor.u32 %v462_v26, %v461_v25  ;;  %v482_v61 = vrot.slane %v480_v49, 7  ;;  %v483_v6 = vshll.u32 %v3121_v36, 16  ;;  %v903_v9 = vrot.slane %v901_v55, 7 }
  0x25   : > { %977 = vrot.lane.b32.xlu0 %v871_v31, %s2880_s30  ;;  %v666_v31 = vrot.slane %v455_v16, 1  ;;  %v468_v37 = vrot.slane %v466_v28, 7  ;;  %v560_v62 = vsel %vm3063_vm3, %v457_v33, %v559_v42  ;;  %v489_v10 = vrot.slane %v487_v4, 7 }
  0x26   : > { %561 = vst [vmem:[#allocation2 + $0x38] sm:$0xff] %v560_v62  ;;  %v563_v2 = vsel %vm3063_vm3, %v464_v24, %v562_v50  ;;  %v490_v16 = vshll.u32 %v3150_v56, 16  ;;  %v1144_v21 = vrot.slane %v883_v48, 1  ;;  %v1146_v29 = vrot.slane %v890_v54, 1 }
  0x27   : > { %979 = vrot.lane.b32.xlu1 %v878_v32, %s2880_s30  ;;  %v473_v32 = vshrl.u32 %v3102_v20, 16  ;;  %v471_v60 = vor.u32 %v469_v47, %v468_v37  ;;  %564 = vst [vmem:[#allocation2 + $0x40] sm:$0xff] %v563_v2  ;;  %v3237_v37 = vld [vmem:[%s2951_s24 + $0x60] sm:$0xff]   ;;  %v580_v2 = vld [vmem:[#allocation2 + $0x70] sm:$0xff] }
  0x28   : > { %v492_v23 = vor.u32 %v490_v16, %v489_v10  ;;  %v1145_v48 = vor.u32 %v1144_v21, %v880_v40  ;;  %v1147_v33 = vor.u32 %v1146_v29, %v887_v45  ;;  %v3231_v40 = vld [vmem:[%s2972_s28 + $0x38] sm:$0xff]   ;;  %v494_v24 = vshrl.u32 %v3237_v37, 16 }
  0x29   : > { %1075 = vrot.lane.b32.xlu0 %v2987_v13, %s2881_s6  ;;  %v554_v13 = vsel %vm3063_vm3, %v443_v5, %v553_v12  ;;  %v475_v41 = vrot.slane %v473_v32, 7  ;;  %v565_v5 = vld [vmem:[#allocation2 + $0x48] sm:$0xff]  ;;  %v899_v12 = vor.u32 %v897_v53, %v896_v59 }
  0x2a   : > { %555 = vst [vmem:[#allocation2 + $0x28] sm:$0xff] %v554_v13  ;;  %v571_v13 = vld [vmem:[#allocation2 + $0x58] sm:$0xff] }
  0x2b   : > { %1077 = vrot.lane.b32.xlu1 %v2995_v18, %s2881_s6  ;;  %v3128_v18 = vld [vmem:[%s3900_s2] sm:$0xff]  }
  0x2c   : > { %2668 = vmatprep.subr.bf16.mxu0 %v3128_v18 }
  0x2d   : > { %601 = vrot.lane.b32.xlu0 %v3037_v39, %s2878_s25  ;;  %v668_v39 = vrot.slane %v462_v26, 1  ;;  %2669 = vmatpush3.bf16.msra.mxu0 %v3128_v18  ;;  %v574_v26 = vld [vmem:[#allocation2 + $0x60] sm:$0xff] }
  0x2e   : > { %2670 = vmatprep.subr.bf16.mxu0 %v3138_v44 }
  0x2f   : > { %694 = vrot.lane.b32.xlu1 %v663_v43, %s2879_s29  ;;  %v2861_v43 = vld [vmem:[%s3900_s2 + $0x18] sm:$0xff]   ;;  %v669_v8 = vor.u32 %v668_v39, %v459_v17  ;;  %v915_v39 = vshrl.u32 %v3231_v40, 16 }
  0x30   : > { %2630 = vmatprep.subr.bf16.mxu1 %v2861_v43 }
  0x31   : > { %603 = vrot.lane.b32.xlu0 %v3047_v46, %s2878_s25  ;;  %2631 = vmatpush3.bf16.msra.mxu1 %v2861_v43  ;;  %v485_v46 = vor.u32 %v483_v6, %v482_v61 }
  0x32   : > { %2632 = vmatprep.subr.bf16.mxu1 %v2863_v51  ;;  %2671 = vmatpush3.bf16.msra.mxu0 %v3138_v44 }
  0x33   : > { %696 = vrot.lane.b32.xlu1 %v665_v52, %s2879_s29  ;;  %v667_v52 = vor.u32 %v666_v31, %v452_v11  ;;  %v904_v11 = vshll.u32 %v3108_v27, 16  ;;  %2672 = vmatprep.subr.bf16.mxu0 %v3167_v63  ;;  %v572_v25 = vsel %vm3063_vm3, %v485_v46, %v571_v13  ;;  %v3223_v31 = vld [vmem:[%s2972_s28 + $0x30] sm:$0xff]   ;;  %v3320_v46 = vld [vmem:[%s2951_s24 + $0x78] sm:$0xff]  }
  0x34   : > { %573 = vst [vmem:[#allocation2 + $0x58] sm:$0xff] %v572_v25  ;;  %v908_v54 = vshrl.u32 %v3223_v31, 16  ;;  %v911_v43 = vshll.u32 %v3223_v31, 16 }
  0x35   : > { %981 = vrot.lane.b32.xlu0 %v885_v57, %s2880_s30  ;;  %v476_v57 = vshll.u32 %v3102_v20, 16  ;;  %2633 = vmatpush3.bf16.msra.mxu1 %v2863_v51  ;;  %v906_v19 = vor.u32 %v904_v11, %v903_v9  ;;  %v917_v51 = vrot.slane %v915_v39, 7 }
  0x36   : > { %2634 = vmatprep.subr.bf16.mxu1 %v2865_v3  ;;  %2673 = vmatpush3.bf16.msra.mxu0 %v3167_v63  ;;  %v910_v42 = vrot.slane %v908_v54, 7 }
  0x37   : > { %983 = vrot.lane.b32.xlu1 %v892_v0, %s2880_s30  ;;  %v1270_v0 = vld [vmem:[#allocation2] sm:$0xff]  ;;  %v478_v1 = vor.u32 %v476_v57, %v475_v41  ;;  %v672_v45 = vrot.slane %v476_v57, 1  ;;  %v3247_v41 = vld [vmem:[%s2951_s24 + $0x68] sm:$0xff]  }
  0x38   : > { %2674 = vmatprep.mubr.msk.bf16.mxu0 %vm310_vm0, %v1270_v0  ;;  %v913_v59 = vor.u32 %v911_v43, %v910_v42  ;;  %v504_v61 = vshll.u32 %v3247_v41, 16  ;;  %v577_v0 = vld [vmem:[#allocation2 + $0x68] sm:$0xff] }
  0x39   : > { %1079 = vrot.lane.b32.xlu0 %v3026_v34, %s2881_s6  ;;  %v569_v17 = vsel %vm3063_vm3, %v478_v1, %v568_v7  ;;  %2635 = vmatpush3.bf16.msra.mxu1 %v2865_v3  ;;  %v670_v34 = vrot.slane %v469_v47, 1  ;;  %v496_v47 = vrot.slane %v494_v24, 7  ;;  %v673_v50 = vor.u32 %v672_v45, %v473_v32  ;;  %v3291_v7 = vld [vmem:[%s2972_s28 + $0x40] sm:$0xff]  }
  0x3a   : > { %570 = vst [vmem:[#allocation2 + $0x50] sm:$0xff] %v569_v17  ;;  %2744 = vmatprep.subr.bf16.mxu1 %v3128_v18  ;;  %v1148_v32 = vrot.slane %v897_v53, 1  ;;  %v1150_v53 = vrot.slane %v904_v11, 1  ;;  %v922_v9 = vshrl.u32 %v3291_v7, 16  ;;  %v3305_v11 = vld [vmem:[%s2951_s24 + $0x70] sm:$0xff]   ;;  %v925_v17 = vshll.u32 %v3291_v7, 16 }
  0x3b   : > { %1172 = vrot.lane.b32.xlu1 %v1141_v14, %s2882_s7  ;;  %v566_v14 = vsel %vm3063_vm3, %v471_v60, %v565_v5  ;;  %v508_v10 = vshrl.u32 %v3305_v11, 16 }
  0x3c   : > { %567 = vst [vmem:[#allocation2 + $0x48] sm:$0xff] %v566_v14  ;;  %v1149_v5 = vor.u32 %v1148_v32, %v894_v35  ;;  %v3299_v35 = vld [vmem:[%s2972_s28 + $0x48] sm:$0xff]   ;;  %v924_v14 = vrot.slane %v922_v9, 7 }
  0x3d   : > { %1081 = vrot.lane.b32.xlu0 %v3032_v38, %s2881_s6  ;;  %v671_v38 = vor.u32 %v670_v34, %v466_v28  ;;  %v497_v28 = vshll.u32 %v3237_v37, 16  ;;  %v586_v34 = vld [vmem:[#allocation2 + $0x80] sm:$0xff] }
  0x3e   : > { %v927_v25 = vor.u32 %v925_v17, %v924_v14 }
  0x3f   : > { %1174 = vrot.lane.b32.xlu1 %v1143_v30, %s2882_s7  ;;  %v575_v30 = vsel %vm3063_vm3, %v492_v23, %v574_v26  ;;  %v499_v60 = vor.u32 %v497_v28, %v496_v47  ;;  %v932_v23 = vshll.u32 %v3299_v35, 16 }
  0x40   : > { %576 = vst [vmem:[#allocation2 + $0x60] sm:$0xff] %v575_v30  ;;  %v583_v30 = vld [vmem:[#allocation2 + $0x78] sm:$0xff] }
  0x41   : > { %605 = vrot.lane.b32.xlu0 %v3088_v15, %s2878_s25  ;;  %v501_v15 = vshrl.u32 %v3247_v41, 16  ;;  %v578_v1 = vsel %vm3063_vm3, %v499_v60, %v577_v0  ;;  %v3403_v0 = vld [vmem:[%s2972_s28 + $0x68] sm:$0xff]  }
  0x42   : > { %579 = vst [vmem:[#allocation2 + $0x68] sm:$0xff] %v578_v1 }
  0x43   : > { %698 = vrot.lane.b32.xlu1 %v667_v52, %s2879_s29  ;;  %v918_v52 = vshll.u32 %v3231_v40, 16  ;;  %v503_v57 = vrot.slane %v501_v15, 7 }
  0x45   : > { %607 = vrot.lane.b32.xlu0 %v3102_v20, %s2878_s25  ;;  %v920_v20 = vor.u32 %v918_v52, %v917_v51  ;;  %v506_v62 = vor.u32 %v504_v61, %v503_v57  ;;  %v1154_v45 = vrot.slane %v918_v52, 1  ;;  %v680_v51 = vrot.slane %v504_v61, 1  ;;  %v3396_v61 = vld [vmem:[%s2972_s28 + $0x60] sm:$0xff]  }
  0x47   : > { %700 = vrot.lane.b32.xlu1 %v669_v8, %s2879_s29  ;;  %v581_v3 = vsel %vm3063_vm3, %v506_v62, %v580_v2  ;;  %v1151_v8 = vor.u32 %v1150_v53, %v901_v55  ;;  %v676_v55 = vrot.slane %v490_v16, 1  ;;  %v1155_v47 = vor.u32 %v1154_v45, %v915_v39 }
  0x48   : > { %582 = vst [vmem:[#allocation2 + $0x70] sm:$0xff] %v581_v3  ;;  %v1158_v62 = vrot.slane %v932_v23, 1  ;;  %v950_v2 = vshrl.u32 %v3396_v61, 16 }
  0x49   : > { %985 = vrot.lane.b32.xlu0 %v899_v12, %s2880_s30  ;;  %v3311_v12 = vld [vmem:[%s3900_s2 + $0x30] sm:$0xff]   ;;  %v677_v16 = vor.u32 %v676_v55, %v487_v4  ;;  %v1152_v4 = vrot.slane %v911_v43, 1 }
  0x4a   : > { %2706 = vmatprep.subr.bf16.mxu0 %v3311_v12  ;;  %v3357_v43 = vld [vmem:[%s2972_s28 + $0x50] sm:$0xff]  }
  0x4b   : > { %987 = vrot.lane.b32.xlu1 %v906_v19, %s2880_s30  ;;  %v510_v19 = vrot.slane %v508_v10, 7  ;;  %v936_v58 = vshrl.u32 %v3357_v43, 16 }
  0x4d   : > { %1083 = vrot.lane.b32.xlu0 %v3095_v22, %s2881_s6  ;;  %v674_v22 = vrot.slane %v483_v6, 1  ;;  %v929_v6 = vshrl.u32 %v3299_v35, 16  ;;  %v938_v39 = vrot.slane %v936_v58, 7 }
  0x4f   : > { %1176 = vrot.lane.b32.xlu1 %v1145_v48, %s2882_s7  ;;  %v931_v21 = vrot.slane %v929_v6, 7  ;;  %v518_v48 = vshll.u32 %v3320_v46, 16  ;;  %v1159_v3 = vor.u32 %v1158_v62, %v929_v6 }
  0x51   : > { %1085 = vrot.lane.b32.xlu0 %v3108_v27, %s2881_s6  ;;  %v675_v27 = vor.u32 %v674_v22, %v480_v49  ;;  %v511_v49 = vshll.u32 %v3305_v11, 16 }
  0x53   : > { %1178 = vrot.lane.b32.xlu1 %v1147_v33, %s2882_s7  ;;  %v513_v26 = vor.u32 %v511_v49, %v510_v19  ;;  %v682_v1 = vrot.slane %v511_v49, 1 }
  0x55   : > { %609 = vrot.lane.b32.xlu0 %v3121_v36, %s2878_s25  ;;  %v515_v36 = vshrl.u32 %v3320_v46, 16  ;;  %v584_v33 = vsel %vm3063_vm3, %v513_v26, %v583_v30  ;;  %v683_v22 = vor.u32 %v682_v1, %v508_v10 }
  0x56   : > { %585 = vst [vmem:[#allocation2 + $0x78] sm:$0xff] %v584_v33 }
  0x57   : > { %702 = vrot.lane.b32.xlu1 %v671_v38, %s2879_s29  ;;  %v517_v13 = vrot.slane %v515_v36, 7  ;;  %v1153_v38 = vor.u32 %v1152_v4, %v908_v54  ;;  %v3365_v54 = vld [vmem:[%s2972_s28 + $0x58] sm:$0xff]  }
  0x58   : > { %v946_v52 = vshll.u32 %v3365_v54, 16 }
  0x59   : > { %611 = vrot.lane.b32.xlu0 %v3150_v56, %s2878_s25  ;;  %v934_v56 = vor.u32 %v932_v23, %v931_v21  ;;  %v520_v29 = vor.u32 %v518_v48, %v517_v13  ;;  %v3439_v23 = vld [vmem:[%s2972_s28 + $0x78] sm:$0xff]  }
  0x5a   : > { %v1162_v33 = vrot.slane %v946_v52, 1 }
  0x5b   : > { %704 = vrot.lane.b32.xlu1 %v673_v50, %s2879_s29  ;;  %v587_v42 = vsel %vm3063_vm3, %v520_v29, %v586_v34  ;;  %v971_v34 = vshrl.u32 %v3439_v23, 16 }
  0x5c   : > { %588 = vst [vmem:[#allocation2 + $0x80] sm:$0xff] %v587_v42 }
  0x5d   : > { %989 = vrot.lane.b32.xlu0 %v913_v59, %s2880_s30 }
  0x5f   : > { %991 = vrot.lane.b32.xlu1 %v920_v20, %s2880_s30 }
  0x61   : > { %1087 = vrot.lane.b32.xlu0 %v3223_v31, %s2881_s6  ;;  %v678_v31 = vrot.slane %v497_v28, 1  ;;  %v939_v28 = vshll.u32 %v3357_v43, 16 }
  0x63   : > { %1180 = vrot.lane.b32.xlu1 %v1149_v5, %s2882_s7  ;;  %v679_v50 = vor.u32 %v678_v31, %v494_v24  ;;  %v941_v57 = vor.u32 %v939_v28, %v938_v39  ;;  %v1160_v21 = vrot.slane %v939_v28, 1 }
  0x65   : > { %1089 = vrot.lane.b32.xlu0 %v3231_v40, %s2881_s6  ;;  %v943_v40 = vshrl.u32 %v3365_v54, 16  ;;  %v1161_v30 = vor.u32 %v1160_v21, %v936_v58 }
  0x67   : > { %1182 = vrot.lane.b32.xlu1 %v1151_v8, %s2882_s7  ;;  %v945_v24 = vrot.slane %v943_v40, 7  ;;  %v957_v8 = vshrl.u32 %v3403_v0, 16  ;;  %v1163_v58 = vor.u32 %v1162_v33, %v943_v40 }
  0x69   : > { %613 = vrot.lane.b32.xlu0 %v3237_v37, %s2878_s25  ;;  %v681_v37 = vor.u32 %v680_v51, %v501_v15  ;;  %v1156_v15 = vrot.slane %v925_v17, 1  ;;  %v959_v6 = vrot.slane %v957_v8, 7  ;;  %v3429_v17 = vld [vmem:[%s2972_s28 + $0x70] sm:$0xff]   ;;  %v974_v51 = vshll.u32 %v3439_v23, 16 }
  0x6a   : > { %v967_v45 = vshll.u32 %v3429_v17, 16 }
  0x6b   : > { %706 = vrot.lane.b32.xlu1 %v675_v27, %s2879_s29  ;;  %v1157_v32 = vor.u32 %v1156_v15, %v922_v9  ;;  %v952_v9 = vrot.slane %v950_v2, 7  ;;  %v953_v27 = vshll.u32 %v3396_v61, 16 }
  0x6d   : > { %615 = vrot.lane.b32.xlu0 %v3247_v41, %s2878_s25  ;;  %v948_v41 = vor.u32 %v946_v52, %v945_v24  ;;  %v955_v10 = vor.u32 %v953_v27, %v952_v9  ;;  %v1164_v52 = vrot.slane %v953_v27, 1 }
  0x6f   : > { %708 = vrot.lane.b32.xlu1 %v677_v16, %s2879_s29 }
  0x71   : > { %993 = vrot.lane.b32.xlu0 %v927_v25, %s2880_s30  ;;  %v964_v25 = vshrl.u32 %v3429_v17, 16 }
  0x73   : > { %995 = vrot.lane.b32.xlu1 %v934_v56, %s2880_s30 }
  0x75   : > { %1091 = vrot.lane.b32.xlu0 %v3291_v7, %s2881_s6  ;;  %v684_v7 = vrot.slane %v518_v48, 1 }
  0x77   : > { %1184 = vrot.lane.b32.xlu1 %v1153_v38, %s2882_s7  ;;  %v966_v38 = vrot.slane %v964_v25, 7 }
  0x79   : > { %1093 = vrot.lane.b32.xlu0 %v3299_v35, %s2881_s6  ;;  %v685_v35 = vor.u32 %v684_v7, %v515_v36  ;;  %v969_v39 = vor.u32 %v967_v45, %v966_v38 }
  0x7b   : > { %1186 = vrot.lane.b32.xlu1 %v1155_v47, %s2882_s7 }
  0x7d   : > { %617 = vrot.lane.b32.xlu0 %v3305_v11, %s2878_s25  ;;  %v960_v11 = vshll.u32 %v3403_v0, 16 }
  0x7f   : > { %710 = vrot.lane.b32.xlu1 %v679_v50, %s2879_s29  ;;  %v962_v16 = vor.u32 %v960_v11, %v959_v6  ;;  %v973_v50 = vrot.slane %v971_v34, 7 }
  0x81   : > { %619 = vrot.lane.b32.xlu0 %v3320_v46, %s2878_s25  ;;  %v976_v24 = vor.u32 %v974_v51, %v973_v50 }
  0x83   : > { %v590_v59 = vpop.permute.xlu0 %589  ;;  %712 = vrot.lane.b32.xlu1 %v681_v37, %s2879_s29  ;;  %v594_v60 = vpop.permute.xlu1 %593 }
  0x84   : > { %638 = vst.msk [vmem:[#allocation2 + $0x8] sm:$0xff] %vm637_vm4, %v590_v59  ;;  %640 = vst.msk [vmem:[#allocation2 + $0x18] sm:$0xff] %vm637_vm4, %v594_v60  ;;  %v1166_v59 = vrot.slane %v960_v11, 1  ;;  %v1168_v60 = vrot.slane %v967_v45, 1 }
  0x85   : > { %997 = vrot.lane.b32.xlu0 %v941_v57, %s2880_s30  ;;  %v1165_v57 = vor.u32 %v1164_v52, %v950_v2  ;;  %v1170_v2 = vrot.slane %v974_v51, 1 }
  0x87   : > { %v592_v20 = vpop.permute.xlu0 %591  ;;  %999 = vrot.lane.b32.xlu1 %v948_v41, %s2880_s30 }
  0x88   : > { %639 = vst.msk [vmem:[#allocation2 + $0x10] sm:$0xff] %vm637_vm4, %v592_v20 }
  0x89   : > { %1095 = vrot.lane.b32.xlu0 %v3357_v43, %s2881_s6  ;;  %v687_v5 = vpop.permute.xlu1 %686 }
  0x8b   : > { %v596_v53 = vpop.permute.xlu0 %595  ;;  %1188 = vrot.lane.b32.xlu1 %v1157_v32, %s2882_s7  ;;  %v737_v36 = vld [vmem:[#allocation2 + $0x8] sm:$0xff]  ;;  %v743_v41 = vld [vmem:[#allocation2 + $0x18] sm:$0xff] }
  0x8c   : > { %641 = vst.msk [vmem:[#allocation2 + $0x20] sm:$0xff] %vm637_vm4, %v596_v53  ;;  %v738_v48 = vsel %vm3432_vm8, %v687_v5, %v737_v36  ;;  %v1169_v5 = vor.u32 %v1168_v60, %v964_v25 }
  0x8d   : > { %1097 = vrot.lane.b32.xlu0 %v3365_v54, %s2881_s6  ;;  %v689_v55 = vpop.permute.xlu1 %688 }
  0x8f   : > { %v598_v14 = vpop.permute.xlu0 %597  ;;  %1190 = vrot.lane.b32.xlu1 %v1159_v3, %s2882_s7  ;;  %v740_v56 = vld [vmem:[#allocation2 + $0x10] sm:$0xff] }
  0x90   : > { %642 = vst.msk [vmem:[#allocation2 + $0x28] sm:$0xff] %vm637_vm4, %v598_v14  ;;  %v741_v42 = vsel %vm3432_vm8, %v689_v55, %v740_v56 }
  0x91   : > { %714 = vrot.lane.b32.xlu0 %v683_v22, %s2879_s29  ;;  %v691_v19 = vpop.permute.xlu1 %690 }
  0x92   : > { %v744_v20 = vsel %vm3432_vm8, %v691_v19, %v743_v41  ;;  %v2868_v19 = vld [vmem:[%s3900_s2 + $0x40] sm:$0xff]  }
  0x93   : > { %v600_v49 = vpop.permute.xlu0 %599  ;;  %716 = vrot.lane.b32.xlu1 %v685_v35, %s2879_s29  ;;  %v746_v32 = vld [vmem:[#allocation2 + $0x20] sm:$0xff]  ;;  %v2867_v35 = vld [vmem:[%s3900_s2 + $0x38] sm:$0xff]  }
  0x94   : > { %643 = vst.msk [vmem:[#allocation2 + $0x30] sm:$0xff] %vm637_vm4, %v600_v49 }
  0x95   : > { %1001 = vrot.lane.b32.xlu0 %v955_v10, %s2880_s30  ;;  %v693_v26 = vpop.permute.xlu1 %692 }
  0x96   : > { %v747_v53 = vsel %vm3432_vm8, %v693_v26, %v746_v32 }
  0x97   : > { %v978_v4 = vpop.permute.xlu0 %977  ;;  %1003 = vrot.lane.b32.xlu1 %v962_v16, %s2880_s30  ;;  %v749_v36 = vld [vmem:[#allocation2 + $0x28] sm:$0xff] }
  0x98   : > { %v1028_v29 = vsel %vm3443_vm9, %v978_v4, %v738_v48 }
  0x99   : > { %1029 = vst [vmem:[#allocation2 + $0x8] sm:$0xff] %v1028_v29  ;;  %1099 = vrot.lane.b32.xlu0 %v3396_v61, %s2881_s6  ;;  %v980_v47 = vpop.permute.xlu1 %979  ;;  %v1167_v61 = vor.u32 %v1166_v59, %v957_v8  ;;  %v1171_v8 = vor.u32 %v1170_v2, %v971_v34 }
  0x9a   : > { %v1031_v43 = vsel %vm3443_vm9, %v980_v47, %v741_v42 }
  0x9b   : > { %v1076_v31 = vpop.permute.xlu0 %1075  ;;  %1032 = vst [vmem:[#allocation2 + $0x10] sm:$0xff] %v1031_v43  ;;  %1192 = vrot.lane.b32.xlu1 %v1161_v30, %s2882_s7  ;;  %v752_v25 = vld [vmem:[#allocation2 + $0x30] sm:$0xff] }
  0x9c   : > { %1124 = vst.msk [vmem:[#allocation2 + $0x8] sm:$0xff] %vm1123_vm10, %v1076_v31 }
  0x9d   : > { %1101 = vrot.lane.b32.xlu0 %v3403_v0, %s2881_s6  ;;  %v1078_v28 = vpop.permute.xlu1 %1077 }
  0x9e   : > { %1125 = vst.msk [vmem:[#allocation2 + $0x10] sm:$0xff] %vm1123_vm10, %v1078_v28 }
  0x9f   : > { %v602_v37 = vpop.permute.xlu0 %601  ;;  %1194 = vrot.lane.b32.xlu1 %v1163_v58, %s2882_s7 }
  0xa0   : > { %644 = vst.msk [vmem:[#allocation2 + $0x38] sm:$0xff] %vm637_vm4, %v602_v37 }
  0xa1   : > { %1005 = vrot.lane.b32.xlu0 %v969_v39, %s2880_s30  ;;  %v3476_v54 = vpop.permute.xlu1 %694 }
  0xa2   : > { %v750_v21 = vsel %vm3432_vm8, %v3476_v54, %v749_v36 }
  0xa3   : > { %v604_v40 = vpop.permute.xlu0 %603  ;;  %1007 = vrot.lane.b32.xlu1 %v976_v24, %s2880_s30  ;;  %v1222_v27 = vld [vmem:[#allocation2 + $0x8] sm:$0xff] }
  0xa4   : > { %645 = vst.msk [vmem:[#allocation2 + $0x40] sm:$0xff] %vm637_vm4, %v604_v40 }
  0xa5   : > { %1103 = vrot.lane.b32.xlu0 %v3429_v17, %s2881_s6  ;;  %v3484_v15 = vpop.permute.xlu1 %696  ;;  %v1225_v6 = vld [vmem:[#allocation2 + $0x10] sm:$0xff] }
  0xa7   : > { %v982_v62 = vpop.permute.xlu0 %981  ;;  %1196 = vrot.lane.b32.xlu1 %v1165_v57, %s2882_s7  ;;  %v755_v43 = vld [vmem:[#allocation2 + $0x38] sm:$0xff] }
  0xa8   : > { %v1034_v1 = vsel %vm3443_vm9, %v982_v62, %v744_v20 }
  0xa9   : > { %1035 = vst [vmem:[#allocation2 + $0x18] sm:$0xff] %v1034_v1  ;;  %1105 = vrot.lane.b32.xlu0 %v3439_v23, %s2881_s6  ;;  %v984_v3 = vpop.permute.xlu1 %983 }
  0xaa   : > { %v1037_v7 = vsel %vm3443_vm9, %v984_v3, %v747_v53 }
  0xab   : > { %v1080_v22 = vpop.permute.xlu0 %1079  ;;  %1038 = vst [vmem:[#allocation2 + $0x20] sm:$0xff] %v1037_v7  ;;  %1198 = vrot.lane.b32.xlu1 %v1167_v61, %s2882_s7  ;;  %v758_v39 = vld [vmem:[#allocation2 + $0x40] sm:$0xff] }
  0xac   : > { %1126 = vst.msk [vmem:[#allocation2 + $0x18] sm:$0xff] %vm1123_vm10, %v1080_v22 }
  0xad   : > { %1200 = vrot.lane.b32.xlu0 %v1169_v5, %s2882_s7  ;;  %v1173_v9 = vpop.permute.xlu1 %1172 }
  0xae   : > { %v1223_v55 = vsel %vm3502_vm12, %v1173_v9, %v1222_v27 }
  0xaf   : > { %v1082_v14 = vpop.permute.xlu0 %1081  ;;  %1224 = vst [vmem:[#allocation2 + $0x8] sm:$0xff] %v1223_v55  ;;  %1202 = vrot.lane.b32.xlu1 %v1171_v8, %s2882_s7  ;;  %2636 = vmatprep.mubr.msk.bf16.mxu1 %vm310_vm0, %v1223_v55 }
  0xb0   : > { %1127 = vst.msk [vmem:[#allocation2 + $0x20] sm:$0xff] %vm1123_vm10, %v1082_v14  ;;  %2675 = vmatmul.mubr.msk.bf16.vlgmr.msra.gmra.mrb[0].mxu0 %vm310_vm0, %v1223_v55 }
  0xb1   : > { %v1175_v11 = vpop.permute.xlu1 %1174  ;;  %2707 = vmatpush3.bf16.msra.mxu0 %v3311_v12 }
  0xb2   : > { %v3519_v10 = vsel %vm3502_vm12, %v1175_v11, %v1225_v6  ;;  %2708 = vmatprep.subr.bf16.mxu0 %v2867_v35 }
  0xb3   : > { %v606_v17 = vpop.permute.xlu0 %605  ;;  %1227 = vst [vmem:[#allocation2 + $0x10] sm:$0xff] %v3519_v10  ;;  %2637 = vmatmul.mubr.msk.bf16.vlgmr.msra.gmra.mrb[0].mxu1 %vm310_vm0, %v3519_v10  ;;  %2678 = vmatprep.mubr.msk.bf16.mxu0 %vm310_vm0, %v3519_v10  ;;  %v1228_v4 = vld [vmem:[#allocation2 + $0x18] sm:$0xff] }
  0xb4   : > { %646 = vst.msk [vmem:[#allocation2 + $0x48] sm:$0xff] %vm637_vm4, %v606_v17  ;;  %2747 = vmatpush3.bf16.msra.mxu1 %v3128_v18 }
  0xb5   : > { %v699_v12 = vpop.permute.xlu1 %698  ;;  %2709 = vmatpush3.bf16.msra.mxu0 %v2867_v35  ;;  %2745 = vmatprep.subr.bf16.mxu1 %v3138_v44 }
  0xb6   : > { %2710 = vmatprep.subr.bf16.mxu0 %v2868_v19  ;;  %v756_v58 = vsel %vm3432_vm8, %v699_v12, %v755_v43 }
  0xb7   : > { %v608_v49 = vpop.permute.xlu0 %607 }
  0xb8   : > { %647 = vst.msk [vmem:[#allocation2 + $0x50] sm:$0xff] %vm637_vm4, %v608_v49  ;;  %2748 = vmatpush3.bf16.msra.mxu1 %v3138_v44  ;;  %v753_v44 = vsel %vm3432_vm8, %v3484_v15, %v752_v25 }
  0xb9   : > { %v701_v16 = vpop.permute.xlu1 %700  ;;  %2711 = vmatpush3.bf16.msra.mxu0 %v2868_v19  ;;  %2746 = vmatprep.subr.bf16.mxu1 %v3167_v63 }
  0xba   : > { %v759_v28 = vsel %vm3432_vm8, %v701_v16, %v758_v39 }
  0xbb   : > { %v986_v18 = vpop.permute.xlu0 %985  ;;  %v761_v1 = vld [vmem:[#allocation2 + $0x48] sm:$0xff] }
  0xbc   : > { %v1040_v23 = vsel %vm3443_vm9, %v986_v18, %v750_v21  ;;  %2749 = vmatpush3.bf16.msra.mxu1 %v3167_v63  ;;  %v1231_v63 = vld [vmem:[#allocation2 + $0x20] sm:$0xff] }
  0xbd   : > { %1041 = vst [vmem:[#allocation2 + $0x28] sm:$0xff] %v1040_v23  ;;  %v988_v26 = vpop.permute.xlu1 %987 }
  0xbe   : > { %v1043_v48 = vsel %vm3443_vm9, %v988_v26, %v753_v44 }
  0xbf   : > { %v1084_v56 = vpop.permute.xlu0 %1083  ;;  %1044 = vst [vmem:[#allocation2 + $0x30] sm:$0xff] %v1043_v48  ;;  %v764_v3 = vld [vmem:[#allocation2 + $0x50] sm:$0xff] }
  0xc0   : > { %1128 = vst.msk [vmem:[#allocation2 + $0x28] sm:$0xff] %vm1123_vm10, %v1084_v56 }
  0xc1   : > { %v1177_v29 = vpop.permute.xlu1 %1176 }
  0xc2   : > { %v3549_v30 = vsel %vm3502_vm12, %v1177_v29, %v1228_v4 }
  0xc3   : > { %v1086_v33 = vpop.permute.xlu0 %1085  ;;  %1230 = vst [vmem:[#allocation2 + $0x18] sm:$0xff] %v3549_v30  ;;  %2640 = vmatprep.mubr.msk.bf16.mxu1 %vm310_vm0, %v3549_v30  ;;  %2679 = vmatmul.mubr.msk.bf16.gmra.mrb[4].mxu0 %vm310_vm0, %v3549_v30 }
  0xc4   : > { %1129 = vst.msk [vmem:[#allocation2 + $0x30] sm:$0xff] %vm1123_vm10, %v1086_v33 }
  0xc5   : > { %v1179_v34 = vpop.permute.xlu1 %1178 }
  0xc6   : > { %v3559_v38 = vsel %vm3502_vm12, %v1179_v34, %v1231_v63 }
  0xc7   : > { %v610_v45 = vpop.permute.xlu0 %609  ;;  %1233 = vst [vmem:[#allocation2 + $0x20] sm:$0xff] %v3559_v38  ;;  %2641 = vmatmul.mubr.msk.bf16.gmra.mrb[4].mxu1 %vm310_vm0, %v3559_v38  ;;  %2682 = vmatprep.mubr.msk.bf16.mxu0 %vm310_vm0, %v3559_v38  ;;  %v1234_v54 = vld [vmem:[#allocation2 + $0x28] sm:$0xff] }
  0xc8   : > { %648 = vst.msk [vmem:[#allocation2 + $0x58] sm:$0xff] %vm637_vm4, %v610_v45 }
  0xc9   : > { %v703_v42 = vpop.permute.xlu1 %702 }
  0xca   : > { %v762_v2 = vsel %vm3432_vm8, %v703_v42, %v761_v1 }
  0xcb   : > { %v612_v47 = vpop.permute.xlu0 %611  ;;  %v1237_v60 = vld [vmem:[#allocation2 + $0x30] sm:$0xff] }
  0xcc   : > { %649 = vst.msk [vmem:[#allocation2 + $0x60] sm:$0xff] %vm637_vm4, %v612_v47 }
  0xcd   : > { %v705_v31 = vpop.permute.xlu1 %704 }
  0xce   : > { %v765_v7 = vsel %vm3432_vm8, %v705_v31, %v764_v3 }
  0xcf   : > { %v990_v50 = vpop.permute.xlu0 %989 }
  0xd0   : > { %v1046_v51 = vsel %vm3443_vm9, %v990_v50, %v756_v58 }
  0xd1   : > { %1047 = vst [vmem:[#allocation2 + $0x38] sm:$0xff] %v1046_v51  ;;  %v992_v37 = vpop.permute.xlu1 %991 }
  0xd2   : > { %v1049_v24 = vsel %vm3443_vm9, %v992_v37, %v759_v28 }
  0xd3   : > { %v1088_v52 = vpop.permute.xlu0 %1087  ;;  %1050 = vst [vmem:[#allocation2 + $0x40] sm:$0xff] %v1049_v24  ;;  %v770_v23 = vld [vmem:[#allocation2 + $0x60] sm:$0xff] }
  0xd4   : > { %1130 = vst.msk [vmem:[#allocation2 + $0x38] sm:$0xff] %vm1123_vm10, %v1088_v52 }
  0xd5   : > { %v1181_v40 = vpop.permute.xlu1 %1180 }
  0xd6   : > { %v3579_v57 = vsel %vm3502_vm12, %v1181_v40, %v1234_v54 }
  0xd7   : > { %v1090_v59 = vpop.permute.xlu0 %1089  ;;  %1236 = vst [vmem:[#allocation2 + $0x28] sm:$0xff] %v3579_v57  ;;  %2644 = vmatprep.mubr.msk.bf16.mxu1 %vm310_vm0, %v3579_v57  ;;  %2683 = vmatmul.mubr.msk.bf16.gmra.mrb[8].mxu0 %vm310_vm0, %v3579_v57 }
  0xd8   : > { %1131 = vst.msk [vmem:[#allocation2 + $0x40] sm:$0xff] %vm1123_vm10, %v1090_v59 }
  0xd9   : > { %v1183_v41 = vpop.permute.xlu1 %1182 }
  0xda   : > { %v1238_v15 = vsel %vm3502_vm12, %v1183_v41, %v1237_v60 }
  0xdb   : > { %v614_v20 = vpop.permute.xlu0 %613  ;;  %1239 = vst [vmem:[#allocation2 + $0x30] sm:$0xff] %v1238_v15  ;;  %2645 = vmatmul.mubr.msk.bf16.gmra.mrb[8].mxu1 %vm310_vm0, %v1238_v15  ;;  %2686 = vmatprep.mubr.msk.bf16.mxu0 %vm310_vm0, %v1238_v15  ;;  %v1240_v27 = vld [vmem:[#allocation2 + $0x38] sm:$0xff] }
  0xdc   : > { %650 = vst.msk [vmem:[#allocation2 + $0x68] sm:$0xff] %vm637_vm4, %v614_v20 }
  0xdd   : > { %v707_v32 = vpop.permute.xlu1 %706 }
  0xdf   : > { %v616_v62 = vpop.permute.xlu0 %615  ;;  %v1243_v6 = vld [vmem:[#allocation2 + $0x40] sm:$0xff] }
  0xe0   : > { %651 = vst.msk [vmem:[#allocation2 + $0x70] sm:$0xff] %vm637_vm4, %v616_v62 }
  0xe1   : > { %v709_v61 = vpop.permute.xlu1 %708 }
  0xe2   : > { %v771_v25 = vsel %vm3432_vm8, %v709_v61, %v770_v23 }
  0xe3   : > { %v994_v5 = vpop.permute.xlu0 %993  ;;  %v773_v45 = vld [vmem:[#allocation2 + $0x68] sm:$0xff] }
  0xe4   : > { %v1052_v53 = vsel %vm3443_vm9, %v994_v5, %v762_v2 }
  0xe5   : > { %1053 = vst [vmem:[#allocation2 + $0x48] sm:$0xff] %v1052_v53  ;;  %v996_v22 = vpop.permute.xlu1 %995 }
  0xe6   : > { %v1055_v8 = vsel %vm3443_vm9, %v996_v22, %v765_v7 }
  0xe7   : > { %v1092_v9 = vpop.permute.xlu0 %1091  ;;  %1056 = vst [vmem:[#allocation2 + $0x50] sm:$0xff] %v1055_v8  ;;  %v776_v58 = vld [vmem:[#allocation2 + $0x70] sm:$0xff] }
  0xe8   : > { %1132 = vst.msk [vmem:[#allocation2 + $0x48] sm:$0xff] %vm1123_vm10, %v1092_v9 }
  0xe9   : > { %v1185_v55 = vpop.permute.xlu1 %1184 }
  0xea   : > { %v1241_v14 = vsel %vm3502_vm12, %v1185_v55, %v1240_v27 }
  0xeb   : > { %v1094_v35 = vpop.permute.xlu0 %1093  ;;  %1242 = vst [vmem:[#allocation2 + $0x38] sm:$0xff] %v1241_v14  ;;  %2648 = vmatprep.mubr.msk.bf16.mxu1 %vm310_vm0, %v1241_v14  ;;  %2687 = vmatmul.mubr.msk.bf16.gmra.mrb[12].mxu0 %vm310_vm0, %v1241_v14 }
  0xec   : > { %1133 = vst.msk [vmem:[#allocation2 + $0x50] sm:$0xff] %vm1123_vm10, %v1094_v35  ;;  %2712 = vmatprep.mubr.msk.bf16.mxu0 %vm310_vm0, %v3519_v10  ;;  %v767_v10 = vld [vmem:[#allocation2 + $0x58] sm:$0xff] }
  0xed   : > { %v1187_v11 = vpop.permute.xlu1 %1186  ;;  %v768_v16 = vsel %vm3432_vm8, %v707_v32, %v767_v10 }
  0xee   : > { %v3611_v17 = vsel %vm3502_vm12, %v1187_v11, %v1243_v6  ;;  %v1785_v6 = vld [vmem:[#allocation2 + $0x88] sm:$0xff] }
  0xef   : > { %v618_v19 = vpop.permute.xlu0 %617  ;;  %1245 = vst [vmem:[#allocation2 + $0x40] sm:$0xff] %v3611_v17  ;;  %2649 = vmatmul.mubr.msk.bf16.gmra.mrb[12].mxu1 %vm310_vm0, %v3611_v17  ;;  %v1246_v56 = vld [vmem:[#allocation2 + $0x48] sm:$0xff] }
  0xf0   : > { %652 = vst.msk [vmem:[#allocation2 + $0x78] sm:$0xff] %vm637_vm4, %v618_v19 }
  0xf1   : > { %v711_v12 = vpop.permute.xlu1 %710 }
  0xf2   : > { %v774_v47 = vsel %vm3432_vm8, %v711_v12, %v773_v45 }
  0xf3   : > { %v620_v49 = vpop.permute.xlu0 %619  ;;  %2713 = vmatmul.mubr.msk.bf16.vlgmr.msra.gmra.mrb[0].mxu0 %vm310_vm0, %v3549_v30  ;;  %v1249_v33 = vld [vmem:[#allocation2 + $0x50] sm:$0xff] }
  0xf4   : > { %653 = vst.msk [vmem:[#allocation2 + $0x80] sm:$0xff] %vm637_vm4, %v620_v49  ;;  %2716 = vmatprep.mubr.msk.bf16.mxu0 %vm310_vm0, %v3559_v38 }
  0xf5   : > { %v713_v36 = vpop.permute.xlu1 %712 }
  0xf6   : > { %v777_v50 = vsel %vm3432_vm8, %v713_v36, %v776_v58 }
  0xf7   : > { %v998_v21 = vpop.permute.xlu0 %997  ;;  %v779_v40 = vld [vmem:[#allocation2 + $0x78] sm:$0xff] }
  0xf8   : > { %v1058_v18 = vsel %vm3443_vm9, %v998_v21, %v768_v16 }
  0xf9   : > { %1059 = vst [vmem:[#allocation2 + $0x58] sm:$0xff] %v1058_v18  ;;  %v1000_v44 = vpop.permute.xlu1 %999 }
  0xfa   : > { %v1061_v26 = vsel %vm3443_vm9, %v1000_v44, %v771_v25 }
  0xfb   : > { %v1096_v48 = vpop.permute.xlu0 %1095  ;;  %1062 = vst [vmem:[#allocation2 + $0x60] sm:$0xff] %v1061_v26  ;;  %2717 = vmatmul.mubr.msk.bf16.gmra.mrb[4].mxu0 %vm310_vm0, %v3579_v57  ;;  %v782_v32 = vld [vmem:[#allocation2 + $0x80] sm:$0xff] }
  0xfc   : > { %1134 = vst.msk [vmem:[#allocation2 + $0x58] sm:$0xff] %vm1123_vm10, %v1096_v48  ;;  %2720 = vmatprep.mubr.msk.bf16.mxu0 %vm310_vm0, %v1238_v15 }
  0xfd   : > { %v1189_v4 = vpop.permute.xlu1 %1188 }
  0xfe   : > { %v3636_v29 = vsel %vm3502_vm12, %v1189_v4, %v1246_v56  ;;  %v3729_v4 = vld [vmem:[%s3901_s3] ss:$0 sm:$0xff] }
  0xff   : > { %v1098_v30 = vpop.permute.xlu0 %1097  ;;  %1248 = vst [vmem:[#allocation2 + $0x48] sm:$0xff] %v3636_v29  ;;  %2652 = vmatprep.mubr.msk.bf16.mxu1 %vm310_vm0, %v3636_v29 }
 0x100   : > { %1135 = vst.msk [vmem:[#allocation2 + $0x60] sm:$0xff] %vm1123_vm10, %v1098_v30 }
 0x101   : > { %v1191_v63 = vpop.permute.xlu1 %1190 }
 0x102   : > { %v3644_v34 = vsel %vm3502_vm12, %v1191_v63, %v1249_v33  ;;  %v3734_v33 = vld [vmem:[%s3902_s4] ss:$0 sm:$0xff] }
 0x103   : > { %v715_v38 = vpop.permute.xlu0 %714  ;;  %1251 = vst [vmem:[#allocation2 + $0x50] sm:$0xff] %v3644_v34  ;;  %2653 = vmatmul.mubr.msk.bf16.gmra.mrb[16].mxu1 %vm310_vm0, %v3644_v34  ;;  %2721 = vmatmul.mubr.msk.bf16.gmra.mrb[8].mxu0 %vm310_vm0, %v1241_v14  ;;  %v1252_v37 = vld [vmem:[#allocation2 + $0x58] sm:$0xff] }
 0x104   : > { %2724 = vmatprep.mubr.msk.bf16.mxu0 %vm310_vm0, %v3611_v17  ;;  %v780_v60 = vsel %vm3432_vm8, %v715_v38, %v779_v40 }
 0x105   : > { %v717_v42 = vpop.permute.xlu1 %716 }
 0x106   : > { %v783_v62 = vsel %vm3432_vm8, %v717_v42, %v782_v32 }
 0x107   : > { %v1002_v43 = vpop.permute.xlu0 %1001  ;;  %v1255_v57 = vld [vmem:[#allocation2 + $0x60] sm:$0xff] }
 0x108   : > { %v1064_v31 = vsel %vm3443_vm9, %v1002_v43, %v774_v47 }
 0x109   : > { %1065 = vst [vmem:[#allocation2 + $0x68] sm:$0xff] %v1064_v31  ;;  %v1004_v51 = vpop.permute.xlu1 %1003 }
 0x10a   : > { %v1067_v39 = vsel %vm3443_vm9, %v1004_v51, %v777_v50 }
 0x10b   : > { %v1100_v28 = vpop.permute.xlu0 %1099  ;;  %1068 = vst [vmem:[#allocation2 + $0x70] sm:$0xff] %v1067_v39  ;;  %2725 = vmatmul.mubr.msk.bf16.gmra.mrb[12].mxu0 %vm310_vm0, %v3636_v29 }
 0x10c   : > { %1136 = vst.msk [vmem:[#allocation2 + $0x68] sm:$0xff] %vm1123_vm10, %v1100_v28  ;;  %2728 = vmatprep.mubr.msk.bf16.mxu0 %vm310_vm0, %v3644_v34 }
 0x10d   : > { %v1193_v24 = vpop.permute.xlu1 %1192 }
 0x10e   : > { %v1253_v52 = vsel %vm3502_vm12, %v1193_v24, %v1252_v37 }
 0x10f   : > { %v1102_v54 = vpop.permute.xlu0 %1101  ;;  %1254 = vst [vmem:[#allocation2 + $0x58] sm:$0xff] %v1253_v52  ;;  %2656 = vmatprep.mubr.msk.bf16.mxu1 %vm310_vm0, %v1253_v52 }
 0x110   : > { %1137 = vst.msk [vmem:[#allocation2 + $0x70] sm:$0xff] %vm1123_vm10, %v1102_v54 }
 0x111   : > { %v1195_v59 = vpop.permute.xlu1 %1194 }
 0x112   : > { %v1256_v41 = vsel %vm3502_vm12, %v1195_v59, %v1255_v57 }
 0x113   : > { %v1006_v15 = vpop.permute.xlu0 %1005  ;;  %1257 = vst [vmem:[#allocation2 + $0x60] sm:$0xff] %v1256_v41  ;;  %2657 = vmatmul.mubr.msk.bf16.gmra.mrb[20].mxu1 %vm310_vm0, %v1256_v41  ;;  %2729 = vmatmul.mubr.msk.bf16.gmra.mrb[16].mxu0 %vm310_vm0, %v1253_v52  ;;  %v1258_v5 = vld [vmem:[#allocation2 + $0x68] sm:$0xff] }
 0x114   : > { %v1070_v20 = vsel %vm3443_vm9, %v1006_v15, %v780_v60  ;;  %2732 = vmatprep.mubr.msk.bf16.mxu0 %vm310_vm0, %v1256_v41 }
 0x115   : > { %1071 = vst [vmem:[#allocation2 + $0x78] sm:$0xff] %v1070_v20  ;;  %v1008_v1 = vpop.permute.xlu1 %1007 }
 0x116   : > { %v1073_v61 = vsel %vm3443_vm9, %v1008_v1, %v783_v62 }
 0x117   : > { %v1104_v2 = vpop.permute.xlu0 %1103  ;;  %1074 = vst [vmem:[#allocation2 + $0x80] sm:$0xff] %v1073_v61  ;;  %v1261_v46 = vld [vmem:[#allocation2 + $0x70] sm:$0xff] }
 0x118   : > { %1138 = vst.msk [vmem:[#allocation2 + $0x78] sm:$0xff] %vm1123_vm10, %v1104_v2 }
 0x119   : > { %v1197_v53 = vpop.permute.xlu1 %1196 }
 0x11a   : > { %v1259_v3 = vsel %vm3502_vm12, %v1197_v53, %v1258_v5 }
 0x11b   : > { %v1106_v7 = vpop.permute.xlu0 %1105  ;;  %1260 = vst [vmem:[#allocation2 + $0x68] sm:$0xff] %v1259_v3  ;;  %2660 = vmatprep.mubr.msk.bf16.mxu1 %vm310_vm0, %v1259_v3  ;;  %2733 = vmatmul.mubr.msk.bf16.gmra.mrb[20].mxu0 %vm310_vm0, %v1259_v3 }
 0x11c   : > { %1139 = vst.msk [vmem:[#allocation2 + $0x80] sm:$0xff] %vm1123_vm10, %v1106_v7 }
 0x11d   : > { %v1199_v13 = vpop.permute.xlu1 %1198 }
 0x11e   : > { %v1262_v22 = vsel %vm3502_vm12, %v1199_v13, %v1261_v46 }
 0x11f   : > { %v1264_v8 = vld [vmem:[#allocation2 + $0x78] sm:$0xff]  ;;  %v1201_v9 = vpop.permute.xlu0 %1200  ;;  %1263 = vst [vmem:[#allocation2 + $0x70] sm:$0xff] %v1262_v22  ;;  %2661 = vmatmul.mubr.msk.bf16.gmra.mrb[24].mxu1 %vm310_vm0, %v1262_v22  ;;  %2736 = vmatprep.mubr.msk.bf16.mxu0 %vm310_vm0, %v1262_v22 }
 0x120   : > { %v1265_v27 = vsel %vm3502_vm12, %v1201_v9, %v1264_v8 }
 0x121   : > { %1266 = vst [vmem:[#allocation2 + $0x78] sm:$0xff] %v1265_v27  ;;  %2664 = vmatprep.mubr.msk.bf16.mxu1 %vm310_vm0, %v1265_v27  ;;  %v1203_v55 = vpop.permute.xlu1 %1202 }
 0x123   : > { %v1267_v14 = vld [vmem:[#allocation2 + $0x80] sm:$0xff]  ;;  %2737 = vmatmul.mubr.msk.bf16.gmra.mrb[24].mxu0 %vm310_vm0, %v1265_v27 }
 0x124   : > { %v1268_v35 = vsel %vm3502_vm12, %v1203_v55, %v1267_v14 }
 0x125   : > { %1269 = vst [vmem:[#allocation2 + $0x80] sm:$0xff] %v1268_v35  ;;  %2740 = vmatprep.mubr.msk.bf16.mxu0 %vm310_vm0, %v1268_v35 }
 0x127   : > { %2665 = vmatmul.mubr.msk.bf16.gmra.mrb[28].mxu1 %vm310_vm0, %v1268_v35 }
 0x128   : > { %2690 = vmatprep.mubr.msk.bf16.mxu1 %vm310_vm0, %v3611_v17 }
 0x12b   : > { %2741 = vmatmul.mubr.msk.bf16.gmra.mrb[28].mxu0 %vm310_vm0, %v1785_v6 }
 0x12f   : > { %2691 = vmatmul.mubr.msk.bf16.vlgmr.msra.gmra.mrb[16].mxu1 %vm310_vm0, %v3636_v29 }
 0x130   : > { %2694 = vmatprep.mubr.msk.bf16.mxu1 %vm310_vm0, %v3644_v34 }
 0x137   : > { %2695 = vmatmul.mubr.msk.bf16.gmra.mrb[20].mxu1 %vm310_vm0, %v1253_v52 }
 0x138   : > { %2698 = vmatprep.mubr.msk.bf16.mxu1 %vm310_vm0, %v1256_v41 }
 0x13f   : > { %2699 = vmatmul.mubr.msk.bf16.gmra.mrb[24].mxu1 %vm310_vm0, %v1259_v3 }
 0x140   : > { %2702 = vmatprep.mubr.msk.bf16.mxu1 %vm310_vm0, %v1262_v22 }
 0x147   : > { %2703 = vmatmul.mubr.msk.bf16.gmra.mrb[28].mxu1 %vm310_vm0, %v1265_v27 }
 0x186   : > { %v2638_v0 = vpop.f32.mrb[0].mxu1 }
 0x187   : > { %v1415_v11 = vpop.f32.mrb[1].mxu1 }
 0x188   : > { %v2639_v17 = vpop.f32.mrb[2].mxu1 }
 0x189   : > { %v1418_v19 = vpop.f32.mrb[3].mxu1 }
 0x19a   : > { %v2642_v12 = vpop.f32.mrb[4].mxu1 }
 0x19b   : > { %v1431_v49 = vpop.f32.mrb[5].mxu1 }
 0x19c   : > { %v2643_v10 = vpop.f32.mrb[6].mxu1 }
 0x19d   : > { %v1434_v36 = vpop.f32.mrb[7].mxu1 }
 0x1ae   : > { %v2646_v16 = vpop.f32.mrb[8].mxu1 }
 0x1af   : > { %v3712_v21 = vpop.f32.mrb[9].mxu1 }
 0x1b0   : > { %v3714_v18 = vpop.f32.mrb[10].mxu1 }
 0x1b1   : > { %v3716_v23 = vpop.f32.mrb[11].mxu1 }
 0x1c2   : > { %v3718_v25 = vpop.f32.mrb[12].mxu1 }
 0x1c3   : > { %v3720_v44 = vpop.f32.mrb[13].mxu1 }
 0x1c4   : > { %v3722_v26 = vpop.f32.mrb[14].mxu1 }
 0x1c5   : > { %v3724_v48 = vpop.f32.mrb[15].mxu1 }
 0x1c6   : > { %v2714_v56 = vpop.f32.mrb[0].mxu0 }
 0x1c7   : > { %v2750_v29 = vadd.f32 %v2714_v56, %v2638_v0  ;;  %v1893_v30 = vpop.f32.mrb[1].mxu0 }
 0x1c8   : > { %v2751_v63 = vadd.f32 %v1893_v30, %v1415_v11  ;;  %v2715_v34 = vpop.f32.mrb[2].mxu0 }
 0x1c9   : > { %v2061_v38 = vmul.f32 %v2750_v29, %v3729_v4  ;;  %v2752_v45 = vadd.f32 %v2715_v34, %v2639_v17  ;;  %v1896_v42 = vpop.f32.mrb[3].mxu0 }
 0x1ca   : > { %v2059_v47 = vmul.f32 %v2751_v63, %v3729_v4  ;;  %v2753_v43 = vadd.f32 %v1896_v42, %v1418_v19 }
 0x1cb   : > { %v2100_v31 = vadd.f32 %v3734_v33, %v2061_v38  ;;  %v2062_v58 = vmul.f32 %v2752_v45, %v3729_v4 }
 0x1cc   : > { %v2098_v50 = vadd.f32 %v3734_v33, %v2059_v47  ;;  %v2060_v51 = vmul.f32 %v2753_v43, %v3729_v4 }
 0x1cd   : > { %v2132_v39 = vmax.f32 %v2100_v31, 0.0  ;;  %v2101_v28 = vadd.f32 %v3734_v33, %v2062_v58 }
 0x1ce   : > { %v2130_v37 = vmax.f32 %v2098_v50, 0.0  ;;  %v2099_v24 = vadd.f32 %v3734_v33, %v2060_v51  ;;  %v2718_v52 = vpop.f32.mrb[4].mxu0 }
 0x1cf   : > { %v2543_v54 = vpack.c.bf16 %v2132_v39, %v2132_v39  ;;  %v2133_v40 = vmax.f32 %v2101_v28, 0.0  ;;  %v2754_v57 = vadd.f32 %v2718_v52, %v2642_v12  ;;  %v1909_v59 = vpop.f32.mrb[5].mxu0 }
 0x1d0   : > { %v2541_v60 = vpack.c.bf16 %v2130_v37, %v2130_v37  ;;  %v2131_v41 = vmax.f32 %v2099_v24, 0.0  ;;  %v2755_v15 = vadd.f32 %v1909_v59, %v1431_v49  ;;  %v2719_v20 = vpop.f32.mrb[6].mxu0 }
 0x1d1   : > { %2293 = vst.msk [vmem:[%s3747_s9 + $0x8] sm:$0xf] %vm2290_vm13, %v2543_v54  ;;  %v2544_v32 = vpack.c.bf16 %v2133_v40, %v2133_v40  ;;  %v2065_v62 = vmul.f32 %v2754_v57, %v3729_v4  ;;  %v2756_v1 = vadd.f32 %v2719_v20, %v2643_v10  ;;  %v1912_v61 = vpop.f32.mrb[7].mxu0 }
 0x1d2   : > { %2291 = vst.msk [vmem:[%s3747_s9] sm:$0xf] %vm2290_vm13, %v2541_v60  ;;  %v2542_v2 = vpack.c.bf16 %v2131_v41, %v2131_v41  ;;  %v2063_v5 = vmul.f32 %v2755_v15, %v3729_v4  ;;  %v2757_v53 = vadd.f32 %v1912_v61, %v1434_v36 }
 0x1d3   : > { %2294 = vst.msk [vmem:[%s3747_s9 + $0xc] sm:$0xf] %vm2290_vm13, %v2544_v32  ;;  %v2104_v3 = vadd.f32 %v3734_v33, %v2065_v62  ;;  %v2066_v7 = vmul.f32 %v2756_v1, %v3729_v4 }
 0x1d4   : > { %2292 = vst.msk [vmem:[%s3747_s9 + $0x4] sm:$0xf] %vm2290_vm13, %v2542_v2  ;;  %v2102_v46 = vadd.f32 %v3734_v33, %v2063_v5  ;;  %v2064_v13 = vmul.f32 %v2757_v53, %v3729_v4 }
 0x1d5   : > { %v2136_v22 = vmax.f32 %v2104_v3, 0.0  ;;  %v2105_v8 = vadd.f32 %v3734_v33, %v2066_v7 }
 0x1d6   : > { %v2134_v9 = vmax.f32 %v2102_v46, 0.0  ;;  %v2103_v27 = vadd.f32 %v3734_v33, %v2064_v13  ;;  %v2722_v55 = vpop.f32.mrb[8].mxu0 }
 0x1d7   : > { %v2547_v14 = vpack.c.bf16 %v2136_v22, %v2136_v22  ;;  %v2137_v35 = vmax.f32 %v2105_v8, 0.0  ;;  %v2758_v6 = vadd.f32 %v2722_v55, %v2646_v16  ;;  %v1925_v0 = vpop.f32.mrb[9].mxu0 }
 0x1d8   : > { %v2545_v11 = vpack.c.bf16 %v2134_v9, %v2134_v9  ;;  %v2135_v17 = vmax.f32 %v2103_v27, 0.0  ;;  %v2759_v19 = vadd.f32 %v1925_v0, %v3712_v21  ;;  %v2723_v12 = vpop.f32.mrb[10].mxu0 }
 0x1d9   : > { %2297 = vst.msk [vmem:[%s3747_s9 + $0x18] sm:$0xf] %vm2290_vm13, %v2547_v14  ;;  %v2548_v49 = vpack.c.bf16 %v2137_v35, %v2137_v35  ;;  %v2069_v10 = vmul.f32 %v2758_v6, %v3729_v4  ;;  %v2760_v36 = vadd.f32 %v2723_v12, %v3714_v18  ;;  %v1928_v56 = vpop.f32.mrb[11].mxu0 }
 0x1da   : > { %2295 = vst.msk [vmem:[%s3747_s9 + $0x10] sm:$0xf] %vm2290_vm13, %v2545_v11  ;;  %v2546_v29 = vpack.c.bf16 %v2135_v17, %v2135_v17  ;;  %v2067_v16 = vmul.f32 %v2759_v19, %v3729_v4  ;;  %v2761_v30 = vadd.f32 %v1928_v56, %v3716_v23 }
 0x1db   : > { %2298 = vst.msk [vmem:[%s3747_s9 + $0x1c] sm:$0xf] %vm2290_vm13, %v2548_v49  ;;  %v2108_v21 = vadd.f32 %v3734_v33, %v2069_v10  ;;  %v2070_v63 = vmul.f32 %v2760_v36, %v3729_v4 }
 0x1dc   : > { %2296 = vst.msk [vmem:[%s3747_s9 + $0x14] sm:$0xf] %vm2290_vm13, %v2546_v29  ;;  %v2106_v34 = vadd.f32 %v3734_v33, %v2067_v16  ;;  %v2068_v18 = vmul.f32 %v2761_v30, %v3729_v4 }
 0x1dd   : > { %v2140_v38 = vmax.f32 %v2108_v21, 0.0  ;;  %v2109_v45 = vadd.f32 %v3734_v33, %v2070_v63 }
 0x1de   : > { %v2138_v42 = vmax.f32 %v2106_v34, 0.0  ;;  %v2107_v23 = vadd.f32 %v3734_v33, %v2068_v18  ;;  %v2726_v47 = vpop.f32.mrb[12].mxu0 }
 0x1df   : > { %v2551_v43 = vpack.c.bf16 %v2140_v38, %v2140_v38  ;;  %v2141_v31 = vmax.f32 %v2109_v45, 0.0  ;;  %v2762_v58 = vadd.f32 %v2726_v47, %v3718_v25  ;;  %v1941_v50 = vpop.f32.mrb[13].mxu0 }
 0x1e0   : > { %v2549_v51 = vpack.c.bf16 %v2138_v42, %v2138_v42  ;;  %v2139_v39 = vmax.f32 %v2107_v23, 0.0  ;;  %v2763_v28 = vadd.f32 %v1941_v50, %v3720_v44  ;;  %v2727_v37 = vpop.f32.mrb[14].mxu0 }
 0x1e1   : > { %2301 = vst.msk [vmem:[%s3747_s9 + $0x28] sm:$0xf] %vm2290_vm13, %v2551_v43  ;;  %v2552_v24 = vpack.c.bf16 %v2141_v31, %v2141_v31  ;;  %v2073_v52 = vmul.f32 %v2762_v58, %v3729_v4  ;;  %v2764_v54 = vadd.f32 %v2727_v37, %v3722_v26  ;;  %v1944_v40 = vpop.f32.mrb[15].mxu0 }
 0x1e2   : > { %2299 = vst.msk [vmem:[%s3747_s9 + $0x20] sm:$0xf] %vm2290_vm13, %v2549_v51  ;;  %v2550_v57 = vpack.c.bf16 %v2139_v39, %v2139_v39  ;;  %v2071_v25 = vmul.f32 %v2763_v28, %v3729_v4  ;;  %v2765_v59 = vadd.f32 %v1944_v40, %v3724_v48 }
 0x1e3   : > { %2302 = vst.msk [vmem:[%s3747_s9 + $0x2c] sm:$0xf] %vm2290_vm13, %v2552_v24  ;;  %v2112_v44 = vadd.f32 %v3734_v33, %v2073_v52  ;;  %v2074_v60 = vmul.f32 %v2764_v54, %v3729_v4 }
 0x1e4   : > { %2300 = vst.msk [vmem:[%s3747_s9 + $0x24] sm:$0xf] %vm2290_vm13, %v2550_v57  ;;  %v2110_v41 = vadd.f32 %v3734_v33, %v2071_v25  ;;  %v2072_v26 = vmul.f32 %v2765_v59, %v3729_v4 }
 0x1e5   : > { %v2144_v15 = vmax.f32 %v2112_v44, 0.0  ;;  %v2113_v20 = vadd.f32 %v3734_v33, %v2074_v60 }
 0x1e6   : > { %v2142_v48 = vmax.f32 %v2110_v41, 0.0  ;;  %v2111_v32 = vadd.f32 %v3734_v33, %v2072_v26  ;;  %v2730_v62 = vpop.f32.mrb[16].mxu0 }
 0x1e7   : > { %v2555_v1 = vpack.c.bf16 %v2144_v15, %v2144_v15  ;;  %v2145_v61 = vmax.f32 %v2113_v20, 0.0  ;;  %v1957_v2 = vpop.f32.mrb[17].mxu0 }
 0x1e8   : > { %v2553_v5 = vpack.c.bf16 %v2142_v48, %v2142_v48  ;;  %v2143_v53 = vmax.f32 %v2111_v32, 0.0  ;;  %v2731_v3 = vpop.f32.mrb[18].mxu0 }
 0x1e9   : > { %2305 = vst.msk [vmem:[%s3747_s9 + $0x38] sm:$0xf] %vm2290_vm13, %v2555_v1  ;;  %v2556_v7 = vpack.c.bf16 %v2145_v61, %v2145_v61  ;;  %v1960_v46 = vpop.f32.mrb[19].mxu0 }
 0x1ea   : > { %2303 = vst.msk [vmem:[%s3747_s9 + $0x30] sm:$0xf] %vm2290_vm13, %v2553_v5  ;;  %v2554_v13 = vpack.c.bf16 %v2143_v53, %v2143_v53 }
 0x1eb   : > { %2306 = vst.msk [vmem:[%s3747_s9 + $0x3c] sm:$0xf] %vm2290_vm13, %v2556_v7 }
 0x1ec   : > { %2304 = vst.msk [vmem:[%s3747_s9 + $0x34] sm:$0xf] %vm2290_vm13, %v2554_v13 }
 0x1ee   : > { %v2734_v22 = vpop.f32.mrb[20].mxu0 }
 0x1ef   : > { %v1973_v8 = vpop.f32.mrb[21].mxu0 }
 0x1f0   : > { %v2735_v9 = vpop.f32.mrb[22].mxu0 }
 0x1f1   : > { %v1976_v27 = vpop.f32.mrb[23].mxu0 }
 0x1f6   : > { %v2738_v55 = vpop.f32.mrb[24].mxu0 }
 0x1f7   : > { %v1989_v14 = vpop.f32.mrb[25].mxu0 }
 0x1f8   : > { %v3813_v35 = vpop.f32.mrb[26].mxu0 }
 0x1f9   : > { %v3815_v6 = vpop.f32.mrb[27].mxu0 }
 0x1fe   : > { %v3817_v0 = vpop.f32.mrb[28].mxu0 }
 0x1ff   : > { %v3819_v11 = vpop.f32.mrb[29].mxu0 }
 0x200   : > { %v3821_v17 = vpop.f32.mrb[30].mxu0 }
 0x201   : > { %v3823_v19 = vpop.f32.mrb[31].mxu0 }
 0x202   : > { %v2692_v12 = vpop.f32.mrb[16].mxu1 }
 0x203   : > { %v2766_v49 = vadd.f32 %v2730_v62, %v2692_v12  ;;  %v1706_v10 = vpop.f32.mrb[17].mxu1 }
 0x204   : > { %v2767_v36 = vadd.f32 %v1957_v2, %v1706_v10  ;;  %v2693_v56 = vpop.f32.mrb[18].mxu1 }
 0x205   : > { %v2077_v29 = vmul.f32 %v2766_v49, %v3729_v4  ;;  %v2768_v16 = vadd.f32 %v2731_v3, %v2693_v56  ;;  %v1709_v30 = vpop.f32.mrb[19].mxu1 }
 0x206   : > { %v2075_v21 = vmul.f32 %v2767_v36, %v3729_v4  ;;  %v2769_v63 = vadd.f32 %v1960_v46, %v1709_v30 }
 0x207   : > { %v2116_v34 = vadd.f32 %v3734_v33, %v2077_v29  ;;  %v2078_v18 = vmul.f32 %v2768_v16, %v3729_v4 }
 0x208   : > { %v2114_v38 = vadd.f32 %v3734_v33, %v2075_v21  ;;  %v2076_v45 = vmul.f32 %v2769_v63, %v3729_v4 }
 0x209   : > { %v2148_v42 = vmax.f32 %v2116_v34, 0.0  ;;  %v2117_v23 = vadd.f32 %v3734_v33, %v2078_v18 }
 0x20a   : > { %v2146_v47 = vmax.f32 %v2114_v38, 0.0  ;;  %v2115_v43 = vadd.f32 %v3734_v33, %v2076_v45  ;;  %v2696_v31 = vpop.f32.mrb[20].mxu1 }
 0x20b   : > { %v2559_v58 = vpack.c.bf16 %v2148_v42, %v2148_v42  ;;  %v2149_v50 = vmax.f32 %v2117_v23, 0.0  ;;  %v2770_v51 = vadd.f32 %v2734_v22, %v2696_v31  ;;  %v1722_v39 = vpop.f32.mrb[21].mxu1 }
 0x20c   : > { %v2557_v28 = vpack.c.bf16 %v2146_v47, %v2146_v47  ;;  %v2147_v37 = vmax.f32 %v2115_v43, 0.0  ;;  %v2771_v24 = vadd.f32 %v1973_v8, %v1722_v39  ;;  %v2697_v52 = vpop.f32.mrb[22].mxu1 }
 0x20d   : > { %2309 = vst.msk [vmem:[%s3747_s9 + $0x48] sm:$0xf] %vm2290_vm13, %v2559_v58  ;;  %v2560_v54 = vpack.c.bf16 %v2149_v50, %v2149_v50  ;;  %v2081_v40 = vmul.f32 %v2770_v51, %v3729_v4  ;;  %v2772_v57 = vadd.f32 %v2735_v9, %v2697_v52  ;;  %v1725_v25 = vpop.f32.mrb[23].mxu1 }
 0x20e   : > { %2307 = vst.msk [vmem:[%s3747_s9 + $0x40] sm:$0xf] %vm2290_vm13, %v2557_v28  ;;  %v2558_v59 = vpack.c.bf16 %v2147_v37, %v2147_v37  ;;  %v2079_v44 = vmul.f32 %v2771_v24, %v3729_v4  ;;  %v2773_v60 = vadd.f32 %v1976_v27, %v1725_v25 }
 0x20f   : > { %2310 = vst.msk [vmem:[%s3747_s9 + $0x4c] sm:$0xf] %vm2290_vm13, %v2560_v54  ;;  %v2120_v41 = vadd.f32 %v3734_v33, %v2081_v40  ;;  %v2082_v26 = vmul.f32 %v2772_v57, %v3729_v4 }
 0x210   : > { %2308 = vst.msk [vmem:[%s3747_s9 + $0x44] sm:$0xf] %vm2290_vm13, %v2558_v59  ;;  %v2118_v15 = vadd.f32 %v3734_v33, %v2079_v44  ;;  %v2080_v20 = vmul.f32 %v2773_v60, %v3729_v4 }
 0x211   : > { %v2152_v48 = vmax.f32 %v2120_v41, 0.0  ;;  %v2121_v32 = vadd.f32 %v3734_v33, %v2082_v26 }
 0x212   : > { %v2150_v62 = vmax.f32 %v2118_v15, 0.0  ;;  %v2119_v1 = vadd.f32 %v3734_v33, %v2080_v20  ;;  %v2700_v61 = vpop.f32.mrb[24].mxu1 }
 0x213   : > { %v2563_v2 = vpack.c.bf16 %v2152_v48, %v2152_v48  ;;  %v2153_v5 = vmax.f32 %v2121_v32, 0.0  ;;  %v2774_v53 = vadd.f32 %v2738_v55, %v2700_v61  ;;  %v1738_v3 = vpop.f32.mrb[25].mxu1 }
 0x214   : > { %v2561_v7 = vpack.c.bf16 %v2150_v62, %v2150_v62  ;;  %v2151_v46 = vmax.f32 %v2119_v1, 0.0  ;;  %v2775_v13 = vadd.f32 %v1989_v14, %v1738_v3  ;;  %v2701_v22 = vpop.f32.mrb[26].mxu1 }
 0x215   : > { %2313 = vst.msk [vmem:[%s3747_s9 + $0x58] sm:$0xf] %vm2290_vm13, %v2563_v2  ;;  %v2564_v8 = vpack.c.bf16 %v2153_v5, %v2153_v5  ;;  %v2085_v9 = vmul.f32 %v2774_v53, %v3729_v4  ;;  %v2776_v27 = vadd.f32 %v3813_v35, %v2701_v22  ;;  %v1741_v12 = vpop.f32.mrb[27].mxu1 }
 0x216   : > { %2311 = vst.msk [vmem:[%s3747_s9 + $0x50] sm:$0xf] %vm2290_vm13, %v2561_v7  ;;  %v2562_v49 = vpack.c.bf16 %v2151_v46, %v2151_v46  ;;  %v2083_v10 = vmul.f32 %v2775_v13, %v3729_v4  ;;  %v2777_v55 = vadd.f32 %v3815_v6, %v1741_v12 }
 0x217   : > { %2314 = vst.msk [vmem:[%s3747_s9 + $0x5c] sm:$0xf] %vm2290_vm13, %v2564_v8  ;;  %v2124_v14 = vadd.f32 %v3734_v33, %v2085_v9  ;;  %v2086_v36 = vmul.f32 %v2776_v27, %v3729_v4 }
 0x218   : > { %2312 = vst.msk [vmem:[%s3747_s9 + $0x54] sm:$0xf] %vm2290_vm13, %v2562_v49  ;;  %v2122_v56 = vadd.f32 %v3734_v33, %v2083_v10  ;;  %v2084_v35 = vmul.f32 %v2777_v55, %v3729_v4 }
 0x219   : > { %v2156_v29 = vmax.f32 %v2124_v14, 0.0  ;;  %v2125_v16 = vadd.f32 %v3734_v33, %v2086_v36 }
 0x21a   : > { %v2154_v30 = vmax.f32 %v2122_v56, 0.0  ;;  %v2123_v6 = vadd.f32 %v3734_v33, %v2084_v35  ;;  %v2704_v21 = vpop.f32.mrb[28].mxu1 }
 0x21b   : > { %v2567_v63 = vpack.c.bf16 %v2156_v29, %v2156_v29  ;;  %v2157_v34 = vmax.f32 %v2125_v16, 0.0  ;;  %v2778_v18 = vadd.f32 %v3817_v0, %v2704_v21  ;;  %v1754_v38 = vpop.f32.mrb[29].mxu1 }
 0x21c   : > { %v2565_v45 = vpack.c.bf16 %v2154_v30, %v2154_v30  ;;  %v2155_v42 = vmax.f32 %v2123_v6, 0.0  ;;  %v2779_v23 = vadd.f32 %v3819_v11, %v1754_v38  ;;  %v2705_v47 = vpop.f32.mrb[30].mxu1 }
 0x21d   : > { %2317 = vst.msk [vmem:[%s3747_s9 + $0x68] sm:$0xf] %vm2290_vm13, %v2567_v63  ;;  %v2568_v43 = vpack.c.bf16 %v2157_v34, %v2157_v34  ;;  %v2089_v31 = vmul.f32 %v2778_v18, %v3729_v4  ;;  %v2780_v58 = vadd.f32 %v3821_v17, %v2705_v47  ;;  %v1757_v50 = vpop.f32.mrb[31].mxu1 }
 0x21e   : > { %2315 = vst.msk [vmem:[%s3747_s9 + $0x60] sm:$0xf] %vm2290_vm13, %v2565_v45  ;;  %v2566_v51 = vpack.c.bf16 %v2155_v42, %v2155_v42  ;;  %v2087_v0 = vmul.f32 %v2779_v23, %v3729_v4  ;;  %v2781_v39 = vadd.f32 %v3823_v19, %v1757_v50 }
 0x21f   : > { %2318 = vst.msk [vmem:[%s3747_s9 + $0x6c] sm:$0xf] %vm2290_vm13, %v2568_v43  ;;  %v2128_v11 = vadd.f32 %v3734_v33, %v2089_v31  ;;  %v2090_v28 = vmul.f32 %v2780_v58, %v3729_v4 }
 0x220   : > { %2316 = vst.msk [vmem:[%s3747_s9 + $0x64] sm:$0xf] %vm2290_vm13, %v2566_v51  ;;  %v2126_v17 = vadd.f32 %v3734_v33, %v2087_v0  ;;  %v2088_v37 = vmul.f32 %v2781_v39, %v3729_v4 }
 0x221   : > { %v2160_v24 = vmax.f32 %v2128_v11, 0.0  ;;  %v2129_v52 = vadd.f32 %v3734_v33, %v2090_v28 }
 0x222   : > { %v2158_v54 = vmax.f32 %v2126_v17, 0.0  ;;  %v2127_v19 = vadd.f32 %v3734_v33, %v2088_v37 }
 0x223   : > { %v2571_v40 = vpack.c.bf16 %v2160_v24, %v2160_v24  ;;  %v2161_v57 = vmax.f32 %v2129_v52, 0.0 }
 0x224   : > { %v2569_v25 = vpack.c.bf16 %v2158_v54, %v2158_v54  ;;  %v2159_v59 = vmax.f32 %v2127_v19, 0.0 }
 0x225   : > { %2321 = vst.msk [vmem:[%s3747_s9 + $0x78] sm:$0xf] %vm2290_vm13, %v2571_v40  ;;  %v2572_v44 = vpack.c.bf16 %v2161_v57, %v2161_v57 }
 0x226   : > { %2319 = vst.msk [vmem:[%s3747_s9 + $0x70] sm:$0xf] %vm2290_vm13, %v2569_v25  ;;  %v2570_v60 = vpack.c.bf16 %v2159_v59, %v2159_v59 }
 0x227   : > { %2322 = vst.msk [vmem:[%s3747_s9 + $0x7c] sm:$0xf] %vm2290_vm13, %v2572_v44 }
 0x228   : > { %2320 = vst.msk [vmem:[%s3747_s9 + $0x74] sm:$0xf] %vm2290_vm13, %v2570_v60 }
 0x229 PF: > { %s15_s18 = sadd.s32 1, %s2875_s18  }
 0x22a   : > { %p12_p4 = scmp.ge.s32.totalorder %s15_s18, 4  }
 0x22c   :  { %14 = sbr.rel (!%p12_p4) target bundleno = 1 (0x1), region = 77 }

// kernel: _lambda_.8
= control target key start
LH: loop header
LB: loop body
LE: loop exit
PB: predicated region body
PF: predicated region fallthrough
CT: control target
= control target key end

     0   :  { %s4012_s24 = smov 0   ;;  %s5018_s0 = inlined_call_operand.vmem [shape: bf16[2,16,16,8], index: 0, kind: input, shape index: {}]   ;;  %s5019_s1 = inlined_call_operand.vmem [shape: bf16[3,24,8], index: 1, kind: input, shape index: {}]   ;;  %s5020_s2 = inlined_call_operand.vmem [shape: f32[1,8], index: 2, kind: input, shape index: {}, may-alias: {2,5}]   ;;  %s5021_s3 = inlined_call_operand.vmem [shape: f32[1,8], index: 3, kind: input, shape index: {}, may-alias: {3,6}]   ;;  %s5022_s4 = inlined_call_operand.vmem [shape: bf16[3,24,8], index: 4, kind: input, shape index: {}]   ;;  %s5023_s5 = inlined_call_operand.vmem [shape: f32[1,8], index: 5, kind: input, shape index: {}, may-alias: {2,5}]   ;;  %s5024_s6 = inlined_call_operand.vmem [shape: f32[1,8], index: 6, kind: input, shape index: {}, may-alias: {3,6}]   ;;  %s5025_s7 = inlined_call_operand.vmem [shape: bf16[2,16,16,8], index: 7, kind: output, shape index: {}]  }
   0x1 LB: > { %s3215_s25 = sadd.s32 4294967295, %s3967_s24   ;;  %p3219_p0 = scmp.ge.s32.totalorder %s3967_s24, 1  ;;  %s3967_s24 = sphi %s4012_s24, %s17_s24  }
   0x2   : > { %p237_p1 = scmp.lt.s32.totalorder %s3967_s24, 3 }
   0x4   : > { %p238_p2 = pnand %p3219_p0, %p237_p1 }
   0x5   : > { %p4020_p3 = scmp.lt.s32.totalorder (!%p238_p2), %s3215_s25, 1  ;;  %vm312_vm0 = vcmask (!%p238_p2), 195584   ;;  %v3969_v0 = vmov (!%p238_p2), 0   ;;  %v3917_v1 = vld [vmem:[%s5019_s1 + $0xc] sm:$0xff] (!%p238_p2)   ;;  %v3918_v2 = vld [vmem:[%s5019_s1 + $0x14] ss:$0 sps:$4 sm:$0xff] (!%p238_p2)  }
   0x6   : > { %241 = sbr.rel (%p238_p2) target bundleno = 1034 (0x40a), region = 48  ;;  %314 = vst.msk [vmem:[#allocation2 + $0x8] sm:$0xff] (!%p238_p2), %vm312_vm0, %v3969_v0  ;;  %313 = vst.msk [vmem:[#allocation2] sm:$0xff] (!%p238_p2), %vm312_vm0, %v3969_v0  ;;  %vm883_vm1 = vcmask (!%p238_p2), 1043456   ;;  %3540 = vmatprep.subr.bf16.mxu0 (!%p238_p2), %v3917_v1  ;;  %s3970_s12 = smov (!%p238_p2), 8   ;;  %v4102_v20 = vld [vmem:[%s5019_s1] sm:$0xff] (!%p238_p2)  }
   0x7   : > { %315 = vst.msk [vmem:[#allocation2 + $0x10] sm:$0xff] (!%p238_p2), %vm312_vm0, %v3969_v0  ;;  %316 = vst.msk [vmem:[#allocation2 + $0x18] sm:$0xff] (!%p238_p2), %vm312_vm0, %v3969_v0  ;;  %3541 = vmatpush3.bf16.msra.mxu0 (!%p238_p2), %v3917_v1  ;;  %v885_v6 = vsel (!%p238_p2), %vm883_vm1, %v3918_v2, 0  ;;  %s3971_s13 = smov (!%p238_p2), 16   ;;  %vm540_vm2 = vcmask (!%p238_p2), 64512   ;;  %vm639_vm5 = vcmask (!%p238_p2), 130112  }
   0x8   : > { %317 = vst.msk [vmem:[#allocation2 + $0x20] sm:$0xff] (!%p238_p2), %vm312_vm0, %v3969_v0  ;;  %318 = vst.msk [vmem:[#allocation2 + $0x28] sm:$0xff] (!%p238_p2), %vm312_vm0, %v3969_v0  ;;  %3884 = vmatprep.subr.msk.bf16.mxu0 (!%p238_p2), %vm883_vm1, %v3918_v2  ;;  %vm541_vm3 = vsmask.f32 (!%p238_p2), 7938  ;;  %vm736_vm6 = vcmask (!%p238_p2), 195712   ;;  %vm3127_vm9 = vcmask (!%p238_p2), 60416  }
   0x9   : > { %319 = vst.msk [vmem:[#allocation2 + $0x30] sm:$0xff] (!%p238_p2), %vm312_vm0, %v3969_v0  ;;  %320 = vst.msk [vmem:[#allocation2 + $0x38] sm:$0xff] (!%p238_p2), %vm312_vm0, %v3969_v0  ;;  %vm737_vm7 = vsmask.f32 (!%p238_p2), 7424 }
   0xa   : > { %321 = vst.msk [vmem:[#allocation2 + $0x40] sm:$0xff] (!%p238_p2), %vm312_vm0, %v3969_v0  ;;  %322 = vst.msk [vmem:[#allocation2 + $0x48] sm:$0xff] (!%p238_p2), %vm312_vm0, %v3969_v0 }
   0xb   : > { %323 = vst.msk [vmem:[#allocation2 + $0x50] sm:$0xff] (!%p238_p2), %vm312_vm0, %v3969_v0  ;;  %324 = vst.msk [vmem:[#allocation2 + $0x58] sm:$0xff] (!%p238_p2), %vm312_vm0, %v3969_v0  ;;  %3543 = vmatpush3.bf16.msra.mxu0 (!%p238_p2), %v885_v6 }
   0xc   : > { %325 = vst.msk [vmem:[#allocation2 + $0x60] sm:$0xff] (!%p238_p2), %vm312_vm0, %v3969_v0  ;;  %326 = vst.msk [vmem:[#allocation2 + $0x68] sm:$0xff] (!%p238_p2), %vm312_vm0, %v3969_v0  ;;  %3576 = vmatprep.subr.bf16.mxu0 (!%p238_p2), %v4102_v20 }
   0xd   : > { %327 = vst.msk [vmem:[#allocation2 + $0x70] sm:$0xff] %vm312_vm0, %v3969_v0  ;;  %328 = vst.msk [vmem:[#allocation2 + $0x78] sm:$0xff] %vm312_vm0, %v3969_v0  ;;  %s5032_s25 = smov (!%p4020_p3, %s3215_s25), 1 }
   0xe   : > { %329 = vst.msk [vmem:[#allocation2 + $0x80] sm:$0xff] %vm312_vm0, %v3969_v0  ;;  %330 = vst.msk [vmem:[#allocation2 + $0x88] sm:$0xff] %vm312_vm0, %v3969_v0  ;;  %s3398_s29 = sshll.u32 %s5032_s25, 7 }
   0xf   : > { %s4076_s11 = scalar_lea.vmem %s5018_s0, %s3398_s29  ;;  %vm4179_vm4 = vmand %vm540_vm2, %vm541_vm3  ;;  %s4879_s27 = scalar_lea.vmem %s5025_s7, %s3398_s29 }
  0x10   : > { %v4079_v3 = vld [vmem:[%s4076_s11] sm:$0xff]   ;;  %v4082_v4 = vld [vmem:[%s4076_s11 + $0x10] sm:$0xff]   ;;  %v282_v5 = vld [vmem:[%s4076_s11 + $0x8] sm:$0xff]  }
  0x11   : > { %591 = vrot.lane.b32.xlu0 %v4079_v3, %s3970_s12  ;;  %595 = vrot.lane.b32.xlu1 %v4082_v4, %s3970_s12  ;;  %v412_v7 = vshrl.u32 %v4079_v3, 16  ;;  %v415_v8 = vshll.u32 %v4079_v3, 16  ;;  %v422_v9 = vshll.u32 %v282_v5, 16  ;;  %v286_v10 = vld [vmem:[%s4076_s11 + $0x18] sm:$0xff]   ;;  %v419_v12 = vshrl.u32 %v282_v5, 16  ;;  %v288_v16 = vld [vmem:[%s4076_s11 + $0x20] sm:$0xff]   ;;  %vm4302_vm8 = vmand %vm736_vm6, %vm737_vm7 }
  0x12   : > { %v429_v13 = vshll.u32 %v4082_v4, 16  ;;  %v426_v18 = vshrl.u32 %v4082_v4, 16  ;;  %v436_v21 = vshll.u32 %v286_v10, 16  ;;  %v290_v22 = vld [vmem:[%s4076_s11 + $0x28] sm:$0xff]   ;;  %v433_v24 = vshrl.u32 %v286_v10, 16  ;;  %v292_v27 = vld [vmem:[%s4076_s11 + $0x30] sm:$0xff]  }
  0x13   : > { %v656_v11 = vrot.slane %v415_v8, 1  ;;  %v658_v14 = vrot.slane %v422_v9, 1  ;;  %v443_v26 = vshll.u32 %v288_v16, 16  ;;  %v440_v29 = vshrl.u32 %v288_v16, 16  ;;  %v294_v31 = vld [vmem:[%s4076_s11 + $0x38] sm:$0xff]   ;;  %v296_v36 = vld [vmem:[%s4076_s11 + $0x40] sm:$0xff]  }
  0x14   : > { %v660_v19 = vrot.slane %v429_v13, 1  ;;  %v662_v25 = vrot.slane %v436_v21, 1  ;;  %v450_v32 = vshll.u32 %v290_v22, 16  ;;  %v414_v33 = vrot.slane %v412_v7, 7  ;;  %v4116_v45 = vld [vmem:[%s4076_s11 + $0x48] sm:$0xff]   ;;  %v4124_v51 = vld [vmem:[%s4076_s11 + $0x50] sm:$0xff]  }
  0x15   : > { %593 = vrot.lane.b32.xlu0 %v282_v5, %s3970_s12  ;;  %v657_v15 = vor.u32 %v656_v11, %v412_v7  ;;  %v659_v17 = vor.u32 %v658_v14, %v419_v12  ;;  %v664_v30 = vrot.slane %v443_v26, 1  ;;  %v421_v34 = vrot.slane %v419_v12, 7  ;;  %v4131_v56 = vld [vmem:[%s4076_s11 + $0x58] sm:$0xff]   ;;  %v4135_v60 = vld [vmem:[%s4076_s11 + $0x60] sm:$0xff]   ;;  %v4142_v1 = vld [vmem:[%s4076_s11 + $0x68] sm:$0xff]  }
  0x16   : > { %v661_v23 = vor.u32 %v660_v19, %v426_v18  ;;  %v663_v28 = vor.u32 %v662_v25, %v433_v24  ;;  %v428_v35 = vrot.slane %v426_v18, 7  ;;  %v435_v37 = vrot.slane %v433_v24, 7  ;;  %v4149_v5 = vld [vmem:[%s4076_s11 + $0x70] sm:$0xff]  }
  0x17   : > { %688 = vrot.lane.b32.xlu1 %v657_v15, %s3971_s13  ;;  %v447_v38 = vshrl.u32 %v290_v22, 16  ;;  %v457_v39 = vshll.u32 %v292_v27, 16  ;;  %v665_v40 = vor.u32 %v664_v30, %v440_v29  ;;  %v666_v41 = vrot.slane %v450_v32, 1  ;;  %v4162_v15 = vld [vmem:[%s4076_s11 + $0x78] sm:$0xff]  }
  0x18   : > { %v454_v42 = vshrl.u32 %v292_v27, 16  ;;  %v442_v43 = vrot.slane %v440_v29, 7  ;;  %v464_v46 = vshll.u32 %v294_v31, 16  ;;  %v4118_v47 = vor.u32 %v415_v8, %v414_v33  ;;  %v549_v30 = vld [vmem:[#allocation2 + $0x18] sm:$0xff] }
  0x19   : > { %597 = vrot.lane.b32.xlu0 %v286_v10, %s3970_s12  ;;  %v449_v44 = vrot.slane %v447_v38, 7  ;;  %v4120_v48 = vor.u32 %v422_v9, %v421_v34  ;;  %v461_v50 = vshrl.u32 %v294_v31, 16  ;;  %v4126_v52 = vor.u32 %v429_v13, %v428_v35 }
  0x1a   : > { %v456_v49 = vrot.slane %v454_v42, 7  ;;  %v4128_v53 = vor.u32 %v436_v21, %v435_v37  ;;  %v668_v54 = vrot.slane %v457_v39, 1  ;;  %v471_v55 = vshll.u32 %v296_v36, 16  ;;  %v555_v37 = vld [vmem:[#allocation2 + $0x28] sm:$0xff] }
  0x1b   : > { %690 = vrot.lane.b32.xlu1 %v659_v17, %s3971_s13  ;;  %v667_v57 = vor.u32 %v666_v41, %v447_v38  ;;  %v463_v58 = vrot.slane %v461_v50, 7  ;;  %v468_v59 = vshrl.u32 %v296_v36, 16  ;;  %v4137_v61 = vor.u32 %v443_v26, %v442_v43  ;;  %v543_v26 = vld [vmem:[#allocation2 + $0x8] sm:$0xff]  ;;  %v558_v38 = vld [vmem:[#allocation2 + $0x30] sm:$0xff]  ;;  %v561_v43 = vld [vmem:[#allocation2 + $0x38] sm:$0xff] }
  0x1c   : > { %v4139_v62 = vor.u32 %v450_v32, %v449_v44  ;;  %v670_v63 = vrot.slane %v464_v46, 1  ;;  %v4145_v2 = vor.u32 %v457_v39, %v456_v49  ;;  %v475_v4 = vshrl.u32 %v4116_v45, 16  ;;  %v564_v44 = vld [vmem:[#allocation2 + $0x40] sm:$0xff] }
  0x1d   : > { %599 = vrot.lane.b32.xlu0 %v288_v16, %s3970_s12  ;;  %v470_v3 = vrot.slane %v468_v59, 7  ;;  %v669_v6 = vor.u32 %v668_v54, %v454_v42  ;;  %v672_v7 = vrot.slane %v471_v55, 1  ;;  %v482_v8 = vshrl.u32 %v4124_v51, 16 }
  0x1e   : > { %v4153_v9 = vor.u32 %v464_v46, %v463_v58  ;;  %v477_v10 = vrot.slane %v475_v4, 7  ;;  %v489_v11 = vshrl.u32 %v4131_v56, 16  ;;  %v671_v12 = vor.u32 %v670_v63, %v461_v50  ;;  %v567_v46 = vld [vmem:[#allocation2 + $0x48] sm:$0xff]  ;;  %v573_v58 = vld [vmem:[#allocation2 + $0x58] sm:$0xff] }
  0x1f   : > { %692 = vrot.lane.b32.xlu1 %v661_v23, %s3971_s13  ;;  %v484_v13 = vrot.slane %v482_v8, 7  ;;  %v496_v14 = vshrl.u32 %v4135_v60, 16  ;;  %v4165_v16 = vor.u32 %v471_v55, %v470_v3  ;;  %v478_v17 = vshll.u32 %v4116_v45, 16 }
  0x20   : > { %v491_v18 = vrot.slane %v489_v11, 7  ;;  %v503_v19 = vshrl.u32 %v4142_v1, 16  ;;  %v4171_v21 = vor.u32 %v672_v7, %v468_v59  ;;  %v510_v24 = vshrl.u32 %v4149_v5, 16  ;;  %v576_v59 = vld [vmem:[#allocation2 + $0x60] sm:$0xff]  ;;  %v582_v7 = vld [vmem:[#allocation2 + $0x70] sm:$0xff] }
  0x21   : > { %601 = vrot.lane.b32.xlu0 %v290_v22, %s3970_s12  ;;  %v485_v22 = vshll.u32 %v4124_v51, 16  ;;  %v498_v23 = vrot.slane %v496_v14, 7  ;;  %v499_v33 = vshll.u32 %v4135_v60, 16  ;;  %v506_v34 = vshll.u32 %v4142_v1, 16 }
  0x22   : > { %v505_v29 = vrot.slane %v503_v19, 7  ;;  %v512_v35 = vrot.slane %v510_v24, 7  ;;  %v517_v41 = vshrl.u32 %v4162_v15, 16  ;;  %v544_v42 = vsel %vm4179_vm4, %v4118_v47, %v543_v26  ;;  %v585_v26 = vld [vmem:[#allocation2 + $0x78] sm:$0xff] }
  0x23   : > { %694 = vrot.lane.b32.xlu1 %v663_v28, %s3971_s13  ;;  %v492_v28 = vshll.u32 %v4131_v56, 16  ;;  %v487_v32 = vor.u32 %v485_v22, %v484_v13  ;;  %v674_v49 = vrot.slane %v478_v17, 1  ;;  %v501_v50 = vor.u32 %v499_v33, %v498_v23  ;;  %545 = vst [vmem:[#allocation2 + $0x8] sm:$0xff] %v544_v42 }
  0x24   : > { %v508_v54 = vor.u32 %v506_v34, %v505_v29  ;;  %v550_v55 = vsel %vm4179_vm4, %v4126_v52, %v549_v30  ;;  %v519_v63 = vrot.slane %v517_v41, 7  ;;  %v520_v13 = vshll.u32 %v4162_v15, 16 }
  0x25   : > { %603 = vrot.lane.b32.xlu0 %v292_v27, %s3970_s12  ;;  %v480_v27 = vor.u32 %v478_v17, %v477_v10  ;;  %v494_v39 = vor.u32 %v492_v28, %v491_v18  ;;  %551 = vst [vmem:[#allocation2 + $0x18] sm:$0xff] %v550_v55  ;;  %v556_v10 = vsel %vm4179_vm4, %v4137_v61, %v555_v37  ;;  %v676_v23 = vrot.slane %v485_v22, 1 }
  0x26   : > { %557 = vst [vmem:[#allocation2 + $0x28] sm:$0xff] %v556_v10  ;;  %v568_v61 = vsel %vm4179_vm4, %v4165_v16, %v567_v46  ;;  %v583_v16 = vsel %vm4179_vm4, %v508_v54, %v582_v7  ;;  %v675_v18 = vor.u32 %v674_v49, %v475_v4  ;;  %v678_v4 = vrot.slane %v492_v28, 1 }
  0x27   : > { %696 = vrot.lane.b32.xlu1 %v665_v40, %s3971_s13  ;;  %v513_v40 = vshll.u32 %v4149_v5, 16  ;;  %569 = vst [vmem:[#allocation2 + $0x48] sm:$0xff] %v568_v61  ;;  %584 = vst [vmem:[#allocation2 + $0x70] sm:$0xff] %v583_v16  ;;  %v682_v28 = vrot.slane %v506_v34, 1 }
  0x28   : > { %v679_v30 = vor.u32 %v678_v4, %v489_v11 }
  0x29   : > { %605 = vrot.lane.b32.xlu0 %v294_v31, %s3970_s12  ;;  %v546_v31 = vld [vmem:[#allocation2 + $0x10] sm:$0xff]  ;;  %v515_v47 = vor.u32 %v513_v40, %v512_v35  ;;  %v683_v11 = vor.u32 %v682_v28, %v503_v19 }
  0x2a   : > { %v547_v3 = vsel %vm4179_vm4, %v4120_v48, %v546_v31  ;;  %v562_v48 = vsel %vm4179_vm4, %v4145_v2, %v561_v43  ;;  %v574_v2 = vsel %vm4179_vm4, %v487_v32, %v573_v58  ;;  %v686_v31 = vrot.slane %v520_v13, 1 }
  0x2b   : > { %698 = vrot.lane.b32.xlu1 %v667_v57, %s3971_s13  ;;  %v570_v57 = vld [vmem:[#allocation2 + $0x50] sm:$0xff]  ;;  %548 = vst [vmem:[#allocation2 + $0x10] sm:$0xff] %v547_v3  ;;  %563 = vst [vmem:[#allocation2 + $0x38] sm:$0xff] %v562_v48  ;;  %v586_v29 = vsel %vm4179_vm4, %v515_v47, %v585_v26 }
  0x2c   : > { %575 = vst [vmem:[#allocation2 + $0x58] sm:$0xff] %v574_v2  ;;  %587 = vst [vmem:[#allocation2 + $0x78] sm:$0xff] %v586_v29  ;;  %v687_v32 = vor.u32 %v686_v31, %v517_v41 }
  0x2d   : > { %607 = vrot.lane.b32.xlu0 %v296_v36, %s3970_s12  ;;  %v552_v36 = vld [vmem:[#allocation2 + $0x20] sm:$0xff] }
  0x2e   : > { %v553_v52 = vsel %vm4179_vm4, %v4128_v53, %v552_v36  ;;  %v565_v53 = vsel %vm4179_vm4, %v4153_v9, %v564_v44  ;;  %v577_v9 = vsel %vm4179_vm4, %v494_v39, %v576_v59  ;;  %v3920_v39 = vld [vmem:[%s5019_s1 + $0x8] ss:$0 sps:$4 sm:$0xff]  }
  0x2f   : > { %700 = vrot.lane.b32.xlu1 %v669_v6, %s3971_s13  ;;  %v579_v6 = vld [vmem:[#allocation2 + $0x68] sm:$0xff]  ;;  %554 = vst [vmem:[#allocation2 + $0x20] sm:$0xff] %v553_v52  ;;  %566 = vst [vmem:[#allocation2 + $0x40] sm:$0xff] %v565_v53  ;;  %v1106_v49 = vsel %vm883_vm1, %v3920_v39, 0 }
  0x30   : > { %578 = vst [vmem:[#allocation2 + $0x60] sm:$0xff] %v577_v9  ;;  %v580_v17 = vsel %vm4179_vm4, %v501_v50, %v579_v6  ;;  %v4342_v50 = vld [vmem:[%s5019_s1 + $0x18] sm:$0xff]  }
  0x31   : > { %609 = vrot.lane.b32.xlu0 %v4116_v45, %s3970_s12  ;;  %581 = vst [vmem:[#allocation2 + $0x68] sm:$0xff] %v580_v17  ;;  %v677_v45 = vor.u32 %v676_v23, %v482_v8 }
  0x33   : > { %702 = vrot.lane.b32.xlu1 %v671_v12, %s3971_s13  ;;  %v559_v12 = vsel %vm4179_vm4, %v4139_v62, %v558_v38  ;;  %v571_v62 = vsel %vm4179_vm4, %v480_v27, %v570_v57  ;;  %v522_v27 = vor.u32 %v520_v13, %v519_v63 }
  0x34   : > { %560 = vst [vmem:[#allocation2 + $0x30] sm:$0xff] %v559_v12  ;;  %572 = vst [vmem:[#allocation2 + $0x50] sm:$0xff] %v571_v62 }
  0x35   : > { %611 = vrot.lane.b32.xlu0 %v4124_v51, %s3970_s12  ;;  %v680_v51 = vrot.slane %v499_v33, 1 }
  0x37   : > { %704 = vrot.lane.b32.xlu1 %v4171_v21, %s3971_s13  ;;  %v588_v21 = vld [vmem:[#allocation2 + $0x80] sm:$0xff]  ;;  %v681_v8 = vor.u32 %v680_v51, %v496_v14 }
  0x38   : > { %v589_v22 = vsel %vm4179_vm4, %v522_v27, %v588_v21  ;;  %v4290_v14 = vld [vmem:[#allocation2] sm:$0xff] }
  0x39   : > { %613 = vrot.lane.b32.xlu0 %v4131_v56, %s3970_s12  ;;  %590 = vst [vmem:[#allocation2 + $0x80] sm:$0xff] %v589_v22  ;;  %v684_v56 = vrot.slane %v513_v40, 1  ;;  %1669 = vst.msk [vmem:[#allocation2] sm:$0xff] %vm312_vm0, %v3969_v0 }
  0x3b   : > { %706 = vrot.lane.b32.xlu1 %v675_v18, %s3971_s13 }
  0x3d   : > { %615 = vrot.lane.b32.xlu0 %v4135_v60, %s3970_s12  ;;  %v685_v60 = vor.u32 %v684_v56, %v510_v24 }
  0x3f   : > { %708 = vrot.lane.b32.xlu1 %v677_v45, %s3971_s13 }
  0x41   : > { %617 = vrot.lane.b32.xlu0 %v4142_v1, %s3970_s12 }
  0x43   : > { %710 = vrot.lane.b32.xlu1 %v679_v30, %s3971_s13 }
  0x45   : > { %619 = vrot.lane.b32.xlu0 %v4149_v5, %s3970_s12 }
  0x47   : > { %712 = vrot.lane.b32.xlu1 %v681_v8, %s3971_s13 }
  0x49   : > { %621 = vrot.lane.b32.xlu0 %v4162_v15, %s3970_s12 }
  0x4b   : > { %714 = vrot.lane.b32.xlu1 %v683_v11, %s3971_s13 }
  0x4d   : > { %716 = vrot.lane.b32.xlu0 %v685_v60, %s3971_s13 }
  0x4f   : > { %718 = vrot.lane.b32.xlu1 %v687_v32, %s3971_s13 }
  0x83   : > { %v592_v1 = vpop.permute.xlu0 %591  ;;  %v596_v19 = vpop.permute.xlu1 %595 }
  0x84   : > { %640 = vst.msk [vmem:[#allocation2 + $0x8] sm:$0xff] %vm639_vm5, %v592_v1  ;;  %642 = vst.msk [vmem:[#allocation2 + $0x18] sm:$0xff] %vm639_vm5, %v596_v19 }
  0x87   : > { %v594_v5 = vpop.permute.xlu0 %593 }
  0x88   : > { %641 = vst.msk [vmem:[#allocation2 + $0x10] sm:$0xff] %vm639_vm5, %v594_v5 }
  0x89   : > { %v689_v15 = vpop.permute.xlu1 %688 }
  0x8b   : > { %v739_v33 = vld [vmem:[#allocation2 + $0x8] sm:$0xff]  ;;  %v598_v34 = vpop.permute.xlu0 %597  ;;  %v745_v41 = vld [vmem:[#allocation2 + $0x18] sm:$0xff] }
  0x8c   : > { %v4308_v35 = vsel %vm4302_vm8, %v689_v15, %v739_v33  ;;  %643 = vst.msk [vmem:[#allocation2 + $0x20] sm:$0xff] %vm639_vm5, %v598_v34  ;;  %v1285_v34 = vld [vmem:[#allocation2 + $0x88] sm:$0xff] }
  0x8d   : > { %741 = vst [vmem:[#allocation2 + $0x8] sm:$0xff] %v4308_v35  ;;  %v691_v36 = vpop.permute.xlu1 %690  ;;  %3544 = vmatprep.mubr.msk.bf16.mxu0 %vm312_vm0, %v4308_v35  ;;  %1686 = vst.msk [vmem:[#allocation2 + $0x88] sm:$0xff] %vm312_vm0, %v3969_v0 }
  0x8e   : > { %1670 = vst.msk [vmem:[#allocation2 + $0x8] sm:$0xff] %vm312_vm0, %v3969_v0 }
  0x8f   : > { %v742_v37 = vld [vmem:[#allocation2 + $0x10] sm:$0xff]  ;;  %v600_v38 = vpop.permute.xlu0 %599 }
  0x90   : > { %v4321_v40 = vsel %vm4302_vm8, %v691_v36, %v742_v37  ;;  %644 = vst.msk [vmem:[#allocation2 + $0x28] sm:$0xff] %vm639_vm5, %v600_v38  ;;  %v3922_v38 = vld [vmem:[%s5019_s1 + $0x20] ss:$0 sps:$4 sm:$0xff]  }
  0x91   : > { %744 = vst [vmem:[#allocation2 + $0x10] sm:$0xff] %v4321_v40  ;;  %v693_v42 = vpop.permute.xlu1 %692  ;;  %3545 = vmatmul.mubr.msk.bf16.vlgmr.msra.gmra.mrb[0].mxu0 %vm312_vm0, %v4321_v40 }
  0x92   : > { %v4329_v43 = vsel %vm4302_vm8, %v693_v42, %v745_v41  ;;  %3577 = vmatpush3.bf16.msra.mxu0 %v4102_v20  ;;  %1671 = vst.msk [vmem:[#allocation2 + $0x10] sm:$0xff] %vm312_vm0, %v3969_v0 }
  0x93   : > { %747 = vst [vmem:[#allocation2 + $0x18] sm:$0xff] %v4329_v43  ;;  %v602_v44 = vpop.permute.xlu0 %601  ;;  %v748_v46 = vld [vmem:[#allocation2 + $0x20] sm:$0xff]  ;;  %3548 = vmatprep.mubr.msk.bf16.mxu0 %vm312_vm0, %v4329_v43  ;;  %3885 = vmatprep.subr.msk.bf16.mxu0 %vm883_vm1, %v3920_v39 }
  0x94   : > { %645 = vst.msk [vmem:[#allocation2 + $0x30] sm:$0xff] %vm639_vm5, %v602_v44  ;;  %v4531_v39 = vld [vmem:[%s5021_s3] ss:$0 sm:$0xff] }
  0x95   : > { %1672 = vst.msk [vmem:[#allocation2 + $0x18] sm:$0xff] %vm312_vm0, %v3969_v0  ;;  %v695_v20 = vpop.permute.xlu1 %694 }
  0x96   : > { %v4349_v54 = vsel %vm4302_vm8, %v695_v20, %v748_v46  ;;  %3579 = vmatpush3.bf16.msra.mxu0 %v1106_v49 }
  0x97   : > { %750 = vst [vmem:[#allocation2 + $0x20] sm:$0xff] %v4349_v54  ;;  %v604_v55 = vpop.permute.xlu0 %603  ;;  %v751_v57 = vld [vmem:[#allocation2 + $0x28] sm:$0xff]  ;;  %3612 = vmatprep.subr.bf16.mxu0 %v4342_v50 }
  0x98   : > { %646 = vst.msk [vmem:[#allocation2 + $0x38] sm:$0xff] %vm639_vm5, %v604_v55  ;;  %v3924_v55 = vld [vmem:[%s5022_s4 + $0x14] ss:$0 sps:$4 sm:$0xff]  }
  0x99   : > { %1673 = vst.msk [vmem:[#allocation2 + $0x20] sm:$0xff] %vm312_vm0, %v3969_v0  ;;  %v697_v58 = vpop.permute.xlu1 %696  ;;  %3549 = vmatmul.mubr.msk.bf16.gmra.mrb[4].mxu0 %vm312_vm0, %v4349_v54 }
  0x9a   : > { %v4360_v59 = vsel %vm4302_vm8, %v697_v58, %v751_v57 }
  0x9b   : > { %753 = vst [vmem:[#allocation2 + $0x28] sm:$0xff] %v4360_v59  ;;  %v606_v47 = vpop.permute.xlu0 %605  ;;  %v754_v63 = vld [vmem:[#allocation2 + $0x30] sm:$0xff]  ;;  %3552 = vmatprep.mubr.msk.bf16.mxu0 %vm312_vm0, %v4360_v59 }
  0x9c   : > { %647 = vst.msk [vmem:[#allocation2 + $0x40] sm:$0xff] %vm639_vm5, %v606_v47 }
  0x9d   : > { %1674 = vst.msk [vmem:[#allocation2 + $0x28] sm:$0xff] %vm312_vm0, %v3969_v0  ;;  %v699_v3 = vpop.permute.xlu1 %698 }
  0x9e   : > { %v4370_v52 = vsel %vm4302_vm8, %v699_v3, %v754_v63 }
  0x9f   : > { %756 = vst [vmem:[#allocation2 + $0x30] sm:$0xff] %v4370_v52  ;;  %v608_v6 = vpop.permute.xlu0 %607  ;;  %v757_v7 = vld [vmem:[#allocation2 + $0x38] sm:$0xff] }
  0xa0   : > { %648 = vst.msk [vmem:[#allocation2 + $0x48] sm:$0xff] %vm639_vm5, %v608_v6 }
  0xa1   : > { %1675 = vst.msk [vmem:[#allocation2 + $0x30] sm:$0xff] %vm312_vm0, %v3969_v0  ;;  %v701_v10 = vpop.permute.xlu1 %700  ;;  %3553 = vmatmul.mubr.msk.bf16.gmra.mrb[8].mxu0 %vm312_vm0, %v4370_v52 }
  0xa2   : > { %v4380_v12 = vsel %vm4302_vm8, %v701_v10, %v757_v7 }
  0xa3   : > { %759 = vst [vmem:[#allocation2 + $0x38] sm:$0xff] %v4380_v12  ;;  %v610_v48 = vpop.permute.xlu0 %609  ;;  %v760_v53 = vld [vmem:[#allocation2 + $0x40] sm:$0xff]  ;;  %3556 = vmatprep.mubr.msk.bf16.mxu0 %vm312_vm0, %v4380_v12 }
  0xa4   : > { %649 = vst.msk [vmem:[#allocation2 + $0x50] sm:$0xff] %vm639_vm5, %v610_v48 }
  0xa5   : > { %1676 = vst.msk [vmem:[#allocation2 + $0x38] sm:$0xff] %vm312_vm0, %v3969_v0  ;;  %v703_v61 = vpop.permute.xlu1 %702 }
  0xa6   : > { %v4390_v62 = vsel %vm4302_vm8, %v703_v61, %v760_v53 }
  0xa7   : > { %762 = vst [vmem:[#allocation2 + $0x40] sm:$0xff] %v4390_v62  ;;  %v612_v2 = vpop.permute.xlu0 %611  ;;  %v763_v9 = vld [vmem:[#allocation2 + $0x48] sm:$0xff] }
  0xa8   : > { %650 = vst.msk [vmem:[#allocation2 + $0x58] sm:$0xff] %vm639_vm5, %v612_v2 }
  0xa9   : > { %1677 = vst.msk [vmem:[#allocation2 + $0x40] sm:$0xff] %vm312_vm0, %v3969_v0  ;;  %v705_v13 = vpop.permute.xlu1 %704  ;;  %3557 = vmatmul.mubr.msk.bf16.gmra.mrb[12].mxu0 %vm312_vm0, %v4390_v62 }
  0xaa   : > { %v4400_v17 = vsel %vm4302_vm8, %v705_v13, %v763_v9 }
  0xab   : > { %765 = vst [vmem:[#allocation2 + $0x48] sm:$0xff] %v4400_v17  ;;  %v614_v16 = vpop.permute.xlu0 %613  ;;  %v766_v18 = vld [vmem:[#allocation2 + $0x50] sm:$0xff]  ;;  %3560 = vmatprep.mubr.msk.bf16.mxu0 %vm312_vm0, %v4400_v17 }
  0xac   : > { %651 = vst.msk [vmem:[#allocation2 + $0x60] sm:$0xff] %vm639_vm5, %v614_v16 }
  0xad   : > { %1678 = vst.msk [vmem:[#allocation2 + $0x48] sm:$0xff] %vm312_vm0, %v3969_v0  ;;  %v707_v23 = vpop.permute.xlu1 %706 }
  0xae   : > { %v4410_v26 = vsel %vm4302_vm8, %v707_v23, %v766_v18 }
  0xaf   : > { %768 = vst [vmem:[#allocation2 + $0x50] sm:$0xff] %v4410_v26  ;;  %v616_v27 = vpop.permute.xlu0 %615  ;;  %v769_v29 = vld [vmem:[#allocation2 + $0x58] sm:$0xff] }
  0xb0   : > { %652 = vst.msk [vmem:[#allocation2 + $0x68] sm:$0xff] %vm639_vm5, %v616_v27 }
  0xb1   : > { %1679 = vst.msk [vmem:[#allocation2 + $0x50] sm:$0xff] %vm312_vm0, %v3969_v0  ;;  %v709_v45 = vpop.permute.xlu1 %708  ;;  %3561 = vmatmul.mubr.msk.bf16.gmra.mrb[16].mxu0 %vm312_vm0, %v4410_v26 }
  0xb2   : > { %v4420_v4 = vsel %vm4302_vm8, %v709_v45, %v769_v29 }
  0xb3   : > { %771 = vst [vmem:[#allocation2 + $0x58] sm:$0xff] %v4420_v4  ;;  %v618_v21 = vpop.permute.xlu0 %617  ;;  %v772_v22 = vld [vmem:[#allocation2 + $0x60] sm:$0xff]  ;;  %3564 = vmatprep.mubr.msk.bf16.mxu0 %vm312_vm0, %v4420_v4 }
  0xb4   : > { %653 = vst.msk [vmem:[#allocation2 + $0x70] sm:$0xff] %vm639_vm5, %v618_v21 }
  0xb5   : > { %1680 = vst.msk [vmem:[#allocation2 + $0x58] sm:$0xff] %vm312_vm0, %v3969_v0  ;;  %v711_v30 = vpop.permute.xlu1 %710 }
  0xb6   : > { %v4430_v51 = vsel %vm4302_vm8, %v711_v30, %v772_v22  ;;  %v1818_v30 = vld [vmem:[#allocation2 + $0x10] sm:$0xff] }
  0xb7   : > { %774 = vst [vmem:[#allocation2 + $0x60] sm:$0xff] %v4430_v51  ;;  %v620_v8 = vpop.permute.xlu0 %619  ;;  %v775_v28 = vld [vmem:[#allocation2 + $0x68] sm:$0xff] }
  0xb8   : > { %654 = vst.msk [vmem:[#allocation2 + $0x78] sm:$0xff] %vm639_vm5, %v620_v8 }
  0xb9   : > { %1681 = vst.msk [vmem:[#allocation2 + $0x60] sm:$0xff] %vm312_vm0, %v3969_v0  ;;  %v713_v56 = vpop.permute.xlu1 %712  ;;  %3565 = vmatmul.mubr.msk.bf16.gmra.mrb[20].mxu0 %vm312_vm0, %v4430_v51 }
  0xba   : > { %v776_v11 = vsel %vm4302_vm8, %v713_v56, %v775_v28  ;;  %v1815_v56 = vld [vmem:[#allocation2 + $0x8] sm:$0xff] }
  0xbb   : > { %777 = vst [vmem:[#allocation2 + $0x68] sm:$0xff] %v776_v11  ;;  %v622_v31 = vpop.permute.xlu0 %621  ;;  %v778_v60 = vld [vmem:[#allocation2 + $0x70] sm:$0xff]  ;;  %3568 = vmatprep.mubr.msk.bf16.mxu0 %vm312_vm0, %v776_v11 }
  0xbc   : > { %655 = vst.msk [vmem:[#allocation2 + $0x80] sm:$0xff] %vm639_vm5, %v622_v31 }
  0xbd   : > { %1682 = vst.msk [vmem:[#allocation2 + $0x68] sm:$0xff] %vm312_vm0, %v3969_v0  ;;  %v715_v32 = vpop.permute.xlu1 %714 }
  0xbe   : > { %v779_v1 = vsel %vm4302_vm8, %v715_v32, %v778_v60 }
  0xbf   : > { %780 = vst [vmem:[#allocation2 + $0x70] sm:$0xff] %v779_v1  ;;  %v781_v19 = vld [vmem:[#allocation2 + $0x78] sm:$0xff]  ;;  %v717_v5 = vpop.permute.xlu0 %716 }
  0xc0   : > { %v782_v15 = vsel %vm4302_vm8, %v717_v5, %v781_v19  ;;  %1683 = vst.msk [vmem:[#allocation2 + $0x70] sm:$0xff] %vm312_vm0, %v3969_v0 }
  0xc1   : > { %783 = vst [vmem:[#allocation2 + $0x78] sm:$0xff] %v782_v15  ;;  %v719_v33 = vpop.permute.xlu1 %718  ;;  %3569 = vmatmul.mubr.msk.bf16.gmra.mrb[24].mxu0 %vm312_vm0, %v779_v1 }
  0xc2   : > { %3572 = vmatprep.mubr.msk.bf16.mxu0 %vm312_vm0, %v782_v15  ;;  %1684 = vst.msk [vmem:[#allocation2 + $0x78] sm:$0xff] %vm312_vm0, %v3969_v0 }
  0xc3   : > { %v784_v36 = vld [vmem:[#allocation2 + $0x80] sm:$0xff] }
  0xc4   : > { %v785_v37 = vsel %vm4302_vm8, %v719_v33, %v784_v36 }
  0xc5   : > { %786 = vst [vmem:[#allocation2 + $0x80] sm:$0xff] %v785_v37 }
  0xc6   : > { %1685 = vst.msk [vmem:[#allocation2 + $0x80] sm:$0xff] %vm312_vm0, %v3969_v0  ;;  %v1348_v0 = vsel %vm883_vm1, %v3922_v38, 0 }
  0xc9   : > { %3573 = vmatmul.mubr.msk.bf16.gmra.mrb[28].mxu0 %vm312_vm0, %v785_v37 }
  0xca   : > { %3580 = vmatprep.mubr.msk.bf16.mxu0 %vm312_vm0, %v4290_v14  ;;  %v4526_v14 = vld [vmem:[%s5020_s2] ss:$0 sm:$0xff] }
  0xd1   : > { %3581 = vmatmul.mubr.msk.bf16.vlgmr.msra.gmra.mrb[0].mxu0 %vm312_vm0, %v4308_v35 }
  0xd2   : > { %3613 = vmatpush3.bf16.msra.mxu0 %v4342_v50  ;;  %3584 = vmatprep.mubr.msk.bf16.mxu0 %vm312_vm0, %v4321_v40 }
  0xd3   : > { %3886 = vmatprep.subr.msk.bf16.mxu0 %vm883_vm1, %v3922_v38 }
  0xd6   : > { %3615 = vmatpush3.bf16.msra.mxu0 %v1348_v0 }
  0xd9   : > { %3585 = vmatmul.mubr.msk.bf16.gmra.mrb[4].mxu0 %vm312_vm0, %v4329_v43 }
  0xda   : > { %3588 = vmatprep.mubr.msk.bf16.mxu0 %vm312_vm0, %v4349_v54 }
  0xe1   : > { %3589 = vmatmul.mubr.msk.bf16.gmra.mrb[8].mxu0 %vm312_vm0, %v4360_v59 }
  0xe2   : > { %3592 = vmatprep.mubr.msk.bf16.mxu0 %vm312_vm0, %v4370_v52 }
  0xe9   : > { %3593 = vmatmul.mubr.msk.bf16.gmra.mrb[12].mxu0 %vm312_vm0, %v4380_v12 }
  0xea   : > { %3596 = vmatprep.mubr.msk.bf16.mxu0 %vm312_vm0, %v4390_v62 }
  0xf1   : > { %3597 = vmatmul.mubr.msk.bf16.gmra.mrb[16].mxu0 %vm312_vm0, %v4400_v17 }
  0xf2   : > { %3600 = vmatprep.mubr.msk.bf16.mxu0 %vm312_vm0, %v4410_v26 }
  0xf9   : > { %3601 = vmatmul.mubr.msk.bf16.gmra.mrb[20].mxu0 %vm312_vm0, %v4420_v4 }
  0xfa   : > { %3604 = vmatprep.mubr.msk.bf16.mxu0 %vm312_vm0, %v4430_v51 }
 0x101   : > { %3605 = vmatmul.mubr.msk.bf16.gmra.mrb[24].mxu0 %vm312_vm0, %v776_v11 }
 0x102   : > { %3608 = vmatprep.mubr.msk.bf16.mxu0 %vm312_vm0, %v779_v1 }
 0x109   : > { %3609 = vmatmul.mubr.msk.bf16.gmra.mrb[28].mxu0 %vm312_vm0, %v782_v15 }
 0x10a   : > { %3616 = vmatprep.mubr.msk.bf16.mxu0 %vm312_vm0, %v4321_v40  ;;  %v3923_v40 = vld [vmem:[%s5022_s4 + $0xc] sm:$0xff]  }
 0x10b   : > { %3648 = vmatprep.subr.bf16.mxu1 %v3923_v40 }
 0x10c   : > { %3649 = vmatpush3.bf16.msra.mxu1 %v3923_v40 }
 0x10d   : > { %3887 = vmatprep.subr.msk.bf16.mxu1 %vm883_vm1, %v3924_v55 }
 0x111   : > { %3617 = vmatmul.mubr.msk.bf16.vlgmr.msra.gmra.mrb[0].mxu0 %vm312_vm0, %v4329_v43 }
 0x112   : > { %3620 = vmatprep.mubr.msk.bf16.mxu0 %vm312_vm0, %v4349_v54 }
 0x119   : > { %3621 = vmatmul.mubr.msk.bf16.gmra.mrb[4].mxu0 %vm312_vm0, %v4360_v59  ;;  %v2168_v59 = vsel %vm883_vm1, %v3924_v55, 0 }
 0x11a   : > { %3624 = vmatprep.mubr.msk.bf16.mxu0 %vm312_vm0, %v4370_v52  ;;  %3651 = vmatpush3.bf16.msra.mxu1 %v2168_v59 }
 0x121   : > { %3625 = vmatmul.mubr.msk.bf16.gmra.mrb[8].mxu0 %vm312_vm0, %v4380_v12 }
 0x122   : > { %3628 = vmatprep.mubr.msk.bf16.mxu0 %vm312_vm0, %v4390_v62 }
 0x129   : > { %3629 = vmatmul.mubr.msk.bf16.gmra.mrb[12].mxu0 %vm312_vm0, %v4400_v17 }
 0x12a   : > { %3632 = vmatprep.mubr.msk.bf16.mxu0 %vm312_vm0, %v4410_v26 }
 0x131   : > { %3633 = vmatmul.mubr.msk.bf16.gmra.mrb[16].mxu0 %vm312_vm0, %v4420_v4 }
 0x132   : > { %3636 = vmatprep.mubr.msk.bf16.mxu0 %vm312_vm0, %v4430_v51 }
 0x139   : > { %3637 = vmatmul.mubr.msk.bf16.gmra.mrb[20].mxu0 %vm312_vm0, %v776_v11 }
 0x13a   : > { %3640 = vmatprep.mubr.msk.bf16.mxu0 %vm312_vm0, %v779_v1 }
 0x141   : > { %3641 = vmatmul.mubr.msk.bf16.gmra.mrb[24].mxu0 %vm312_vm0, %v782_v15 }
 0x142   : > { %3644 = vmatprep.mubr.msk.bf16.mxu0 %vm312_vm0, %v785_v37 }
 0x149   : > { %3645 = vmatmul.mubr.msk.bf16.gmra.mrb[28].mxu0 %vm312_vm0, %v1285_v34 }
 0x1e4   : > { %v3618_v35 = vpop.f32.mrb[0].mxu0 }
 0x1e5   : > { %v1552_v41 = vmul.f32 %v3618_v35, %v4526_v14  ;;  %v1384_v42 = vpop.f32.mrb[1].mxu0 }
 0x1e6   : > { %v1550_v43 = vmul.f32 %v4526_v14, %v1384_v42  ;;  %v3619_v44 = vpop.f32.mrb[2].mxu0 }
 0x1e7   : > { %v1591_v46 = vadd.f32 %v4531_v39, %v1552_v41  ;;  %v1553_v49 = vmul.f32 %v3619_v44, %v4526_v14  ;;  %v1387_v50 = vpop.f32.mrb[3].mxu0 }
 0x1e8   : > { %v1589_v20 = vadd.f32 %v4531_v39, %v1550_v43  ;;  %v1551_v54 = vmul.f32 %v4526_v14, %v1387_v50 }
 0x1e9   : > { %v1592_v57 = vadd.f32 %v4531_v39, %v1553_v49  ;;  %v1623_v47 = vmax.f32 %v1591_v46, 0.0 }
 0x1ea   : > { %v1590_v58 = vadd.f32 %v4531_v39, %v1551_v54  ;;  %v1621_v3 = vmax.f32 %v1589_v20, 0.0  ;;  %v4574_v20 = vld [vmem:[%s5022_s4] sm:$0xff]  }
 0x1eb   : > { %v1624_v63 = vmax.f32 %v1592_v57, 0.0  ;;  %3684 = vmatprep.subr.bf16.mxu1 %v4574_v20 }
 0x1ec   : > { %v1622_v52 = vmax.f32 %v1590_v58, 0.0  ;;  %v3622_v6 = vpop.f32.mrb[4].mxu0 }
 0x1ed   : > { %v1556_v7 = vmul.f32 %v3622_v6, %v4526_v14  ;;  %v1400_v10 = vpop.f32.mrb[5].mxu0  ;;  %v1654_v12 = vpack.c.bf16 %v1624_v63, %v1623_v47  ;;  %v1824_v63 = vld [vmem:[#allocation2 + $0x20] sm:$0xff] }
 0x1ee   : > { %v1554_v48 = vmul.f32 %v4526_v14, %v1400_v10  ;;  %v3623_v53 = vpop.f32.mrb[6].mxu0  ;;  %v1653_v61 = vpack.c.bf16 %v1622_v52, %v1621_v3 }
 0x1ef   : > { %v1595_v62 = vadd.f32 %v4531_v39, %v1556_v7  ;;  %v1557_v2 = vmul.f32 %v3623_v53, %v4526_v14  ;;  %1881 = vrot.lane.b32.xlu1 %v1654_v12, %s3970_s12  ;;  %v1403_v9 = vpop.f32.mrb[7].mxu0  ;;  %v1695_v13 = vshrl.u32 %v1654_v12, 16  ;;  %v1698_v17 = vshll.u32 %v1654_v12, 16  ;;  %v1821_v7 = vld [vmem:[#allocation2 + $0x18] sm:$0xff] }
 0x1f0   : > { %v1593_v16 = vadd.f32 %v4531_v39, %v1554_v48  ;;  %v1555_v18 = vmul.f32 %v4526_v14, %v1403_v9  ;;  %1879 = vrot.lane.b32.xlu0 %v1653_v61, %s3970_s12  ;;  %v1688_v23 = vshrl.u32 %v1653_v61, 16  ;;  %v1691_v26 = vshll.u32 %v1653_v61, 16 }
 0x1f1   : > { %v1596_v27 = vadd.f32 %v4531_v39, %v1557_v2  ;;  %v1697_v29 = vrot.slane %v1695_v13, 7  ;;  %v1945_v22 = vrot.slane %v1698_v17, 1  ;;  %v1627_v51 = vmax.f32 %v1595_v62, 0.0 }
 0x1f2   : > { %v1594_v45 = vadd.f32 %v4531_v39, %v1555_v18  ;;  %v1943_v4 = vrot.slane %v1691_v26, 1  ;;  %v1690_v21 = vrot.slane %v1688_v23, 7  ;;  %v1625_v11 = vmax.f32 %v1593_v16, 0.0 }
 0x1f3   : > { %v1628_v8 = vmax.f32 %v1596_v27, 0.0  ;;  %v1700_v28 = vor.u32 %v1698_v17, %v1697_v29  ;;  %v1946_v38 = vor.u32 %v1945_v22, %v1695_v13 }
 0x1f4   : > { %v1626_v31 = vmax.f32 %v1594_v45, 0.0  ;;  %v3626_v60 = vpop.f32.mrb[8].mxu0  ;;  %v1944_v32 = vor.u32 %v1943_v4, %v1688_v23  ;;  %v1693_v1 = vor.u32 %v1691_v26, %v1690_v21 }
 0x1f5   : > { %v1560_v19 = vmul.f32 %v3626_v60, %v4526_v14  ;;  %v1416_v5 = vpop.f32.mrb[9].mxu0  ;;  %v1656_v15 = vpack.c.bf16 %v1628_v8, %v1627_v51  ;;  %v1819_v33 = vsel %vm4179_vm4, %v1700_v28, %v1818_v30 }
 0x1f6   : > { %v1558_v34 = vmul.f32 %v4526_v14, %v1416_v5  ;;  %1975 = vrot.lane.b32.xlu1 %v1944_v32, %s3971_s13  ;;  %v3627_v36 = vpop.f32.mrb[10].mxu0  ;;  %v1655_v37 = vpack.c.bf16 %v1626_v31, %v1625_v11  ;;  %1820 = vst [vmem:[#allocation2 + $0x10] sm:$0xff] %v1819_v33  ;;  %v1816_v0 = vsel %vm4179_vm4, %v1693_v1, %v1815_v56  ;;  %v1830_v1 = vld [vmem:[#allocation2 + $0x30] sm:$0xff]  ;;  %v1827_v33 = vld [vmem:[#allocation2 + $0x28] sm:$0xff] }
 0x1f7   : > { %v1599_v35 = vadd.f32 %v4531_v39, %v1560_v19  ;;  %v1561_v40 = vmul.f32 %v3627_v36, %v4526_v14  ;;  %v1419_v41 = vpop.f32.mrb[11].mxu0  ;;  %v1709_v42 = vshrl.u32 %v1656_v15, 16  ;;  %v1712_v43 = vshll.u32 %v1656_v15, 16  ;;  %1817 = vst [vmem:[#allocation2 + $0x8] sm:$0xff] %v1816_v0 }
 0x1f8   : > { %v1597_v44 = vadd.f32 %v4531_v39, %v1558_v34  ;;  %v1559_v46 = vmul.f32 %v4526_v14, %v1419_v41  ;;  %1883 = vrot.lane.b32.xlu0 %v1655_v37, %s3970_s12  ;;  %v1702_v49 = vshrl.u32 %v1655_v37, 16  ;;  %v1705_v50 = vshll.u32 %v1655_v37, 16 }
 0x1f9   : > { %v1600_v54 = vadd.f32 %v4531_v39, %v1561_v40  ;;  %v1711_v55 = vrot.slane %v1709_v42, 7  ;;  %v1949_v47 = vrot.slane %v1712_v43, 1  ;;  %v1631_v3 = vmax.f32 %v1599_v35, 0.0 }
 0x1fa   : > { %v1598_v57 = vadd.f32 %v4531_v39, %v1559_v46  ;;  %1977 = vrot.lane.b32.xlu1 %v1946_v38, %s3971_s13  ;;  %v1947_v58 = vrot.slane %v1705_v50, 1  ;;  %v1704_v59 = vrot.slane %v1702_v49, 7  ;;  %v1629_v10 = vmax.f32 %v1597_v44, 0.0 }
 0x1fb   : > { %v1632_v52 = vmax.f32 %v1600_v54, 0.0  ;;  %v1714_v6 = vor.u32 %v1712_v43, %v1711_v55  ;;  %v1950_v23 = vor.u32 %v1949_v47, %v1709_v42 }
 0x1fc   : > { %v1630_v12 = vmax.f32 %v1598_v57, 0.0  ;;  %1885 = vrot.lane.b32.xlu0 %v1656_v15, %s3970_s12  ;;  %v3630_v48 = vpop.f32.mrb[12].mxu0  ;;  %v1948_v53 = vor.u32 %v1947_v58, %v1702_v49  ;;  %v1707_v61 = vor.u32 %v1705_v50, %v1704_v59 }
 0x1fd   : > { %v1564_v62 = vmul.f32 %v3630_v48, %v4526_v14  ;;  %v1432_v2 = vpop.f32.mrb[13].mxu0  ;;  %v1658_v9 = vpack.c.bf16 %v1632_v52, %v1631_v3  ;;  %v1825_v13 = vsel %vm4179_vm4, %v1714_v6, %v1824_v63 }
 0x1fe   : > { %v1562_v17 = vmul.f32 %v4526_v14, %v1432_v2  ;;  %1979 = vrot.lane.b32.xlu1 %v1948_v53, %s3971_s13  ;;  %v3631_v16 = vpop.f32.mrb[14].mxu0  ;;  %v1657_v18 = vpack.c.bf16 %v1630_v12, %v1629_v10  ;;  %v1822_v26 = vsel %vm4179_vm4, %v1707_v61, %v1821_v7  ;;  %1826 = vst [vmem:[#allocation2 + $0x20] sm:$0xff] %v1825_v13  ;;  %v1836_v61 = vld [vmem:[#allocation2 + $0x40] sm:$0xff]  ;;  %v1833_v13 = vld [vmem:[#allocation2 + $0x38] sm:$0xff] }
 0x1ff   : > { %v1603_v27 = vadd.f32 %v4531_v39, %v1564_v62  ;;  %v1565_v29 = vmul.f32 %v3631_v16, %v4526_v14  ;;  %v1435_v45 = vpop.f32.mrb[15].mxu0  ;;  %v1723_v4 = vshrl.u32 %v1658_v9, 16  ;;  %v1726_v21 = vshll.u32 %v1658_v9, 16  ;;  %1823 = vst [vmem:[#allocation2 + $0x18] sm:$0xff] %v1822_v26 }
 0x200   : > { %v1601_v22 = vadd.f32 %v4531_v39, %v1562_v17  ;;  %v1563_v30 = vmul.f32 %v4526_v14, %v1435_v45  ;;  %1887 = vrot.lane.b32.xlu0 %v1657_v18, %s3970_s12  ;;  %v1716_v51 = vshrl.u32 %v1657_v18, 16  ;;  %v1719_v8 = vshll.u32 %v1657_v18, 16 }
 0x201   : > { %v1604_v28 = vadd.f32 %v4531_v39, %v1565_v29  ;;  %v1725_v56 = vrot.slane %v1723_v4, 7  ;;  %v1953_v32 = vrot.slane %v1726_v21, 1  ;;  %v1635_v19 = vmax.f32 %v1603_v27, 0.0 }
 0x202   : > { %v1602_v11 = vadd.f32 %v4531_v39, %v1563_v30  ;;  %1981 = vrot.lane.b32.xlu1 %v1950_v23, %s3971_s13  ;;  %v1951_v31 = vrot.slane %v1719_v8, 1  ;;  %v1718_v60 = vrot.slane %v1716_v51, 7  ;;  %v1633_v34 = vmax.f32 %v1601_v22, 0.0 }
 0x203   : > { %v1636_v5 = vmax.f32 %v1604_v28, 0.0  ;;  %v1728_v15 = vor.u32 %v1726_v21, %v1725_v56  ;;  %v1954_v49 = vor.u32 %v1953_v32, %v1723_v4 }
 0x204   : > { %v1634_v36 = vmax.f32 %v1602_v11, 0.0  ;;  %1889 = vrot.lane.b32.xlu0 %v1658_v9, %s3970_s12  ;;  %v3634_v37 = vpop.f32.mrb[16].mxu0  ;;  %v1952_v38 = vor.u32 %v1951_v31, %v1716_v51  ;;  %v1721_v0 = vor.u32 %v1719_v8, %v1718_v60 }
 0x205   : > { %v1568_v35 = vmul.f32 %v3634_v37, %v4526_v14  ;;  %v1448_v40 = vpop.f32.mrb[17].mxu0  ;;  %v1660_v41 = vpack.c.bf16 %v1636_v5, %v1635_v19  ;;  %v1831_v42 = vsel %vm4179_vm4, %v1728_v15, %v1830_v1 }
 0x206   : > { %v1566_v43 = vmul.f32 %v4526_v14, %v1448_v40  ;;  %1983 = vrot.lane.b32.xlu1 %v1952_v38, %s3971_s13  ;;  %v3635_v44 = vpop.f32.mrb[18].mxu0  ;;  %v1659_v46 = vpack.c.bf16 %v1634_v36, %v1633_v34  ;;  %v1828_v50 = vsel %vm4179_vm4, %v1721_v0, %v1827_v33  ;;  %1832 = vst [vmem:[#allocation2 + $0x30] sm:$0xff] %v1831_v42  ;;  %v1842_v0 = vld [vmem:[#allocation2 + $0x50] sm:$0xff]  ;;  %v1839_v42 = vld [vmem:[#allocation2 + $0x48] sm:$0xff] }
 0x207   : > { %v1607_v54 = vadd.f32 %v4531_v39, %v1568_v35  ;;  %v1569_v55 = vmul.f32 %v3635_v44, %v4526_v14  ;;  %v1451_v57 = vpop.f32.mrb[19].mxu0  ;;  %v1737_v58 = vshrl.u32 %v1660_v41, 16  ;;  %v1740_v59 = vshll.u32 %v1660_v41, 16  ;;  %1829 = vst [vmem:[#allocation2 + $0x28] sm:$0xff] %v1828_v50 }
 0x208   : > { %v1605_v47 = vadd.f32 %v4531_v39, %v1566_v43  ;;  %v1567_v63 = vmul.f32 %v4526_v14, %v1451_v57  ;;  %1891 = vrot.lane.b32.xlu0 %v1659_v46, %s3970_s12  ;;  %v1730_v3 = vshrl.u32 %v1659_v46, 16  ;;  %v1733_v52 = vshll.u32 %v1659_v46, 16 }
 0x209   : > { %v1608_v6 = vadd.f32 %v4531_v39, %v1569_v55  ;;  %v1739_v7 = vrot.slane %v1737_v58, 7  ;;  %v1957_v53 = vrot.slane %v1740_v59, 1  ;;  %v1639_v62 = vmax.f32 %v1607_v54, 0.0 }
 0x20a   : > { %v1606_v10 = vadd.f32 %v4531_v39, %v1567_v63  ;;  %1985 = vrot.lane.b32.xlu1 %v1954_v49, %s3971_s13  ;;  %v1955_v12 = vrot.slane %v1733_v52, 1  ;;  %v1732_v48 = vrot.slane %v1730_v3, 7  ;;  %v1637_v17 = vmax.f32 %v1605_v47, 0.0 }
 0x20b   : > { %v1640_v2 = vmax.f32 %v1608_v6, 0.0  ;;  %v1742_v9 = vor.u32 %v1740_v59, %v1739_v7  ;;  %v1958_v51 = vor.u32 %v1957_v53, %v1737_v58 }
 0x20c   : > { %v1638_v16 = vmax.f32 %v1606_v10, 0.0  ;;  %1893 = vrot.lane.b32.xlu0 %v1660_v41, %s3970_s12  ;;  %v3638_v18 = vpop.f32.mrb[20].mxu0  ;;  %v1956_v23 = vor.u32 %v1955_v12, %v1730_v3  ;;  %v1735_v26 = vor.u32 %v1733_v52, %v1732_v48 }
 0x20d   : > { %v1572_v27 = vmul.f32 %v3638_v18, %v4526_v14  ;;  %v1464_v29 = vpop.f32.mrb[21].mxu0  ;;  %v1662_v45 = vpack.c.bf16 %v1640_v2, %v1639_v62  ;;  %v1837_v4 = vsel %vm4179_vm4, %v1742_v9, %v1836_v61 }
 0x20e   : > { %v1570_v21 = vmul.f32 %v4526_v14, %v1464_v29  ;;  %1987 = vrot.lane.b32.xlu1 %v1956_v23, %s3971_s13  ;;  %v3639_v22 = vpop.f32.mrb[22].mxu0  ;;  %v1661_v30 = vpack.c.bf16 %v1638_v16, %v1637_v17  ;;  %v1834_v8 = vsel %vm4179_vm4, %v1735_v26, %v1833_v13  ;;  %1838 = vst [vmem:[#allocation2 + $0x40] sm:$0xff] %v1837_v4  ;;  %v1848_v26 = vld [vmem:[#allocation2 + $0x60] sm:$0xff]  ;;  %v1845_v4 = vld [vmem:[#allocation2 + $0x58] sm:$0xff] }
 0x20f   : > { %v1611_v28 = vadd.f32 %v4531_v39, %v1572_v27  ;;  %v1573_v56 = vmul.f32 %v3639_v22, %v4526_v14  ;;  %v1467_v11 = vpop.f32.mrb[23].mxu0  ;;  %v1751_v31 = vshrl.u32 %v1662_v45, 16  ;;  %v1754_v60 = vshll.u32 %v1662_v45, 16  ;;  %1835 = vst [vmem:[#allocation2 + $0x38] sm:$0xff] %v1834_v8 }
 0x210   : > { %v1609_v32 = vadd.f32 %v4531_v39, %v1570_v21  ;;  %v1571_v1 = vmul.f32 %v4526_v14, %v1467_v11  ;;  %1895 = vrot.lane.b32.xlu0 %v1661_v30, %s3970_s12  ;;  %v1744_v19 = vshrl.u32 %v1661_v30, 16  ;;  %v1747_v5 = vshll.u32 %v1661_v30, 16 }
 0x211   : > { %v1612_v15 = vadd.f32 %v4531_v39, %v1573_v56  ;;  %v1753_v33 = vrot.slane %v1751_v31, 7  ;;  %v1961_v38 = vrot.slane %v1754_v60, 1  ;;  %v1643_v35 = vmax.f32 %v1611_v28, 0.0 }
 0x212   : > { %v1610_v34 = vadd.f32 %v4531_v39, %v1571_v1  ;;  %1989 = vrot.lane.b32.xlu1 %v1958_v51, %s3971_s13  ;;  %v1959_v36 = vrot.slane %v1747_v5, 1  ;;  %v1746_v37 = vrot.slane %v1744_v19, 7  ;;  %v1641_v43 = vmax.f32 %v1609_v32, 0.0 }
 0x213   : > { %v1644_v40 = vmax.f32 %v1612_v15, 0.0  ;;  %v1756_v41 = vor.u32 %v1754_v60, %v1753_v33  ;;  %v1962_v3 = vor.u32 %v1961_v38, %v1751_v31 }
 0x214   : > { %v1642_v44 = vmax.f32 %v1610_v34, 0.0  ;;  %1897 = vrot.lane.b32.xlu0 %v1662_v45, %s3970_s12  ;;  %v3642_v46 = vpop.f32.mrb[24].mxu0  ;;  %v1960_v49 = vor.u32 %v1959_v36, %v1744_v19  ;;  %v1749_v50 = vor.u32 %v1747_v5, %v1746_v37 }
 0x215   : > { %v1576_v54 = vmul.f32 %v3642_v46, %v4526_v14  ;;  %v1480_v55 = vpop.f32.mrb[25].mxu0  ;;  %v1664_v57 = vpack.c.bf16 %v1644_v40, %v1643_v35  ;;  %v1843_v58 = vsel %vm4179_vm4, %v1756_v41, %v1842_v0 }
 0x216   : > { %v1574_v59 = vmul.f32 %v4526_v14, %v1480_v55  ;;  %1991 = vrot.lane.b32.xlu1 %v1960_v49, %s3971_s13  ;;  %v3643_v47 = vpop.f32.mrb[26].mxu0  ;;  %v1663_v63 = vpack.c.bf16 %v1642_v44, %v1641_v43  ;;  %v1840_v52 = vsel %vm4179_vm4, %v1749_v50, %v1839_v42  ;;  %1844 = vst [vmem:[#allocation2 + $0x50] sm:$0xff] %v1843_v58  ;;  %v1854_v49 = vld [vmem:[#allocation2 + $0x70] sm:$0xff]  ;;  %v1851_v58 = vld [vmem:[#allocation2 + $0x68] sm:$0xff] }
 0x217   : > { %v1615_v6 = vadd.f32 %v4531_v39, %v1576_v54  ;;  %v1577_v7 = vmul.f32 %v3643_v47, %v4526_v14  ;;  %v1483_v10 = vpop.f32.mrb[27].mxu0  ;;  %v1765_v12 = vshrl.u32 %v1664_v57, 16  ;;  %v1768_v48 = vshll.u32 %v1664_v57, 16  ;;  %1841 = vst [vmem:[#allocation2 + $0x48] sm:$0xff] %v1840_v52 }
 0x218   : > { %v1613_v53 = vadd.f32 %v4531_v39, %v1574_v59  ;;  %v1575_v61 = vmul.f32 %v4526_v14, %v1483_v10  ;;  %1899 = vrot.lane.b32.xlu0 %v1663_v63, %s3970_s12  ;;  %v1758_v62 = vshrl.u32 %v1663_v63, 16  ;;  %v1761_v2 = vshll.u32 %v1663_v63, 16 }
 0x219   : > { %v1616_v9 = vadd.f32 %v4531_v39, %v1577_v7  ;;  %v1767_v13 = vrot.slane %v1765_v12, 7  ;;  %v1965_v23 = vrot.slane %v1768_v48, 1  ;;  %v1647_v27 = vmax.f32 %v1615_v6, 0.0 }
 0x21a   : > { %v1614_v17 = vadd.f32 %v4531_v39, %v1575_v61  ;;  %1993 = vrot.lane.b32.xlu1 %v1962_v3, %s3971_s13  ;;  %v1963_v16 = vrot.slane %v1761_v2, 1  ;;  %v1760_v18 = vrot.slane %v1758_v62, 7  ;;  %v1645_v21 = vmax.f32 %v1613_v53, 0.0 }
 0x21b   : > { %v1648_v29 = vmax.f32 %v1616_v9, 0.0  ;;  %v1770_v45 = vor.u32 %v1768_v48, %v1767_v13  ;;  %v1966_v19 = vor.u32 %v1965_v23, %v1765_v12  ;;  %v1860_v13 = vld [vmem:[#allocation2 + $0x80] sm:$0xff] }
 0x21c   : > { %v1646_v22 = vmax.f32 %v1614_v17, 0.0  ;;  %1901 = vrot.lane.b32.xlu0 %v1664_v57, %s3970_s12  ;;  %v3646_v30 = vpop.f32.mrb[28].mxu0  ;;  %v1964_v51 = vor.u32 %v1963_v16, %v1758_v62  ;;  %v1763_v8 = vor.u32 %v1761_v2, %v1760_v18  ;;  %v1857_v18 = vld [vmem:[#allocation2 + $0x78] sm:$0xff] }
 0x21d   : > { %v1580_v28 = vmul.f32 %v3646_v30, %v4526_v14  ;;  %v1496_v56 = vpop.f32.mrb[29].mxu0  ;;  %v1666_v11 = vpack.c.bf16 %v1648_v29, %v1647_v27  ;;  %v1849_v31 = vsel %vm4179_vm4, %v1770_v45, %v1848_v26 }
 0x21e   : > { %v1578_v60 = vmul.f32 %v4526_v14, %v1496_v56  ;;  %1995 = vrot.lane.b32.xlu1 %v1964_v51, %s3971_s13  ;;  %v3647_v32 = vpop.f32.mrb[30].mxu0  ;;  %v1665_v1 = vpack.c.bf16 %v1646_v22, %v1645_v21  ;;  %v1846_v5 = vsel %vm4179_vm4, %v1763_v8, %v1845_v4  ;;  %1850 = vst [vmem:[#allocation2 + $0x60] sm:$0xff] %v1849_v31 }
 0x21f   : > { %v1619_v15 = vadd.f32 %v4531_v39, %v1580_v28  ;;  %v1581_v33 = vmul.f32 %v3647_v32, %v4526_v14  ;;  %v1499_v34 = vpop.f32.mrb[31].mxu0  ;;  %v1779_v36 = vshrl.u32 %v1666_v11, 16  ;;  %v1782_v37 = vshll.u32 %v1666_v11, 16  ;;  %1847 = vst [vmem:[#allocation2 + $0x58] sm:$0xff] %v1846_v5  ;;  %v3926_v28 = vld [vmem:[%s5022_s4 + $0x8] ss:$0 sps:$4 sm:$0xff]  }
 0x220   : > { %v1617_v38 = vadd.f32 %v4531_v39, %v1578_v60  ;;  %v1579_v0 = vmul.f32 %v4526_v14, %v1499_v34  ;;  %1903 = vrot.lane.b32.xlu0 %v1665_v1, %s3970_s12  ;;  %v1772_v35 = vshrl.u32 %v1665_v1, 16  ;;  %v1775_v40 = vshll.u32 %v1665_v1, 16  ;;  %v4702_v32 = vld [vmem:[%s5022_s4 + $0x18] sm:$0xff]  }
 0x221   : > { %v1620_v41 = vadd.f32 %v4531_v39, %v1581_v33  ;;  %v1781_v42 = vrot.slane %v1779_v36, 7  ;;  %v1651_v50 = vmax.f32 %v1619_v15, 0.0  ;;  %v1969_v57 = vrot.slane %v1782_v37, 1 }
 0x222   : > { %v1618_v43 = vadd.f32 %v4531_v39, %v1579_v0  ;;  %1997 = vrot.lane.b32.xlu1 %v1966_v19, %s3971_s13  ;;  %v1967_v44 = vrot.slane %v1775_v40, 1  ;;  %v1774_v46 = vrot.slane %v1772_v35, 7  ;;  %v1649_v14 = vmax.f32 %v1617_v38, 0.0 }
 0x223   : > { %v1652_v54 = vmax.f32 %v1620_v41, 0.0  ;;  %v1784_v55 = vor.u32 %v1782_v37, %v1781_v42  ;;  %v1970_v12 = vor.u32 %v1969_v57, %v1779_v36  ;;  %v2389_v60 = vsel %vm883_vm1, %v3926_v28, 0 }
 0x224   : > { %v1650_v59 = vmax.f32 %v1618_v43, 0.0  ;;  %1905 = vrot.lane.b32.xlu0 %v1666_v11, %s3970_s12  ;;  %v1968_v47 = vor.u32 %v1967_v44, %v1772_v35  ;;  %v1777_v63 = vor.u32 %v1775_v40, %v1774_v46 }
 0x225   : > { %v1668_v3 = vpack.c.bf16 %v1652_v54, %v1651_v50  ;;  %v1855_v39 = vsel %vm4179_vm4, %v1784_v55, %v1854_v49 }
 0x226   : > { %1999 = vrot.lane.b32.xlu1 %v1968_v47, %s3971_s13  ;;  %v1667_v52 = vpack.c.bf16 %v1650_v59, %v1649_v14  ;;  %v1852_v6 = vsel %vm4179_vm4, %v1777_v63, %v1851_v58  ;;  %1856 = vst [vmem:[#allocation2 + $0x70] sm:$0xff] %v1855_v39 }
 0x227   : > { %v1793_v7 = vshrl.u32 %v1668_v3, 16  ;;  %v1796_v10 = vshll.u32 %v1668_v3, 16  ;;  %1853 = vst [vmem:[#allocation2 + $0x68] sm:$0xff] %v1852_v6 }
 0x228   : > { %1907 = vrot.lane.b32.xlu0 %v1667_v52, %s3970_s12  ;;  %v1786_v48 = vshrl.u32 %v1667_v52, 16  ;;  %v1789_v53 = vshll.u32 %v1667_v52, 16 }
 0x229   : > { %v1973_v61 = vrot.slane %v1796_v10, 1  ;;  %v1795_v62 = vrot.slane %v1793_v7, 7 }
 0x22a   : > { %2001 = vrot.lane.b32.xlu1 %v1970_v12, %s3971_s13  ;;  %v1971_v2 = vrot.slane %v1789_v53, 1  ;;  %v1788_v9 = vrot.slane %v1786_v48, 7 }
 0x22b   : > { %v1974_v17 = vor.u32 %v1973_v61, %v1793_v7  ;;  %v1798_v16 = vor.u32 %v1796_v10, %v1795_v62 }
 0x22c   : > { %1909 = vrot.lane.b32.xlu0 %v1668_v3, %s3970_s12  ;;  %v1791_v23 = vor.u32 %v1789_v53, %v1788_v9  ;;  %v1972_v27 = vor.u32 %v1971_v2, %v1786_v48 }
 0x22d   : > { %v1861_v26 = vsel %vm4179_vm4, %v1798_v16, %v1860_v13 }
 0x22e   : > { %2005 = vrot.lane.b32.xlu1 %v1974_v17, %s3971_s13  ;;  %v1858_v29 = vsel %vm4179_vm4, %v1791_v23, %v1857_v18  ;;  %1862 = vst [vmem:[#allocation2 + $0x80] sm:$0xff] %v1861_v26 }
 0x22f   : > { %1859 = vst [vmem:[#allocation2 + $0x78] sm:$0xff] %v1858_v29 }
 0x230   : > { %2003 = vrot.lane.b32.xlu0 %v1972_v27, %s3971_s13 }
 0x261   : > { %v1882_v45 = vpop.permute.xlu1 %1881 }
 0x262   : > { %1928 = vst.msk [vmem:[#allocation2 + $0x10] sm:$0xff] %vm639_vm5, %v1882_v45  ;;  %v1880_v4 = vpop.permute.xlu0 %1879 }
 0x263   : > { %1927 = vst.msk [vmem:[#allocation2 + $0x8] sm:$0xff] %vm639_vm5, %v1880_v4 }
 0x268   : > { %v1976_v21 = vpop.permute.xlu1 %1975 }
 0x269   : > { %v2026_v25 = vld [vmem:[#allocation2 + $0x10] sm:$0xff] }
 0x26a   : > { %v2023_v22 = vld [vmem:[#allocation2 + $0x8] sm:$0xff]  ;;  %v1884_v30 = vpop.permute.xlu0 %1883 }
 0x26b   : > { %v4679_v51 = vsel %vm4302_vm8, %v1976_v21, %v2023_v22  ;;  %1929 = vst.msk [vmem:[#allocation2 + $0x18] sm:$0xff] %vm639_vm5, %v1884_v30  ;;  %v2071_v22 = vld [vmem:[#allocation2] sm:$0xff] }
 0x26c   : > { %2025 = vst [vmem:[#allocation2 + $0x8] sm:$0xff] %v4679_v51  ;;  %v1978_v8 = vpop.permute.xlu1 %1977  ;;  %3652 = vmatprep.mubr.msk.bf16.mxu1 %vm312_vm0, %v4679_v51 }
 0x26d   : > { %v4690_v56 = vsel %vm4302_vm8, %v1978_v8, %v2026_v25  ;;  %v3928_v25 = vld [vmem:[%s5022_s4 + $0x20] ss:$0 sps:$4 sm:$0xff]  }
 0x26e   : > { %2028 = vst [vmem:[#allocation2 + $0x10] sm:$0xff] %v4690_v56  ;;  %v1886_v11 = vpop.permute.xlu0 %1885  ;;  %3653 = vmatmul.mubr.msk.bf16.vlgmr.msra.gmra.mrb[0].mxu1 %vm312_vm0, %v4690_v56  ;;  %v2630_v24 = vsel %vm883_vm1, %v3928_v25, 0  ;;  %v4857_v8 = vld [vmem:[%s5023_s5] ss:$0 sm:$0xff] }
 0x26f   : > { %1930 = vst.msk [vmem:[#allocation2 + $0x20] sm:$0xff] %vm639_vm5, %v1886_v11  ;;  %3685 = vmatpush3.bf16.msra.mxu1 %v4574_v20  ;;  %v3945_v11 = vld [vmem:[%s4076_s11 + $0x8] sm:$0xff]  }
 0x270   : > { %v1980_v31 = vpop.permute.xlu1 %1979  ;;  %3888 = vmatprep.subr.msk.bf16.mxu1 %vm883_vm1, %v3926_v28 }
 0x272   : > { %v2029_v1 = vld [vmem:[#allocation2 + $0x18] sm:$0xff]  ;;  %v1888_v19 = vpop.permute.xlu0 %1887 }
 0x273   : > { %v4706_v5 = vsel %vm4302_vm8, %v1980_v31, %v2029_v1  ;;  %1931 = vst.msk [vmem:[#allocation2 + $0x28] sm:$0xff] %vm639_vm5, %v1888_v19  ;;  %3687 = vmatpush3.bf16.msra.mxu1 %v2389_v60  ;;  %v2905_v31 = vunpack.c.l.bf16 %v3945_v11  ;;  %v3946_v1 = vld [vmem:[%s4076_s11] sm:$0xff]  }
 0x274   : > { %2031 = vst [vmem:[#allocation2 + $0x18] sm:$0xff] %v4706_v5  ;;  %v1982_v20 = vpop.permute.xlu1 %1981  ;;  %3656 = vmatprep.mubr.msk.bf16.mxu1 %vm312_vm0, %v4706_v5  ;;  %3720 = vmatprep.subr.bf16.mxu1 %v4702_v32  ;;  %v2903_v19 = vunpack.c.l.bf16 %v3946_v1 }
 0x276   : > { %v2032_v15 = vld [vmem:[#allocation2 + $0x20] sm:$0xff]  ;;  %v1890_v33 = vpop.permute.xlu0 %1889 }
 0x277   : > { %v4715_v34 = vsel %vm4302_vm8, %v1982_v20, %v2032_v15  ;;  %1932 = vst.msk [vmem:[#allocation2 + $0x30] sm:$0xff] %vm639_vm5, %v1890_v33  ;;  %v2906_v15 = vunpack.c.h.bf16 %v3945_v11 }
 0x278   : > { %2034 = vst [vmem:[#allocation2 + $0x20] sm:$0xff] %v4715_v34  ;;  %v1984_v36 = vpop.permute.xlu1 %1983  ;;  %3657 = vmatmul.mubr.msk.bf16.gmra.mrb[4].mxu1 %vm312_vm0, %v4715_v34 }
 0x27a   : > { %v2035_v37 = vld [vmem:[#allocation2 + $0x28] sm:$0xff]  ;;  %v1892_v38 = vpop.permute.xlu0 %1891 }
 0x27b   : > { %v4723_v0 = vsel %vm4302_vm8, %v1984_v36, %v2035_v37  ;;  %1933 = vst.msk [vmem:[#allocation2 + $0x38] sm:$0xff] %vm639_vm5, %v1892_v38  ;;  %v2904_v37 = vunpack.c.h.bf16 %v3946_v1 }
 0x27c   : > { %2037 = vst [vmem:[#allocation2 + $0x28] sm:$0xff] %v4723_v0  ;;  %v1986_v35 = vpop.permute.xlu1 %1985  ;;  %3660 = vmatprep.mubr.msk.bf16.mxu1 %vm312_vm0, %v4723_v0 }
 0x27e   : > { %v2038_v40 = vld [vmem:[#allocation2 + $0x30] sm:$0xff]  ;;  %v1894_v41 = vpop.permute.xlu0 %1893 }
 0x27f   : > { %v4731_v42 = vsel %vm4302_vm8, %v1986_v35, %v2038_v40  ;;  %1934 = vst.msk [vmem:[#allocation2 + $0x40] sm:$0xff] %vm639_vm5, %v1894_v41 }
 0x280   : > { %2040 = vst [vmem:[#allocation2 + $0x30] sm:$0xff] %v4731_v42  ;;  %v1988_v43 = vpop.permute.xlu1 %1987  ;;  %3661 = vmatmul.mubr.msk.bf16.gmra.mrb[8].mxu1 %vm312_vm0, %v4731_v42 }
 0x282   : > { %v2041_v44 = vld [vmem:[#allocation2 + $0x38] sm:$0xff]  ;;  %v1896_v46 = vpop.permute.xlu0 %1895 }
 0x283   : > { %v4739_v49 = vsel %vm4302_vm8, %v1988_v43, %v2041_v44  ;;  %1935 = vst.msk [vmem:[#allocation2 + $0x48] sm:$0xff] %vm639_vm5, %v1896_v46 }
 0x284   : > { %2043 = vst [vmem:[#allocation2 + $0x38] sm:$0xff] %v4739_v49  ;;  %v1990_v50 = vpop.permute.xlu1 %1989  ;;  %3664 = vmatprep.mubr.msk.bf16.mxu1 %vm312_vm0, %v4739_v49 }
 0x286   : > { %v2044_v54 = vld [vmem:[#allocation2 + $0x40] sm:$0xff]  ;;  %v1898_v55 = vpop.permute.xlu0 %1897 }
 0x287   : > { %v4747_v57 = vsel %vm4302_vm8, %v1990_v50, %v2044_v54  ;;  %1936 = vst.msk [vmem:[#allocation2 + $0x50] sm:$0xff] %vm639_vm5, %v1898_v55  ;;  %v3947_v54 = vld [vmem:[%s4076_s11 + $0x18] sm:$0xff]  }
 0x288   : > { %2046 = vst [vmem:[#allocation2 + $0x40] sm:$0xff] %v4747_v57  ;;  %v1992_v58 = vpop.permute.xlu1 %1991  ;;  %3665 = vmatmul.mubr.msk.bf16.gmra.mrb[12].mxu1 %vm312_vm0, %v4747_v57  ;;  %v2909_v55 = vunpack.c.l.bf16 %v3947_v54 }
 0x28a   : > { %v2047_v14 = vld [vmem:[#allocation2 + $0x48] sm:$0xff]  ;;  %v1900_v59 = vpop.permute.xlu0 %1899 }
 0x28b   : > { %v4755_v47 = vsel %vm4302_vm8, %v1992_v58, %v2047_v14  ;;  %1937 = vst.msk [vmem:[#allocation2 + $0x58] sm:$0xff] %vm639_vm5, %v1900_v59 }
 0x28c   : > { %2049 = vst [vmem:[#allocation2 + $0x48] sm:$0xff] %v4755_v47  ;;  %v1994_v63 = vpop.permute.xlu1 %1993  ;;  %3668 = vmatprep.mubr.msk.bf16.mxu1 %vm312_vm0, %v4755_v47 }
 0x28e   : > { %v2050_v3 = vld [vmem:[#allocation2 + $0x50] sm:$0xff]  ;;  %v1902_v39 = vpop.permute.xlu0 %1901 }
 0x28f   : > { %v4763_v52 = vsel %vm4302_vm8, %v1994_v63, %v2050_v3  ;;  %1938 = vst.msk [vmem:[#allocation2 + $0x60] sm:$0xff] %vm639_vm5, %v1902_v39 }
 0x290   : > { %2052 = vst [vmem:[#allocation2 + $0x50] sm:$0xff] %v4763_v52  ;;  %v1996_v6 = vpop.permute.xlu1 %1995  ;;  %3669 = vmatmul.mubr.msk.bf16.gmra.mrb[16].mxu1 %vm312_vm0, %v4763_v52 }
 0x292   : > { %v2053_v7 = vld [vmem:[#allocation2 + $0x58] sm:$0xff]  ;;  %v1904_v10 = vpop.permute.xlu0 %1903 }
 0x293   : > { %v4771_v12 = vsel %vm4302_vm8, %v1996_v6, %v2053_v7  ;;  %1939 = vst.msk [vmem:[#allocation2 + $0x68] sm:$0xff] %vm639_vm5, %v1904_v10  ;;  %v2910_v7 = vunpack.c.h.bf16 %v3947_v54 }
 0x294   : > { %2055 = vst [vmem:[#allocation2 + $0x58] sm:$0xff] %v4771_v12  ;;  %v1998_v48 = vpop.permute.xlu1 %1997  ;;  %3672 = vmatprep.mubr.msk.bf16.mxu1 %vm312_vm0, %v4771_v12 }
 0x296   : > { %v2056_v53 = vld [vmem:[#allocation2 + $0x60] sm:$0xff]  ;;  %v1906_v61 = vpop.permute.xlu0 %1905 }
 0x297   : > { %v2057_v62 = vsel %vm4302_vm8, %v1998_v48, %v2056_v53  ;;  %1940 = vst.msk [vmem:[#allocation2 + $0x70] sm:$0xff] %vm639_vm5, %v1906_v61 }
 0x298   : > { %2058 = vst [vmem:[#allocation2 + $0x60] sm:$0xff] %v2057_v62  ;;  %v2000_v2 = vpop.permute.xlu1 %1999  ;;  %3673 = vmatmul.mubr.msk.bf16.gmra.mrb[20].mxu1 %vm312_vm0, %v2057_v62 }
 0x29a   : > { %v2059_v9 = vld [vmem:[#allocation2 + $0x68] sm:$0xff]  ;;  %v1908_v13 = vpop.permute.xlu0 %1907 }
 0x29b   : > { %v2060_v17 = vsel %vm4302_vm8, %v2000_v2, %v2059_v9  ;;  %1941 = vst.msk [vmem:[#allocation2 + $0x78] sm:$0xff] %vm639_vm5, %v1908_v13 }
 0x29c   : > { %2061 = vst [vmem:[#allocation2 + $0x68] sm:$0xff] %v2060_v17  ;;  %3676 = vmatprep.mubr.msk.bf16.mxu1 %vm312_vm0, %v2060_v17  ;;  %v2002_v18 = vpop.permute.xlu1 %2001 }
 0x29e   : > { %v2062_v16 = vld [vmem:[#allocation2 + $0x70] sm:$0xff]  ;;  %v1910_v23 = vpop.permute.xlu0 %1909 }
 0x29f   : > { %v2063_v26 = vsel %vm4302_vm8, %v2002_v18, %v2062_v16  ;;  %1942 = vst.msk [vmem:[#allocation2 + $0x80] sm:$0xff] %vm639_vm5, %v1910_v23 }
 0x2a0   : > { %2064 = vst [vmem:[#allocation2 + $0x70] sm:$0xff] %v2063_v26  ;;  %3677 = vmatmul.mubr.msk.bf16.gmra.mrb[24].mxu1 %vm312_vm0, %v2063_v26  ;;  %v2006_v4 = vpop.permute.xlu1 %2005 }
 0x2a2   : > { %v2004_v27 = vpop.permute.xlu0 %2003  ;;  %v2065_v29 = vld [vmem:[#allocation2 + $0x78] sm:$0xff] }
 0x2a3   : > { %v2066_v45 = vsel %vm4302_vm8, %v2004_v27, %v2065_v29 }
 0x2a4   : > { %2067 = vst [vmem:[#allocation2 + $0x78] sm:$0xff] %v2066_v45  ;;  %3680 = vmatprep.mubr.msk.bf16.mxu1 %vm312_vm0, %v2066_v45 }
 0x2a6   : > { %v2068_v21 = vld [vmem:[#allocation2 + $0x80] sm:$0xff] }
 0x2a7   : > { %v2069_v30 = vsel %vm4302_vm8, %v2006_v4, %v2068_v21  ;;  %v3949_v4 = vld [vmem:[%s4076_s11 + $0x28] sm:$0xff]  }
 0x2a8   : > { %2070 = vst [vmem:[#allocation2 + $0x80] sm:$0xff] %v2069_v30  ;;  %3681 = vmatmul.mubr.msk.bf16.gmra.mrb[28].mxu1 %vm312_vm0, %v2069_v30  ;;  %v2913_v21 = vunpack.c.l.bf16 %v3949_v4  ;;  %v2914_v1 = vunpack.c.h.bf16 %v3949_v4 }
 0x2a9   : > { %3688 = vmatprep.mubr.msk.bf16.mxu1 %vm312_vm0, %v2071_v22 }
 0x2b0   : > { %3689 = vmatmul.mubr.msk.bf16.vlgmr.msra.gmra.mrb[0].mxu1 %vm312_vm0, %v4679_v51  ;;  %v2567_v51 = vld [vmem:[#allocation2 + $0x88] sm:$0xff] }
 0x2b1   : > { %3721 = vmatpush3.bf16.msra.mxu1 %v4702_v32  ;;  %3692 = vmatprep.mubr.msk.bf16.mxu1 %vm312_vm0, %v4690_v56 }
 0x2b2   : > { %3889 = vmatprep.subr.msk.bf16.mxu1 %vm883_vm1, %v3928_v25 }
 0x2b5   : > { %3723 = vmatpush3.bf16.msra.mxu1 %v2630_v24 }
 0x2b8   : > { %3693 = vmatmul.mubr.msk.bf16.gmra.mrb[4].mxu1 %vm312_vm0, %v4706_v5 }
 0x2b9   : > { %3696 = vmatprep.mubr.msk.bf16.mxu1 %vm312_vm0, %v4715_v34 }
 0x2c0   : > { %3697 = vmatmul.mubr.msk.bf16.gmra.mrb[8].mxu1 %vm312_vm0, %v4723_v0 }
 0x2c1   : > { %3700 = vmatprep.mubr.msk.bf16.mxu1 %vm312_vm0, %v4731_v42 }
 0x2c8   : > { %3701 = vmatmul.mubr.msk.bf16.gmra.mrb[12].mxu1 %vm312_vm0, %v4739_v49 }
 0x2c9   : > { %3704 = vmatprep.mubr.msk.bf16.mxu1 %vm312_vm0, %v4747_v57 }
 0x2d0   : > { %3705 = vmatmul.mubr.msk.bf16.gmra.mrb[16].mxu1 %vm312_vm0, %v4755_v47 }
 0x2d1   : > { %3708 = vmatprep.mubr.msk.bf16.mxu1 %vm312_vm0, %v4763_v52 }
 0x2d8   : > { %3709 = vmatmul.mubr.msk.bf16.gmra.mrb[20].mxu1 %vm312_vm0, %v4771_v12 }
 0x2d9   : > { %3712 = vmatprep.mubr.msk.bf16.mxu1 %vm312_vm0, %v2057_v62 }
 0x2e0   : > { %3713 = vmatmul.mubr.msk.bf16.gmra.mrb[24].mxu1 %vm312_vm0, %v2060_v17 }
 0x2e1   : > { %3716 = vmatprep.mubr.msk.bf16.mxu1 %vm312_vm0, %v2063_v26 }
 0x2e8   : > { %3717 = vmatmul.mubr.msk.bf16.gmra.mrb[28].mxu1 %vm312_vm0, %v2066_v45 }
 0x2e9   : > { %3724 = vmatprep.mubr.msk.bf16.mxu1 %vm312_vm0, %v4690_v56  ;;  %v4862_v56 = vld [vmem:[%s5024_s6] ss:$0 sm:$0xff] }
 0x2f0   : > { %3725 = vmatmul.mubr.msk.bf16.vlgmr.msra.gmra.mrb[0].mxu1 %vm312_vm0, %v4706_v5 }
 0x2f1   : > { %3728 = vmatprep.mubr.msk.bf16.mxu1 %vm312_vm0, %v4715_v34 }
 0x2f8   : > { %3729 = vmatmul.mubr.msk.bf16.gmra.mrb[4].mxu1 %vm312_vm0, %v4723_v0 }
 0x2f9   : > { %3732 = vmatprep.mubr.msk.bf16.mxu1 %vm312_vm0, %v4731_v42 }
 0x300   : > { %3733 = vmatmul.mubr.msk.bf16.gmra.mrb[8].mxu1 %vm312_vm0, %v4739_v49 }
 0x301   : > { %3736 = vmatprep.mubr.msk.bf16.mxu1 %vm312_vm0, %v4747_v57 }
 0x308   : > { %3737 = vmatmul.mubr.msk.bf16.gmra.mrb[12].mxu1 %vm312_vm0, %v4755_v47  ;;  %v3948_v47 = vld [vmem:[%s4076_s11 + $0x10] sm:$0xff]  }
 0x309   : > { %3740 = vmatprep.mubr.msk.bf16.mxu1 %vm312_vm0, %v4763_v52  ;;  %v2907_v63 = vunpack.c.l.bf16 %v3948_v47  ;;  %v2908_v61 = vunpack.c.h.bf16 %v3948_v47 }
 0x310   : > { %3741 = vmatmul.mubr.msk.bf16.gmra.mrb[16].mxu1 %vm312_vm0, %v4771_v12 }
 0x311   : > { %3744 = vmatprep.mubr.msk.bf16.mxu1 %vm312_vm0, %v2057_v62 }
 0x318   : > { %3745 = vmatmul.mubr.msk.bf16.gmra.mrb[20].mxu1 %vm312_vm0, %v2060_v17 }
 0x319   : > { %3748 = vmatprep.mubr.msk.bf16.mxu1 %vm312_vm0, %v2063_v26 }
 0x320   : > { %3749 = vmatmul.mubr.msk.bf16.gmra.mrb[24].mxu1 %vm312_vm0, %v2066_v45 }
 0x321   : > { %3752 = vmatprep.mubr.msk.bf16.mxu1 %vm312_vm0, %v2069_v30 }
 0x328   : > { %3753 = vmatmul.mubr.msk.bf16.gmra.mrb[28].mxu1 %vm312_vm0, %v2567_v51  ;;  %v3950_v51 = vld [vmem:[%s4076_s11 + $0x20] sm:$0xff]  }
 0x3c3   : > { %v3726_v28 = vpop.f32.mrb[0].mxu1 }
 0x3c4   : > { %v2834_v60 = vmul.f32 %v3726_v28, %v4857_v8  ;;  %v2666_v32 = vpop.f32.mrb[1].mxu1  ;;  %v2911_v28 = vunpack.c.l.bf16 %v3950_v51 }
 0x3c5   : > { %v2832_v5 = vmul.f32 %v4857_v8, %v2666_v32  ;;  %v3727_v20 = vpop.f32.mrb[2].mxu1 }
 0x3c6   : > { %v2873_v33 = vadd.f32 %v4862_v56, %v2834_v60  ;;  %v2835_v34 = vmul.f32 %v3727_v20, %v4857_v8  ;;  %v2669_v36 = vpop.f32.mrb[3].mxu1 }
 0x3c7   : > { %v2871_v38 = vadd.f32 %v4862_v56, %v2832_v5  ;;  %v2833_v0 = vmul.f32 %v4857_v8, %v2669_v36 }
 0x3c8   : > { %v2937_v35 = vadd.f32 %v2905_v31, %v2873_v33  ;;  %v2874_v40 = vadd.f32 %v4862_v56, %v2835_v34  ;;  %v2912_v33 = vunpack.c.h.bf16 %v3950_v51 }
 0x3c9   : > { %v2935_v41 = vadd.f32 %v2903_v19, %v2871_v38  ;;  %v2872_v42 = vadd.f32 %v4862_v56, %v2833_v0 }
 0x3ca   : > { %v2969_v43 = vmax.f32 %v2937_v35, 0.0  ;;  %v2938_v44 = vadd.f32 %v2906_v15, %v2874_v40 }
 0x3cb   : > { %v2967_v46 = vmax.f32 %v2935_v41, 0.0  ;;  %v2936_v49 = vadd.f32 %v2904_v37, %v2872_v42  ;;  %v3730_v50 = vpop.f32.mrb[4].mxu1 }
 0x3cc   : > { %v3402_v57 = vpack.c.bf16 %v2969_v43, %v2969_v43  ;;  %v2970_v58 = vmax.f32 %v2938_v44, 0.0  ;;  %v2838_v14 = vmul.f32 %v3730_v50, %v4857_v8  ;;  %v2682_v59 = vpop.f32.mrb[5].mxu1 }
 0x3cd   : > { %v3400_v3 = vpack.c.bf16 %v2967_v46, %v2967_v46  ;;  %v2968_v39 = vmax.f32 %v2936_v49, 0.0  ;;  %v2836_v52 = vmul.f32 %v4857_v8, %v2682_v59  ;;  %v3731_v6 = vpop.f32.mrb[6].mxu1  ;;  %v3951_v49 = vld [vmem:[%s4076_s11 + $0x38] sm:$0xff]  }
 0x3ce   : > { %3130 = vst.msk [vmem:[%s4879_s27 + $0x8] sm:$0xf] %vm3127_vm9, %v3402_v57  ;;  %v3403_v10 = vpack.c.bf16 %v2970_v58, %v2970_v58  ;;  %v2877_v12 = vadd.f32 %v4862_v56, %v2838_v14  ;;  %v2839_v48 = vmul.f32 %v3731_v6, %v4857_v8  ;;  %v2685_v53 = vpop.f32.mrb[7].mxu1  ;;  %v2917_v50 = vunpack.c.l.bf16 %v3951_v49  ;;  %v3952_v14 = vld [vmem:[%s4076_s11 + $0x30] sm:$0xff]  }
 0x3cf   : > { %3128 = vst.msk [vmem:[%s4879_s27] sm:$0xf] %vm3127_vm9, %v3400_v3  ;;  %v3401_v62 = vpack.c.bf16 %v2968_v39, %v2968_v39  ;;  %v2875_v2 = vadd.f32 %v4862_v56, %v2836_v52  ;;  %v2837_v9 = vmul.f32 %v4857_v8, %v2685_v53  ;;  %v2915_v59 = vunpack.c.l.bf16 %v3952_v14 }
 0x3d0   : > { %3131 = vst.msk [vmem:[%s4879_s27 + $0xc] sm:$0xf] %vm3127_vm9, %v3403_v10  ;;  %v2941_v13 = vadd.f32 %v2909_v55, %v2877_v12  ;;  %v2878_v17 = vadd.f32 %v4862_v56, %v2839_v48  ;;  %v2918_v52 = vunpack.c.h.bf16 %v3951_v49  ;;  %v2916_v48 = vunpack.c.h.bf16 %v3952_v14 }
 0x3d1   : > { %3129 = vst.msk [vmem:[%s4879_s27 + $0x4] sm:$0xf] %vm3127_vm9, %v3401_v62  ;;  %v2939_v16 = vadd.f32 %v2907_v63, %v2875_v2  ;;  %v2876_v18 = vadd.f32 %v4862_v56, %v2837_v9 }
 0x3d2   : > { %v2973_v23 = vmax.f32 %v2941_v13, 0.0  ;;  %v2942_v26 = vadd.f32 %v2910_v7, %v2878_v17 }
 0x3d3   : > { %v2971_v27 = vmax.f32 %v2939_v16, 0.0  ;;  %v2940_v29 = vadd.f32 %v2908_v61, %v2876_v18  ;;  %v3734_v45 = vpop.f32.mrb[8].mxu1 }
 0x3d4   : > { %v3406_v22 = vpack.c.bf16 %v2973_v23, %v2973_v23  ;;  %v2974_v30 = vmax.f32 %v2942_v26, 0.0  ;;  %v2842_v25 = vmul.f32 %v3734_v45, %v4857_v8  ;;  %v2698_v24 = vpop.f32.mrb[9].mxu1 }
 0x3d5   : > { %v3404_v11 = vpack.c.bf16 %v2971_v27, %v2971_v27  ;;  %v2972_v31 = vmax.f32 %v2940_v29, 0.0  ;;  %v2840_v60 = vmul.f32 %v4857_v8, %v2698_v24  ;;  %v3735_v32 = vpop.f32.mrb[10].mxu1  ;;  %v3953_v29 = vld [vmem:[%s4076_s11 + $0x48] sm:$0xff]  }
 0x3d6   : > { %3134 = vst.msk [vmem:[%s4879_s27 + $0x18] sm:$0xf] %vm3127_vm9, %v3406_v22  ;;  %v3407_v19 = vpack.c.bf16 %v2974_v30, %v2974_v30  ;;  %v2881_v5 = vadd.f32 %v4862_v56, %v2842_v25  ;;  %v2843_v20 = vmul.f32 %v3735_v32, %v4857_v8  ;;  %v2701_v15 = vpop.f32.mrb[11].mxu1  ;;  %v2921_v45 = vunpack.c.l.bf16 %v3953_v29  ;;  %v3954_v25 = vld [vmem:[%s4076_s11 + $0x40] sm:$0xff]  }
 0x3d7   : > { %3132 = vst.msk [vmem:[%s4879_s27 + $0x10] sm:$0xf] %vm3127_vm9, %v3404_v11  ;;  %v3405_v34 = vpack.c.bf16 %v2972_v31, %v2972_v31  ;;  %v2879_v36 = vadd.f32 %v4862_v56, %v2840_v60  ;;  %v2841_v37 = vmul.f32 %v4857_v8, %v2701_v15  ;;  %v2919_v24 = vunpack.c.l.bf16 %v3954_v25 }
 0x3d8   : > { %3135 = vst.msk [vmem:[%s4879_s27 + $0x1c] sm:$0xf] %vm3127_vm9, %v3407_v19  ;;  %v2945_v38 = vadd.f32 %v2913_v21, %v2881_v5  ;;  %v2882_v0 = vadd.f32 %v4862_v56, %v2843_v20  ;;  %v2922_v60 = vunpack.c.h.bf16 %v3953_v29  ;;  %v2920_v20 = vunpack.c.h.bf16 %v3954_v25 }
 0x3d9   : > { %3133 = vst.msk [vmem:[%s4879_s27 + $0x14] sm:$0xf] %vm3127_vm9, %v3405_v34  ;;  %v2943_v35 = vadd.f32 %v2911_v28, %v2879_v36  ;;  %v2880_v40 = vadd.f32 %v4862_v56, %v2841_v37 }
 0x3da   : > { %v2977_v41 = vmax.f32 %v2945_v38, 0.0  ;;  %v2946_v42 = vadd.f32 %v2914_v1, %v2882_v0 }
 0x3db   : > { %v2975_v43 = vmax.f32 %v2943_v35, 0.0  ;;  %v2944_v44 = vadd.f32 %v2912_v33, %v2880_v40  ;;  %v3738_v46 = vpop.f32.mrb[12].mxu1 }
 0x3dc   : > { %v3410_v54 = vpack.c.bf16 %v2977_v41, %v2977_v41  ;;  %v2978_v55 = vmax.f32 %v2946_v42, 0.0  ;;  %v2846_v57 = vmul.f32 %v3738_v46, %v4857_v8  ;;  %v2714_v58 = vpop.f32.mrb[13].mxu1 }
 0x3dd   : > { %v3408_v47 = vpack.c.bf16 %v2975_v43, %v2975_v43  ;;  %v2976_v63 = vmax.f32 %v2944_v44, 0.0  ;;  %v2844_v3 = vmul.f32 %v4857_v8, %v2714_v58  ;;  %v3739_v39 = vpop.f32.mrb[14].mxu1  ;;  %v3955_v44 = vld [vmem:[%s4076_s11 + $0x58] sm:$0xff]  }
 0x3de   : > { %3138 = vst.msk [vmem:[%s4879_s27 + $0x28] sm:$0xf] %vm3127_vm9, %v3410_v54  ;;  %v3411_v6 = vpack.c.bf16 %v2978_v55, %v2978_v55  ;;  %v2885_v7 = vadd.f32 %v4862_v56, %v2846_v57  ;;  %v2847_v10 = vmul.f32 %v3739_v39, %v4857_v8  ;;  %v2717_v12 = vpop.f32.mrb[15].mxu1  ;;  %v2925_v46 = vunpack.c.l.bf16 %v3955_v44  ;;  %v3956_v57 = vld [vmem:[%s4076_s11 + $0x50] sm:$0xff]  }
 0x3df   : > { %3136 = vst.msk [vmem:[%s4879_s27 + $0x20] sm:$0xf] %vm3127_vm9, %v3408_v47  ;;  %v3409_v53 = vpack.c.bf16 %v2976_v63, %v2976_v63  ;;  %v2883_v61 = vadd.f32 %v4862_v56, %v2844_v3  ;;  %v2845_v62 = vmul.f32 %v4857_v8, %v2717_v12  ;;  %v2923_v58 = vunpack.c.l.bf16 %v3956_v57 }
 0x3e0   : > { %3139 = vst.msk [vmem:[%s4879_s27 + $0x2c] sm:$0xf] %vm3127_vm9, %v3411_v6  ;;  %v2949_v2 = vadd.f32 %v2917_v50, %v2885_v7  ;;  %v2886_v9 = vadd.f32 %v4862_v56, %v2847_v10  ;;  %v2926_v3 = vunpack.c.h.bf16 %v3955_v44  ;;  %v2924_v10 = vunpack.c.h.bf16 %v3956_v57 }
 0x3e1   : > { %3137 = vst.msk [vmem:[%s4879_s27 + $0x24] sm:$0xf] %vm3127_vm9, %v3409_v53  ;;  %v2947_v13 = vadd.f32 %v2915_v59, %v2883_v61  ;;  %v2884_v17 = vadd.f32 %v4862_v56, %v2845_v62 }
 0x3e2   : > { %v2981_v16 = vmax.f32 %v2949_v2, 0.0  ;;  %v2950_v18 = vadd.f32 %v2918_v52, %v2886_v9 }
 0x3e3   : > { %v2979_v23 = vmax.f32 %v2947_v13, 0.0  ;;  %v2948_v26 = vadd.f32 %v2916_v48, %v2884_v17  ;;  %v3742_v27 = vpop.f32.mrb[16].mxu1 }
 0x3e4   : > { %v3414_v4 = vpack.c.bf16 %v2981_v16, %v2981_v16  ;;  %v2982_v21 = vmax.f32 %v2950_v18, 0.0  ;;  %v2850_v22 = vmul.f32 %v3742_v27, %v4857_v8  ;;  %v2730_v30 = vpop.f32.mrb[17].mxu1 }
 0x3e5   : > { %v3412_v51 = vpack.c.bf16 %v2979_v23, %v2979_v23  ;;  %v2980_v28 = vmax.f32 %v2948_v26, 0.0  ;;  %v2848_v11 = vmul.f32 %v4857_v8, %v2730_v30  ;;  %v3743_v31 = vpop.f32.mrb[18].mxu1  ;;  %v3957_v26 = vld [vmem:[%s4076_s11 + $0x68] sm:$0xff]  }
 0x3e6   : > { %3142 = vst.msk [vmem:[%s4879_s27 + $0x38] sm:$0xf] %vm3127_vm9, %v3414_v4  ;;  %v3415_v32 = vpack.c.bf16 %v2982_v21, %v2982_v21  ;;  %v2889_v1 = vadd.f32 %v4862_v56, %v2850_v22  ;;  %v2851_v19 = vmul.f32 %v3743_v31, %v4857_v8  ;;  %v2733_v5 = vpop.f32.mrb[19].mxu1  ;;  %v2929_v27 = vunpack.c.l.bf16 %v3957_v26  ;;  %v3958_v22 = vld [vmem:[%s4076_s11 + $0x60] sm:$0xff]  }
 0x3e7   : > { %3140 = vst.msk [vmem:[%s4879_s27 + $0x30] sm:$0xf] %vm3127_vm9, %v3412_v51  ;;  %v3413_v15 = vpack.c.bf16 %v2980_v28, %v2980_v28  ;;  %v2887_v33 = vadd.f32 %v4862_v56, %v2848_v11  ;;  %v2849_v34 = vmul.f32 %v4857_v8, %v2733_v5  ;;  %v2927_v30 = vunpack.c.l.bf16 %v3958_v22 }
 0x3e8   : > { %3143 = vst.msk [vmem:[%s4879_s27 + $0x3c] sm:$0xf] %vm3127_vm9, %v3415_v32  ;;  %v2953_v36 = vadd.f32 %v2921_v45, %v2889_v1  ;;  %v2890_v37 = vadd.f32 %v4862_v56, %v2851_v19  ;;  %v2930_v11 = vunpack.c.h.bf16 %v3957_v26  ;;  %v2928_v19 = vunpack.c.h.bf16 %v3958_v22 }
 0x3e9   : > { %3141 = vst.msk [vmem:[%s4879_s27 + $0x34] sm:$0xf] %vm3127_vm9, %v3413_v15  ;;  %v2951_v38 = vadd.f32 %v2919_v24, %v2887_v33  ;;  %v2888_v0 = vadd.f32 %v4862_v56, %v2849_v34 }
 0x3ea   : > { %v2985_v35 = vmax.f32 %v2953_v36, 0.0  ;;  %v2954_v40 = vadd.f32 %v2922_v60, %v2890_v37 }
 0x3eb   : > { %v2983_v41 = vmax.f32 %v2951_v38, 0.0  ;;  %v2952_v42 = vadd.f32 %v2920_v20, %v2888_v0  ;;  %v3746_v43 = vpop.f32.mrb[20].mxu1 }
 0x3ec   : > { %v3418_v49 = vpack.c.bf16 %v2985_v35, %v2985_v35  ;;  %v2986_v50 = vmax.f32 %v2954_v40, 0.0  ;;  %v2854_v54 = vmul.f32 %v3746_v43, %v4857_v8  ;;  %v2746_v55 = vpop.f32.mrb[21].mxu1 }
 0x3ed   : > { %v3416_v14 = vpack.c.bf16 %v2983_v41, %v2983_v41  ;;  %v2984_v59 = vmax.f32 %v2952_v42, 0.0  ;;  %v2852_v47 = vmul.f32 %v4857_v8, %v2746_v55  ;;  %v3747_v63 = vpop.f32.mrb[22].mxu1  ;;  %v3959_v42 = vld [vmem:[%s4076_s11 + $0x78] sm:$0xff]  }
 0x3ee   : > { %3146 = vst.msk [vmem:[%s4879_s27 + $0x48] sm:$0xf] %vm3127_vm9, %v3418_v49  ;;  %v3419_v39 = vpack.c.bf16 %v2986_v50, %v2986_v50  ;;  %v2893_v52 = vadd.f32 %v4862_v56, %v2854_v54  ;;  %v2855_v6 = vmul.f32 %v3747_v63, %v4857_v8  ;;  %v2749_v7 = vpop.f32.mrb[23].mxu1  ;;  %v2933_v43 = vunpack.c.l.bf16 %v3959_v42  ;;  %v3960_v54 = vld [vmem:[%s4076_s11 + $0x70] sm:$0xff]  }
 0x3ef   : > { %3144 = vst.msk [vmem:[%s4879_s27 + $0x40] sm:$0xf] %vm3127_vm9, %v3416_v14  ;;  %v3417_v12 = vpack.c.bf16 %v2984_v59, %v2984_v59  ;;  %v2891_v48 = vadd.f32 %v4862_v56, %v2852_v47  ;;  %v2853_v53 = vmul.f32 %v4857_v8, %v2749_v7  ;;  %v2931_v55 = vunpack.c.l.bf16 %v3960_v54 }
 0x3f0   : > { %3147 = vst.msk [vmem:[%s4879_s27 + $0x4c] sm:$0xf] %vm3127_vm9, %v3419_v39  ;;  %v2957_v61 = vadd.f32 %v2925_v46, %v2893_v52  ;;  %v2894_v62 = vadd.f32 %v4862_v56, %v2855_v6  ;;  %v2934_v47 = vunpack.c.h.bf16 %v3959_v42  ;;  %v2932_v6 = vunpack.c.h.bf16 %v3960_v54 }
 0x3f1   : > { %3145 = vst.msk [vmem:[%s4879_s27 + $0x44] sm:$0xf] %vm3127_vm9, %v3417_v12  ;;  %v2955_v2 = vadd.f32 %v2923_v58, %v2891_v48  ;;  %v2892_v9 = vadd.f32 %v4862_v56, %v2853_v53 }
 0x3f2   : > { %v2989_v13 = vmax.f32 %v2957_v61, 0.0  ;;  %v2958_v17 = vadd.f32 %v2926_v3, %v2894_v62 }
 0x3f3   : > { %v2987_v16 = vmax.f32 %v2955_v2, 0.0  ;;  %v2956_v18 = vadd.f32 %v2924_v10, %v2892_v9  ;;  %v3750_v23 = vpop.f32.mrb[24].mxu1 }
 0x3f4   : > { %v3422_v29 = vpack.c.bf16 %v2989_v13, %v2989_v13  ;;  %v2990_v45 = vmax.f32 %v2958_v17, 0.0  ;;  %v2858_v4 = vmul.f32 %v3750_v23, %v4857_v8  ;;  %v2762_v21 = vpop.f32.mrb[25].mxu1 }
 0x3f5   : > { %v3420_v25 = vpack.c.bf16 %v2987_v16, %v2987_v16  ;;  %v2988_v24 = vmax.f32 %v2956_v18, 0.0  ;;  %v2856_v51 = vmul.f32 %v4857_v8, %v2762_v21  ;;  %v3751_v28 = vpop.f32.mrb[26].mxu1 }
 0x3f6   : > { %3150 = vst.msk [vmem:[%s4879_s27 + $0x58] sm:$0xf] %vm3127_vm9, %v3422_v29  ;;  %v3423_v31 = vpack.c.bf16 %v2990_v45, %v2990_v45  ;;  %v2897_v60 = vadd.f32 %v4862_v56, %v2858_v4  ;;  %v2859_v32 = vmul.f32 %v3751_v28, %v4857_v8  ;;  %v2765_v1 = vpop.f32.mrb[27].mxu1 }
 0x3f7   : > { %3148 = vst.msk [vmem:[%s4879_s27 + $0x50] sm:$0xf] %vm3127_vm9, %v3420_v25  ;;  %v3421_v5 = vpack.c.bf16 %v2988_v24, %v2988_v24  ;;  %v2895_v20 = vadd.f32 %v4862_v56, %v2856_v51  ;;  %v2857_v15 = vmul.f32 %v4857_v8, %v2765_v1 }
 0x3f8   : > { %3151 = vst.msk [vmem:[%s4879_s27 + $0x5c] sm:$0xf] %vm3127_vm9, %v3423_v31  ;;  %v2961_v33 = vadd.f32 %v2929_v27, %v2897_v60  ;;  %v2898_v34 = vadd.f32 %v4862_v56, %v2859_v32 }
 0x3f9   : > { %3149 = vst.msk [vmem:[%s4879_s27 + $0x54] sm:$0xf] %vm3127_vm9, %v3421_v5  ;;  %v2959_v36 = vadd.f32 %v2927_v30, %v2895_v20  ;;  %v2896_v37 = vadd.f32 %v4862_v56, %v2857_v15 }
 0x3fa   : > { %v2993_v38 = vmax.f32 %v2961_v33, 0.0  ;;  %v2962_v0 = vadd.f32 %v2930_v11, %v2898_v34 }
 0x3fb   : > { %v2991_v35 = vmax.f32 %v2959_v36, 0.0  ;;  %v2960_v40 = vadd.f32 %v2928_v19, %v2896_v37  ;;  %v3754_v41 = vpop.f32.mrb[28].mxu1 }
 0x3fc   : > { %v3426_v44 = vpack.c.bf16 %v2993_v38, %v2993_v38  ;;  %v2994_v46 = vmax.f32 %v2962_v0, 0.0  ;;  %v2862_v49 = vmul.f32 %v3754_v41, %v4857_v8  ;;  %v2778_v50 = vpop.f32.mrb[29].mxu1 }
 0x3fd   : > { %v3424_v57 = vpack.c.bf16 %v2991_v35, %v2991_v35  ;;  %v2992_v58 = vmax.f32 %v2960_v40, 0.0  ;;  %v2860_v14 = vmul.f32 %v4857_v8, %v2778_v50  ;;  %v3755_v59 = vpop.f32.mrb[30].mxu1 }
 0x3fe   : > { %3154 = vst.msk [vmem:[%s4879_s27 + $0x68] sm:$0xf] %vm3127_vm9, %v3426_v44  ;;  %v3427_v63 = vpack.c.bf16 %v2994_v46, %v2994_v46  ;;  %v2901_v3 = vadd.f32 %v4862_v56, %v2862_v49  ;;  %v2863_v39 = vmul.f32 %v3755_v59, %v4857_v8  ;;  %v2781_v52 = vpop.f32.mrb[31].mxu1 }
 0x3ff   : > { %3152 = vst.msk [vmem:[%s4879_s27 + $0x60] sm:$0xf] %vm3127_vm9, %v3424_v57  ;;  %v3425_v7 = vpack.c.bf16 %v2992_v58, %v2992_v58  ;;  %v2899_v10 = vadd.f32 %v4862_v56, %v2860_v14  ;;  %v2861_v12 = vmul.f32 %v4857_v8, %v2781_v52 }
 0x400   : > { %3155 = vst.msk [vmem:[%s4879_s27 + $0x6c] sm:$0xf] %vm3127_vm9, %v3427_v63  ;;  %v2965_v48 = vadd.f32 %v2933_v43, %v2901_v3  ;;  %v2902_v53 = vadd.f32 %v4862_v56, %v2863_v39 }
 0x401   : > { %3153 = vst.msk [vmem:[%s4879_s27 + $0x64] sm:$0xf] %vm3127_vm9, %v3425_v7  ;;  %v2963_v61 = vadd.f32 %v2931_v55, %v2899_v10  ;;  %v2900_v62 = vadd.f32 %v4862_v56, %v2861_v12 }
 0x402   : > { %v2997_v2 = vmax.f32 %v2965_v48, 0.0  ;;  %v2966_v9 = vadd.f32 %v2934_v47, %v2902_v53 }
 0x403   : > { %v2995_v13 = vmax.f32 %v2963_v61, 0.0  ;;  %v2964_v17 = vadd.f32 %v2932_v6, %v2900_v62 }
 0x404   : > { %v3430_v16 = vpack.c.bf16 %v2997_v2, %v2997_v2  ;;  %v2998_v18 = vmax.f32 %v2966_v9, 0.0 }
 0x405   : > { %v3428_v8 = vpack.c.bf16 %v2995_v13, %v2995_v13  ;;  %v2996_v23 = vmax.f32 %v2964_v17, 0.0 }
 0x406   : > { %3158 = vst.msk [vmem:[%s4879_s27 + $0x78] sm:$0xf] %vm3127_vm9, %v3430_v16  ;;  %v3431_v26 = vpack.c.bf16 %v2998_v18, %v2998_v18 }
 0x407   : > { %3156 = vst.msk [vmem:[%s4879_s27 + $0x70] sm:$0xf] %vm3127_vm9, %v3428_v8  ;;  %v3429_v27 = vpack.c.bf16 %v2996_v23, %v2996_v23 }
 0x408   : > { %3159 = vst.msk [vmem:[%s4879_s27 + $0x7c] sm:$0xf] %vm3127_vm9, %v3431_v26 }
 0x409   : > { %3157 = vst.msk [vmem:[%s4879_s27 + $0x74] sm:$0xf] %vm3127_vm9, %v3429_v27 }
 0x40a PF: > { %s17_s24 = sadd.s32 1, %s3967_s24  }
 0x40b   : > { %p14_p4 = scmp.ge.s32.totalorder %s17_s24, 4  }
 0x40d   :  { %16 = sbr.rel (!%p14_p4) target bundleno = 1 (0x1), region = 84 }

</bundles_post_ra>
